<compile_context>
chip_gen: v7x
topology: tpu7x:2x2x1
jax: 0.10.0
libtpu: 0.0.40
codegen_flags: <defaults>
</compile_context>

<pallas_src>
import functools

import jax
import jax.numpy as jnp
from jax import lax
from jax.experimental import pallas as pl
from jax.experimental.pallas import tpu as pltpu

EPS = 1e-5                      # PyTorch BatchNorm2d default eps
LANES = 128
_VMEM_LIMIT = 48 * 1024 * 1024  # leave headroom on v7x (64 MiB physical VMEM)


# ------------------------------ helpers ------------------------------------

def _round_up(n, m):
    return ((n + m - 1) // m) * m


def _pad_to(n, m=LANES):
    return _round_up(n, m)


def _pick_tile_m(m, k, c, target=2048, vmem_budget=16 * 1024 * 1024):
    """Row tile for the 1x1 / elementwise kernels.

    Prefers an exact divisor of m (multiple of 8).  If none exists the caller
    pads M to a tile multiple and masks the BN statistics in-kernel.
    """
    # bf16 in/out tiles (double-buffered) + in-kernel f32 temporaries.
    per_row = 4 * (k + c) + 8 * (k + c)
    t = min(target, max(8, vmem_budget // per_row))
    t = max(8, (t // 8) * 8)
    if t >= m:
        return _round_up(max(m, 8), 8)
    tt = t
    while tt >= 8:
        if m % tt == 0:
            return tt
        tt -= 8
    return t                      # no divisor -> caller pads + masks stats


def _pick_row_block(ho, wo, target_rows=512):
    """Output-row block for the 3x3 conv (keeps the f32 accumulator small)."""
    rb = max(1, min(ho, target_rows // max(wo, 1)))
    while ho % rb:
        rb -= 1
    return rb


# -------------------- kernel 1: matmul + BN partial stats -------------------
# y = (optional affine(x) [+ReLU]) @ w  ; also accumulate per-channel sum(y)
# and sum(y*y) across the M grid axis (accumulator outputs with constant
# block index -> that axis must stay "arbitrary"/sequential).

def _mm_bnstats_kernel(*refs, apply_affine, relu_in, m_valid, tm):
    if apply_affine:
        x_ref, w_ref, scale_ref, bias_ref, y_ref, sum_ref, sq_ref = refs
        x = x_ref[...].astype(jnp.float32) * scale_ref[...] + bias_ref[...]
        if relu_in:
            x = jnp.maximum(x, 0.0)
        xb = x.astype(jnp.bfloat16)
    else:
        x_ref, w_ref, y_ref, sum_ref, sq_ref = refs
        xb = x_ref[...]                               # already bf16, no prologue

    y = jnp.dot(xb, w_ref[...], preferred_element_type=jnp.float32)
    y_ref[...] = y.astype(y_ref.dtype)                # bf16 store (lane-dense)

    @pl.when(pl.program_id(0) == 0)
    def _init():
        sum_ref[...] = jnp.zeros_like(sum_ref)
        sq_ref[...] = jnp.zeros_like(sq_ref)

    if m_valid is not None:                           # padded M -> mask stats
        rows = pl.program_id(0) * tm + lax.broadcasted_iota(jnp.int32, y.shape, 0)
        y = jnp.where(rows < m_valid, y, 0.0)

    sum_ref[...] += jnp.sum(y, axis=0, keepdims=True)
    sq_ref[...] += jnp.sum(y * y, axis=0, keepdims=True)


def _matmul_bnstats(x2d, w, scale=None, bias=None, *, apply_affine, relu_in=False):
    m, k = x2d.shape
    c = w.shape[1]
    tm = _pick_tile_m(m, k, c)
    m_pad = _round_up(m, tm)
    padded = m_pad != m
    if padded:
        x2d = jnp.pad(x2d, ((0, m_pad - m), (0, 0)))

    in_specs = [pl.BlockSpec((tm, k), lambda i: (i, 0)),
                pl.BlockSpec((k, c), lambda i: (0, 0))]
    args = [x2d, w]
    if apply_affine:
        in_specs += [pl.BlockSpec((1, k), lambda i: (0, 0)),
                     pl.BlockSpec((1, k), lambda i: (0, 0))]
        args += [scale, bias]

    y, s, q = pl.pallas_call(
        functools.partial(_mm_bnstats_kernel, apply_affine=apply_affine,
                          relu_in=relu_in, m_valid=(m if padded else None), tm=tm),
        grid=(m_pad // tm,),
        in_specs=in_specs,
        out_specs=[
            pl.BlockSpec((tm, c), lambda i: (i, 0)),
            pl.BlockSpec((1, c), lambda i: (0, 0)),
            pl.BlockSpec((1, c), lambda i: (0, 0)),
        ],
        out_shape=[
            jax.ShapeDtypeStruct((m_pad, c), jnp.bfloat16),
            jax.ShapeDtypeStruct((1, c), jnp.float32),
            jax.ShapeDtypeStruct((1, c), jnp.float32),
        ],
        compiler_params=pltpu.CompilerParams(
            # M axis carries the BN-stats reduction -> must stay sequential.
            dimension_semantics=("arbitrary",),
            vmem_limit_bytes=_VMEM_LIMIT),
    )(*args)
    if padded:
        y = y[:m]
    return y, s, q


# ------------- kernel 2: 3x3 conv (9 accumulated matmuls) + stats -----------
# Per-image block; applies the bn1 affine + ReLU + zero spatial padding into a
# pre-zeroed VMEM scratch, then for each block of output rows accumulates
# 9 shifted-window matmuls in a single f32 accumulator (one store per block).
# Stride 2 uses column-parity pre-split inputs so only contiguous slices and
# leading-dim decimation are needed in-kernel.

def _conv3x3_bnstats_kernel(*args, stride, Ho, Wo, H, Wqs, rb):
    x_refs = args[:stride]
    w_ref, scale_ref, bias_ref, y_ref, sum_ref, sq_ref, pad_ref = args[stride:]
    C = w_ref.shape[1]
    Cout = w_ref.shape[2]
    wp = pad_ref.shape[2]

    scale = scale_ref[...]                   # (1, C)
    bias = bias_ref[...]

    # zero the padded buffer once, then write the affine(+ReLU) interiors.
    pad_ref[...] = jnp.zeros_like(pad_ref)
    for q in range(stride):
        g = x_refs[q][0].astype(jnp.float32)                       # (H, Wq, C)
        g = jnp.maximum(g * scale + bias, 0.0).astype(jnp.bfloat16)
        pad_ref[q, 1:1 + H, 1:1 + Wqs[q], :] = g

    psum = jnp.zeros((1, Cout), jnp.float32)
    psq = jnp.zeros((1, Cout), jnp.float32)

    qs_needed = sorted({(kw - 1) % stride for kw in range(3)})
    for blk in range(Ho // rb):
        r0 = blk * rb
        acc = jnp.zeros((rb * Wo, Cout), jnp.float32)
        for kh in range(3):
            # Hoisted per-(kh, parity) row windows (decimate rows once).
            rowwins = {}
            for q in qs_needed:
                top = stride * r0 + kh
                win = pad_ref[q, top:top + stride * rb, :, :]      # (s*rb, wp, C)
                if stride > 1:
                    win = win.reshape(rb, stride, wp, C)[:, 0]     # (rb, wp, C)
                rowwins[q] = win
            for kw in range(3):
                q = (kw - 1) % stride
                d = (kw - 1 - q) // stride
                cols = rowwins[q][:, d + 1:d + 1 + Wo, :]          # (rb, Wo, C)
                acc = acc + jnp.dot(cols.reshape(rb * Wo, C), w_ref[kh * 3 + kw],
                                    preferred_element_type=jnp.float32)
        y_ref[0, r0 * Wo:(r0 + rb) * Wo, :] = acc.astype(y_ref.dtype)
        psum = psum + jnp.sum(acc, axis=0, keepdims=True)
        psq = psq + jnp.sum(acc * acc, axis=0, keepdims=True)

    @pl.when(pl.program_id(0) == 0)
    def _init():
        sum_ref[...] = jnp.zeros_like(sum_ref)
        sq_ref[...] = jnp.zeros_like(sq_ref)

    sum_ref[...] += psum
    sq_ref[...] += psq


def _conv3x3_bnstats(y1_img, w2, scale1, bias1, stride, ho, wo):
    n, h, w_, c = y1_img.shape
    cout = w2.shape[2]
    if stride == 1:
        parity = [y1_img]
    else:
        parity = [y1_img[:, :, q::stride, :] for q in range(stride)]
    wqs = tuple(p.shape[2] for p in parity)
    eh = max(0, stride * ho - h)              # extra bottom pad (odd H, stride 2)
    hp = h + 2 + eh
    wp = max(wqs) + 2
    rb = _pick_row_block(ho, wo)

    in_specs = [pl.BlockSpec((1, h, wq, c), lambda i: (i, 0, 0, 0)) for wq in wqs]
    in_specs += [
        pl.BlockSpec((9, c, cout), lambda i: (0, 0, 0)),
        pl.BlockSpec((1, c), lambda i: (0, 0)),
        pl.BlockSpec((1, c), lambda i: (0, 0)),
    ]
    return pl.pallas_call(
        functools.partial(_conv3x3_bnstats_kernel, stride=stride, Ho=ho, Wo=wo,
                          H=h, Wqs=wqs, rb=rb),
        grid=(n,),
        in_specs=in_specs,
        out_specs=[
            pl.BlockSpec((1, ho * wo, cout), lambda i: (i, 0, 0)),
            pl.BlockSpec((1, cout), lambda i: (0, 0)),
            pl.BlockSpec((1, cout), lambda i: (0, 0)),
        ],
        out_shape=[
            jax.ShapeDtypeStruct((n, ho * wo, cout), jnp.bfloat16),
            jax.ShapeDtypeStruct((1, cout), jnp.float32),
            jax.ShapeDtypeStruct((1, cout), jnp.float32),
        ],
        scratch_shapes=[pltpu.VMEM((stride, hp, wp, c), jnp.bfloat16)],
        compiler_params=pltpu.CompilerParams(
            dimension_semantics=("arbitrary",),   # N axis carries BN-stats reduction
            vmem_limit_bytes=_VMEM_LIMIT),
    )(*parity, w2, scale1, bias1)


# -------- kernel 3: bn3 affine + shortcut-BN affine + add + ReLU (fused) -----

def _bn_add_relu_kernel(y_ref, sc_ref, s3_ref, b3_ref, ss_ref, bs_ref, o_ref):
    y = y_ref[...].astype(jnp.float32) * s3_ref[...] + b3_ref[...]
    s = sc_ref[...].astype(jnp.float32) * ss_ref[...] + bs_ref[...]
    o_ref[...] = jnp.maximum(y + s, 0.0).astype(o_ref.dtype)


def _bn_add_relu(y3, sc, s3, b3, ss, bs):
    m, c = y3.shape
    tm = _pick_tile_m(m, c, c)
    m_pad = _round_up(m, tm)
    if m_pad != m:
        y3 = jnp.pad(y3, ((0, m_pad - m), (0, 0)))
        sc = jnp.pad(sc, ((0, m_pad - m), (0, 0)))
    out = pl.pallas_call(
        _bn_add_relu_kernel,
        grid=(m_pad // tm,),
        in_specs=[
            pl.BlockSpec((tm, c), lambda i: (i, 0)),
            pl.BlockSpec((tm, c), lambda i: (i, 0)),
            pl.BlockSpec((1, c), lambda i: (0, 0)),
            pl.BlockSpec((1, c), lambda i: (0, 0)),
            pl.BlockSpec((1, c), lambda i: (0, 0)),
            pl.BlockSpec((1, c), lambda i: (0, 0)),
        ],
        out_specs=pl.BlockSpec((tm, c), lambda i: (i, 0)),
        out_shape=jax.ShapeDtypeStruct((m_pad, c), jnp.bfloat16),
        compiler_params=pltpu.CompilerParams(
            dimension_semantics=("parallel",),     # pure elementwise
            vmem_limit_bytes=_VMEM_LIMIT),
    )(y3, sc, s3, b3, ss, bs)
    return out[:m] if m_pad != m else out


# ------------------------------ JAX glue -----------------------------------

def _fold_bn(s, sq, count, gamma, beta):
    """Partial sums -> folded per-channel affine (training-mode BN, biased var)."""
    mean = s / count
    var = jnp.maximum(sq / count - mean * mean, 0.0)
    scale = gamma * lax.rsqrt(var + EPS)
    bias = beta - mean * scale
    return scale, bias


def _pad_vec(v, n, fill):
    out = jnp.full((1, n), fill, jnp.float32)
    return out.at[0, :v.shape[0]].set(v.astype(jnp.float32))


def _prep_w_1x1(w_oihw, k_pad, c_pad):
    o, i = w_oihw.shape[0], w_oihw.shape[1]
    w = jnp.transpose(w_oihw[:, :, 0, 0], (1, 0)).astype(jnp.float32)
    return jnp.zeros((k_pad, c_pad), jnp.float32).at[:i, :o].set(w).astype(jnp.bfloat16)


def _prep_w_3x3(w_oihw, k_pad, c_pad):
    o, i = w_oihw.shape[0], w_oihw.shape[1]
    w = jnp.transpose(w_oihw, (2, 3, 1, 0)).reshape(9, i, o).astype(jnp.float32)
    return jnp.zeros((9, k_pad, c_pad), jnp.float32).at[:, :i, :o].set(w).astype(jnp.bfloat16)


def init_params(key, in_channels, out_channels, downsample):
    if in_channels != out_channels:
        mid = out_channels // 4 if downsample else in_channels
    else:
        mid = out_channels // 4
    ks = jax.random.split(key, 12)

    def conv_w(k, o, i, kh, kw):
        return 0.1 * jax.random.normal(k, (o, i, kh, kw), jnp.float32)

    params = {
        "w1": conv_w(ks[0], mid, in_channels, 1, 1),
        "w2": conv_w(ks[1], mid, mid, 3, 3),
        "w3": conv_w(ks[2], out_channels, mid, 1, 1),
        "g1": 1.0 + 0.1 * jax.random.normal(ks[3], (mid,), jnp.float32),
        "b1": 0.1 * jax.random.normal(ks[4], (mid,), jnp.float32),
        "g2": 1.0 + 0.1 * jax.random.normal(ks[5], (mid,), jnp.float32),
        "b2": 0.1 * jax.random.normal(ks[6], (mid,), jnp.float32),
        "g3": 1.0 + 0.1 * jax.random.normal(ks[7], (out_channels,), jnp.float32),
        "b3": 0.1 * jax.random.normal(ks[8], (out_channels,), jnp.float32),
    }
    if downsample or in_channels != out_channels:
        params["ws"] = conv_w(ks[9], out_channels, in_channels, 1, 1)
        params["gs"] = 1.0 + 0.1 * jax.random.normal(ks[10], (out_channels,), jnp.float32)
        params["bs"] = 0.1 * jax.random.normal(ks[11], (out_channels,), jnp.float32)
    return params


def res_block50_forward(params, x_nchw, in_channels, out_channels, downsample):
    stride = 2 if downsample else 1
    has_proj = downsample or (in_channels != out_channels)
    mid = params["w1"].shape[0]

    x = jnp.transpose(x_nchw, (0, 2, 3, 1))                        # NCHW -> NHWC
    n, h, w_, _ = x.shape
    cin_p, mid_p, cout_p = _pad_to(in_channels), _pad_to(mid), _pad_to(out_channels)
    ho = (h - 1) // stride + 1
    wo = (w_ - 1) // stride + 1

    xpad = jnp.pad(x, ((0, 0), (0, 0), (0, 0),
                       (0, cin_p - in_channels))).astype(jnp.bfloat16)
    x2d = xpad.reshape(n * h * w_, cin_p)

    # ---- conv1 (1x1): no prologue affine; BN1 partial stats ----
    y1r, s1, q1 = _matmul_bnstats(x2d, _prep_w_1x1(params["w1"], cin_p, mid_p),
                                  apply_affine=False)
    sc1, b1 = _fold_bn(s1, q1, float(n * h * w_),
                       _pad_vec(params["g1"], mid_p, 1.0),
                       _pad_vec(params["b1"], mid_p, 0.0))

    # ---- conv2 (3x3, stride, pad 1), bn1+ReLU folded into its prologue ----
    y2r, s2, q2 = _conv3x3_bnstats(y1r.reshape(n, h, w_, mid_p),
                                   _prep_w_3x3(params["w2"], mid_p, mid_p),
                                   sc1, b1, stride, ho, wo)
    sc2, b2 = _fold_bn(s2, q2, float(n * ho * wo),
                       _pad_vec(params["g2"], mid_p, 1.0),
                       _pad_vec(params["b2"], mid_p, 0.0))

    # ---- conv3 (1x1), bn2+ReLU folded into its prologue ----
    y3r, s3, q3 = _matmul_bnstats(y2r.reshape(n * ho * wo, mid_p),
                                  _prep_w_1x1(params["w3"], mid_p, cout_p),
                                  sc2, b2, apply_affine=True, relu_in=True)
    sc3, b3 = _fold_bn(s3, q3, float(n * ho * wo),
                       _pad_vec(params["g3"], cout_p, 1.0),
                       _pad_vec(params["b3"], cout_p, 0.0))

    # ---- shortcut branch ----
    if has_proj:
        # TODO(synk): fold the stride-2 subsample into the shortcut kernel's
        # BlockSpec/grid instead of this (now bf16, half-traffic) XLA slice.
        xs2d = xpad[:, ::stride, ::stride, :].reshape(n * ho * wo, cin_p)
        scr, ss, qs = _matmul_bnstats(xs2d, _prep_w_1x1(params["ws"], cin_p, cout_p),
                                      apply_affine=False)
        sc_s, b_s = _fold_bn(ss, qs, float(n * ho * wo),
                             _pad_vec(params["gs"], cout_p, 1.0),
                             _pad_vec(params["bs"], cout_p, 0.0))
    else:
        scr = x2d                                   # identity (cin_p == cout_p)
        sc_s = jnp.ones((1, cout_p), jnp.float32)
        b_s = jnp.zeros((1, cout_p), jnp.float32)

    # ---- bn3 affine + shortcut-BN affine + add + ReLU (single fused pass) ----
    out2d = _bn_add_relu(y3r, scr, sc3, b3, sc_s, b_s)
    out = out2d[:, :out_channels].astype(jnp.float32).reshape(n, ho, wo, out_channels)
    return jnp.transpose(out, (0, 3, 1, 2))        # back to NCHW


# ------------------------- pure-JAX reference ------------------------------

def _ref_conv(x_nhwc, w_oihw, stride, padding):
    return lax.conv_general_dilated(
        x_nhwc, jnp.transpose(w_oihw, (2, 3, 1, 0)),
        window_strides=(stride, stride),
        padding=((padding, padding), (padding, padding)),
        dimension_numbers=("NHWC", "HWIO", "NHWC"))


def _ref_bn(x_nhwc, gamma, beta):
    mean = jnp.mean(x_nhwc, axis=(0, 1, 2), keepdims=True)
    var = jnp.mean((x_nhwc - mean) ** 2, axis=(0, 1, 2), keepdims=True)
    return (x_nhwc - mean) * lax.rsqrt(var + EPS) * gamma + beta


def reference_forward(params, x_nchw, in_channels, out_channels, downsample):
    stride = 2 if downsample else 1
    x = jnp.transpose(x_nchw, (0, 2, 3, 1)).astype(jnp.float32)
    if downsample or in_channels != out_channels:
        sc = _ref_bn(_ref_conv(x, params["ws"], stride, 0), params["gs"], params["bs"])
    else:
        sc = x
    y = jax.nn.relu(_ref_bn(_ref_conv(x, params["w1"], 1, 0), params["g1"], params["b1"]))
    y = jax.nn.relu(_ref_bn(_ref_conv(y, params["w2"], stride, 1), params["g2"], params["b2"]))
    y = _ref_bn(_ref_conv(y, params["w3"], 1, 0), params["g3"], params["b3"])
    return jnp.transpose(jax.nn.relu(y + sc), (0, 3, 1, 2))


# --------------------------------- main -------------------------------------

if __name__ == "__main__":
    forward = jax.jit(res_block50_forward, static_argnums=(2, 3, 4))
    reference = jax.jit(reference_forward, static_argnums=(2, 3, 4))

    configs = [
        # (in_channels, out_channels, downsample, NCHW input shape)
        (4, 16, True, (2, 4, 16, 16)),       # projection shortcut, stride 2
        (16, 16, False, (2, 16, 16, 16)),    # identity shortcut, stride 1
    ]
    key = jax.random.PRNGKey(0)
    for cin, cout, down, shape in configs:
        key, kx, kp = jax.random.split(key, 3)
        x = jax.random.normal(kx, shape, jnp.float32)
        params = init_params(kp, cin, cout, down)

        out = jax.block_until_ready(forward(params, x, cin, cout, down))
        ref = jax.block_until_ready(reference(params, x, cin, cout, down))

        assert out.shape == ref.shape, (out.shape, ref.shape)
        # bf16 intermediates / MXU operands vs. f32 reference -> loose tolerance
        # (BN-normalized outputs amplify bf16 rounding); a real bug gives O(1)
        # relative error.
        rel = float(jnp.linalg.norm(out - ref) / (jnp.linalg.norm(ref) + 1e-12))
        assert rel < 8e-2, f"relative error too large: {rel}"

    print("KERNEL_OK")
</pallas_src>

<mosaic_0001>
module attributes {stable_mosaic.version = 11 : i64} {
  func.func @_mm_bnstats_kernel(%arg0: i32, %arg1: memref<512x128xbf16, #tpu.memory_space<vmem>>, %arg2: memref<128x128xbf16, #tpu.memory_space<vmem>>, %arg3: memref<512x128xbf16, #tpu.memory_space<vmem>>, %arg4: memref<1x128xf32, #tpu.memory_space<vmem>>, %arg5: memref<1x128xf32, #tpu.memory_space<vmem>>) attributes {dimension_semantics = [#tpu.dimension_semantics<arbitrary>], iteration_bounds = array<i64: 1>, scalar_prefetch = 0 : i64, scratch_operands = 0 : i64, tpu.core_type = #tpu.core_type<tc>, window_params = [{transform_indices = @transform_0, window_bounds = array<i64: 512, 128>}, {pipeline_mode = #tpu.pipeline_mode<synchronous>, transform_indices = @transform_1, window_bounds = array<i64: 128, 128>}, {transform_indices = @transform_2, window_bounds = array<i64: 512, 128>}, {pipeline_mode = #tpu.pipeline_mode<synchronous>, transform_indices = @transform_3, window_bounds = array<i64: 1, 128>}, {pipeline_mode = #tpu.pipeline_mode<synchronous>, transform_indices = @transform_4, window_bounds = array<i64: 1, 128>}]} {
    %c0 = arith.constant 0 : index
    %c0_0 = arith.constant 0 : index
    %0 = vector.load %arg1[%c0, %c0_0] : memref<512x128xbf16, #tpu.memory_space<vmem>>, vector<512x128xbf16>
    %c0_1 = arith.constant 0 : index
    %c0_2 = arith.constant 0 : index
    %1 = vector.load %arg2[%c0_1, %c0_2] : memref<128x128xbf16, #tpu.memory_space<vmem>>, vector<128x128xbf16>
    %cst = arith.constant dense<0.000000e+00> : vector<512x128xf32>
    %2 = tpu.matmul %0, %1, %cst {dimension_numbers = #tpu.dot_dimension_numbers<[1], [0], [0], [1], [0, 0, 1, 1], [], []>} : vector<512x128xbf16>, vector<128x128xbf16>, vector<512x128xf32> -> vector<512x128xf32>
    %3 = arith.truncf %2 : vector<512x128xf32> to vector<512x128xbf16>
    %c0_3 = arith.constant 0 : index
    %c0_4 = arith.constant 0 : index
    %4 = vector.load %arg3[%c0_3, %c0_4] : memref<512x128xbf16, #tpu.memory_space<vmem>>, vector<512x128xbf16>
    tpu.vector_store %arg3[%c0_3, %c0_4], %3 {strides = array<i32>} : memref<512x128xbf16, #tpu.memory_space<vmem>>, vector<512x128xbf16>,
    %c0_i32 = arith.constant 0 : i32
    %5 = arith.cmpi eq, %arg0, %c0_i32 : i32
    %6 = arith.extui %5 : i1 to i32
    %c0_i32_5 = arith.constant 0 : i32
    %7 = arith.cmpi ne, %6, %c0_i32_5 : i32
    scf.if %7 {
      %cst_16 = arith.constant 0.000000e+00 : f32
      %19 = vector.broadcast %cst_16 : f32 to vector<1x128xf32>
      %c0_17 = arith.constant 0 : index
      %c0_18 = arith.constant 0 : index
      %20 = vector.load %arg4[%c0_17, %c0_18] : memref<1x128xf32, #tpu.memory_space<vmem>>, vector<1x128xf32>
      tpu.vector_store %arg4[%c0_17, %c0_18], %19 {strides = array<i32>} : memref<1x128xf32, #tpu.memory_space<vmem>>, vector<1x128xf32>,
      %cst_19 = arith.constant 0.000000e+00 : f32
      %21 = vector.broadcast %cst_19 : f32 to vector<1x128xf32>
      %c0_20 = arith.constant 0 : index
      %c0_21 = arith.constant 0 : index
      %22 = vector.load %arg5[%c0_20, %c0_21] : memref<1x128xf32, #tpu.memory_space<vmem>>, vector<1x128xf32>
      tpu.vector_store %arg5[%c0_20, %c0_21], %21 {strides = array<i32>} : memref<1x128xf32, #tpu.memory_space<vmem>>, vector<1x128xf32>,
    } else {
    }
    %c0_6 = arith.constant 0 : index
    %c0_7 = arith.constant 0 : index
    %8 = vector.load %arg4[%c0_6, %c0_7] : memref<1x128xf32, #tpu.memory_space<vmem>>, vector<1x128xf32>
    %cst_8 = arith.constant dense<0.000000e+00> : vector<128xf32>
    %9 = vector.multi_reduction <add>, %2, %cst_8 [0] : vector<512x128xf32> to vector<128xf32>
    %10 = vector.shape_cast %9 : vector<128xf32> to vector<1x128xf32>
    %11 = arith.addf %8, %10 : vector<1x128xf32>
    %c0_9 = arith.constant 0 : index
    %c0_10 = arith.constant 0 : index
    %12 = vector.load %arg4[%c0_9, %c0_10] : memref<1x128xf32, #tpu.memory_space<vmem>>, vector<1x128xf32>
    tpu.vector_store %arg4[%c0_9, %c0_10], %11 {strides = array<i32>} : memref<1x128xf32, #tpu.memory_space<vmem>>, vector<1x128xf32>,
    %c0_11 = arith.constant 0 : index
    %c0_12 = arith.constant 0 : index
    %13 = vector.load %arg5[%c0_11, %c0_12] : memref<1x128xf32, #tpu.memory_space<vmem>>, vector<1x128xf32>
    %14 = arith.mulf %2, %2 : vector<512x128xf32>
    %cst_13 = arith.constant dense<0.000000e+00> : vector<128xf32>
    %15 = vector.multi_reduction <add>, %14, %cst_13 [0] : vector<512x128xf32> to vector<128xf32>
    %16 = vector.shape_cast %15 : vector<128xf32> to vector<1x128xf32>
    %17 = arith.addf %13, %16 : vector<1x128xf32>
    %c0_14 = arith.constant 0 : index
    %c0_15 = arith.constant 0 : index
    %18 = vector.load %arg5[%c0_14, %c0_15] : memref<1x128xf32, #tpu.memory_space<vmem>>, vector<1x128xf32>
    tpu.vector_store %arg5[%c0_14, %c0_15], %17 {strides = array<i32>} : memref<1x128xf32, #tpu.memory_space<vmem>>, vector<1x128xf32>,
    return
  }
  func.func @transform_0(%arg0: i32) -> (i32, i32) {
    %c0_i32 = arith.constant 0 : i32
    %c0_i32_0 = arith.constant 0 : i32
    return %arg0, %c0_i32 : i32, i32
  }
  func.func @transform_1(%arg0: i32) -> (i32, i32) {
    %c0_i32 = arith.constant 0 : i32
    %c0_i32_0 = arith.constant 0 : i32
    %c0_i32_1 = arith.constant 0 : i32
    return %c0_i32, %c0_i32_0 : i32, i32
  }
  func.func @transform_2(%arg0: i32) -> (i32, i32) {
    %c0_i32 = arith.constant 0 : i32
    %c0_i32_0 = arith.constant 0 : i32
    return %arg0, %c0_i32 : i32, i32
  }
  func.func @transform_3(%arg0: i32) -> (i32, i32) {
    %c0_i32 = arith.constant 0 : i32
    %c0_i32_0 = arith.constant 0 : i32
    %c0_i32_1 = arith.constant 0 : i32
    return %c0_i32, %c0_i32_0 : i32, i32
  }
  func.func @transform_4(%arg0: i32) -> (i32, i32) {
    %c0_i32 = arith.constant 0 : i32
    %c0_i32_0 = arith.constant 0 : i32
    %c0_i32_1 = arith.constant 0 : i32
    return %c0_i32, %c0_i32_0 : i32, i32
  }
}

module attributes {stable_mosaic.version = 11 : i64} {
  func.func @_mm_bnstats_kernel(%arg0: i32, %arg1: memref<128x128xbf16, #tpu.memory_space<vmem>>, %arg2: memref<128x128xbf16, #tpu.memory_space<vmem>>, %arg3: memref<1x128xf32, #tpu.memory_space<vmem>>, %arg4: memref<1x128xf32, #tpu.memory_space<vmem>>, %arg5: memref<128x128xbf16, #tpu.memory_space<vmem>>, %arg6: memref<1x128xf32, #tpu.memory_space<vmem>>, %arg7: memref<1x128xf32, #tpu.memory_space<vmem>>) attributes {dimension_semantics = [#tpu.dimension_semantics<arbitrary>], iteration_bounds = array<i64: 1>, scalar_prefetch = 0 : i64, scratch_operands = 0 : i64, tpu.core_type = #tpu.core_type<tc>, window_params = [{transform_indices = @transform_0, window_bounds = array<i64: 128, 128>}, {pipeline_mode = #tpu.pipeline_mode<synchronous>, transform_indices = @transform_1, window_bounds = array<i64: 128, 128>}, {pipeline_mode = #tpu.pipeline_mode<synchronous>, transform_indices = @transform_2, window_bounds = array<i64: 1, 128>}, {pipeline_mode = #tpu.pipeline_mode<synchronous>, transform_indices = @transform_3, window_bounds = array<i64: 1, 128>}, {transform_indices = @transform_4, window_bounds = array<i64: 128, 128>}, {pipeline_mode = #tpu.pipeline_mode<synchronous>, transform_indices = @transform_5, window_bounds = array<i64: 1, 128>}, {pipeline_mode = #tpu.pipeline_mode<synchronous>, transform_indices = @transform_6, window_bounds = array<i64: 1, 128>}]} {
    %c0 = arith.constant 0 : index
    %c0_0 = arith.constant 0 : index
    %0 = vector.load %arg1[%c0, %c0_0] : memref<128x128xbf16, #tpu.memory_space<vmem>>, vector<128x128xbf16>
    %1 = arith.extf %0 : vector<128x128xbf16> to vector<128x128xf32>
    %c0_1 = arith.constant 0 : index
    %c0_2 = arith.constant 0 : index
    %2 = vector.load %arg3[%c0_1, %c0_2] : memref<1x128xf32, #tpu.memory_space<vmem>>, vector<1x128xf32>
    %3 = vector.broadcast %2 : vector<1x128xf32> to vector<128x128xf32>
    %4 = arith.mulf %1, %3 : vector<128x128xf32>
    %c0_3 = arith.constant 0 : index
    %c0_4 = arith.constant 0 : index
    %5 = vector.load %arg4[%c0_3, %c0_4] : memref<1x128xf32, #tpu.memory_space<vmem>>, vector<1x128xf32>
    %6 = vector.broadcast %5 : vector<1x128xf32> to vector<128x128xf32>
    %7 = arith.addf %4, %6 : vector<128x128xf32>
    %cst = arith.constant 0.000000e+00 : f32
    %8 = vector.broadcast %cst : f32 to vector<128x128xf32>
    %9 = arith.maximumf %7, %8 : vector<128x128xf32>
    %10 = arith.truncf %9 : vector<128x128xf32> to vector<128x128xbf16>
    %c0_5 = arith.constant 0 : index
    %c0_6 = arith.constant 0 : index
    %11 = vector.load %arg2[%c0_5, %c0_6] : memref<128x128xbf16, #tpu.memory_space<vmem>>, vector<128x128xbf16>
    %cst_7 = arith.constant dense<0.000000e+00> : vector<128x128xf32>
    %12 = tpu.matmul %10, %11, %cst_7 {dimension_numbers = #tpu.dot_dimension_numbers<[1], [0], [0], [1], [0, 0, 1, 1], [], []>} : vector<128x128xbf16>, vector<128x128xbf16>, vector<128x128xf32> -> vector<128x128xf32>
    %13 = arith.truncf %12 : vector<128x128xf32> to vector<128x128xbf16>
    %c0_8 = arith.constant 0 : index
    %c0_9 = arith.constant 0 : index
    %14 = vector.load %arg5[%c0_8, %c0_9] : memref<128x128xbf16, #tpu.memory_space<vmem>>, vector<128x128xbf16>
    tpu.vector_store %arg5[%c0_8, %c0_9], %13 {strides = array<i32>} : memref<128x128xbf16, #tpu.memory_space<vmem>>, vector<128x128xbf16>,
    %c0_i32 = arith.constant 0 : i32
    %15 = arith.cmpi eq, %arg0, %c0_i32 : i32
    %16 = arith.extui %15 : i1 to i32
    %c0_i32_10 = arith.constant 0 : i32
    %17 = arith.cmpi ne, %16, %c0_i32_10 : i32
    scf.if %17 {
      %cst_21 = arith.constant 0.000000e+00 : f32
      %29 = vector.broadcast %cst_21 : f32 to vector<1x128xf32>
      %c0_22 = arith.constant 0 : index
      %c0_23 = arith.constant 0 : index
      %30 = vector.load %arg6[%c0_22, %c0_23] : memref<1x128xf32, #tpu.memory_space<vmem>>, vector<1x128xf32>
      tpu.vector_store %arg6[%c0_22, %c0_23], %29 {strides = array<i32>} : memref<1x128xf32, #tpu.memory_space<vmem>>, vector<1x128xf32>,
      %cst_24 = arith.constant 0.000000e+00 : f32
      %31 = vector.broadcast %cst_24 : f32 to vector<1x128xf32>
      %c0_25 = arith.constant 0 : index
      %c0_26 = arith.constant 0 : index
      %32 = vector.load %arg7[%c0_25, %c0_26] : memref<1x128xf32, #tpu.memory_space<vmem>>, vector<1x128xf32>
      tpu.vector_store %arg7[%c0_25, %c0_26], %31 {strides = array<i32>} : memref<1x128xf32, #tpu.memory_space<vmem>>, vector<1x128xf32>,
    } else {
    }
    %c0_11 = arith.constant 0 : index
    %c0_12 = arith.constant 0 : index
    %18 = vector.load %arg6[%c0_11, %c0_12] : memref<1x128xf32, #tpu.memory_space<vmem>>, vector<1x128xf32>
    %cst_13 = arith.constant dense<0.000000e+00> : vector<128xf32>
    %19 = vector.multi_reduction <add>, %12, %cst_13 [0] : vector<128x128xf32> to vector<128xf32>
    %20 = vector.shape_cast %19 : vector<128xf32> to vector<1x128xf32>
    %21 = arith.addf %18, %20 : vector<1x128xf32>
    %c0_14 = arith.constant 0 : index
    %c0_15 = arith.constant 0 : index
    %22 = vector.load %arg6[%c0_14, %c0_15] : memref<1x128xf32, #tpu.memory_space<vmem>>, vector<1x128xf32>
    tpu.vector_store %arg6[%c0_14, %c0_15], %21 {strides = array<i32>} : memref<1x128xf32, #tpu.memory_space<vmem>>, vector<1x128xf32>,
    %c0_16 = arith.constant 0 : index
    %c0_17 = arith.constant 0 : index
    %23 = vector.load %arg7[%c0_16, %c0_17] : memref<1x128xf32, #tpu.memory_space<vmem>>, vector<1x128xf32>
    %24 = arith.mulf %12, %12 : vector<128x128xf32>
    %cst_18 = arith.constant dense<0.000000e+00> : vector<128xf32>
    %25 = vector.multi_reduction <add>, %24, %cst_18 [0] : vector<128x128xf32> to vector<128xf32>
    %26 = vector.shape_cast %25 : vector<128xf32> to vector<1x128xf32>
    %27 = arith.addf %23, %26 : vector<1x128xf32>
    %c0_19 = arith.constant 0 : index
    %c0_20 = arith.constant 0 : index
    %28 = vector.load %arg7[%c0_19, %c0_20] : memref<1x128xf32, #tpu.memory_space<vmem>>, vector<1x128xf32>
    tpu.vector_store %arg7[%c0_19, %c0_20], %27 {strides = array<i32>} : memref<1x128xf32, #tpu.memory_space<vmem>>, vector<1x128xf32>,
    return
  }
  func.func @transform_0(%arg0: i32) -> (i32, i32) {
    %c0_i32 = arith.constant 0 : i32
    %c0_i32_0 = arith.constant 0 : i32
    return %arg0, %c0_i32 : i32, i32
  }
  func.func @transform_1(%arg0: i32) -> (i32, i32) {
    %c0_i32 = arith.constant 0 : i32
    %c0_i32_0 = arith.constant 0 : i32
    %c0_i32_1 = arith.constant 0 : i32
    return %c0_i32, %c0_i32_0 : i32, i32
  }
  func.func @transform_2(%arg0: i32) -> (i32, i32) {
    %c0_i32 = arith.constant 0 : i32
    %c0_i32_0 = arith.constant 0 : i32
    %c0_i32_1 = arith.constant 0 : i32
    return %c0_i32, %c0_i32_0 : i32, i32
  }
  func.func @transform_3(%arg0: i32) -> (i32, i32) {
    %c0_i32 = arith.constant 0 : i32
    %c0_i32_0 = arith.constant 0 : i32
    %c0_i32_1 = arith.constant 0 : i32
    return %c0_i32, %c0_i32_0 : i32, i32
  }
  func.func @transform_4(%arg0: i32) -> (i32, i32) {
    %c0_i32 = arith.constant 0 : i32
    %c0_i32_0 = arith.constant 0 : i32
    return %arg0, %c0_i32 : i32, i32
  }
  func.func @transform_5(%arg0: i32) -> (i32, i32) {
    %c0_i32 = arith.constant 0 : i32
    %c0_i32_0 = arith.constant 0 : i32
    %c0_i32_1 = arith.constant 0 : i32
    return %c0_i32, %c0_i32_0 : i32, i32
  }
  func.func @transform_6(%arg0: i32) -> (i32, i32) {
    %c0_i32 = arith.constant 0 : i32
    %c0_i32_0 = arith.constant 0 : i32
    %c0_i32_1 = arith.constant 0 : i32
    return %c0_i32, %c0_i32_0 : i32, i32
  }
}

module attributes {stable_mosaic.version = 11 : i64} {
  func.func @_conv3x3_bnstats_kernel(%arg0: i32, %arg1: memref<1x16x8x128xbf16, #tpu.memory_space<vmem>>, %arg2: memref<1x16x8x128xbf16, #tpu.memory_space<vmem>>, %arg3: memref<9x128x128xbf16, #tpu.memory_space<vmem>>, %arg4: memref<1x128xf32, #tpu.memory_space<vmem>>, %arg5: memref<1x128xf32, #tpu.memory_space<vmem>>, %arg6: memref<1x64x128xbf16, #tpu.memory_space<vmem>>, %arg7: memref<1x128xf32, #tpu.memory_space<vmem>>, %arg8: memref<1x128xf32, #tpu.memory_space<vmem>>, %arg9: memref<2x18x10x128xbf16, #tpu.memory_space<vmem>>) attributes {dimension_semantics = [#tpu.dimension_semantics<arbitrary>], iteration_bounds = array<i64: 2>, scalar_prefetch = 0 : i64, scratch_operands = 1 : i64, tpu.core_type = #tpu.core_type<tc>, window_params = [{transform_indices = @transform_0, window_bounds = array<i64: 1, 16, 8, 128>}, {transform_indices = @transform_1, window_bounds = array<i64: 1, 16, 8, 128>}, {pipeline_mode = #tpu.pipeline_mode<synchronous>, transform_indices = @transform_2, window_bounds = array<i64: 9, 128, 128>}, {pipeline_mode = #tpu.pipeline_mode<synchronous>, transform_indices = @transform_3, window_bounds = array<i64: 1, 128>}, {pipeline_mode = #tpu.pipeline_mode<synchronous>, transform_indices = @transform_4, window_bounds = array<i64: 1, 128>}, {transform_indices = @transform_5, window_bounds = array<i64: 1, 64, 128>}, {pipeline_mode = #tpu.pipeline_mode<synchronous>, transform_indices = @transform_6, window_bounds = array<i64: 1, 128>}, {pipeline_mode = #tpu.pipeline_mode<synchronous>, transform_indices = @transform_7, window_bounds = array<i64: 1, 128>}]} {
    %c0 = arith.constant 0 : index
    %c0_0 = arith.constant 0 : index
    %0 = vector.load %arg4[%c0, %c0_0] : memref<1x128xf32, #tpu.memory_space<vmem>>, vector<1x128xf32>
    %c0_1 = arith.constant 0 : index
    %c0_2 = arith.constant 0 : index
    %1 = vector.load %arg5[%c0_1, %c0_2] : memref<1x128xf32, #tpu.memory_space<vmem>>, vector<1x128xf32>
    %cst = arith.constant 0.000000e+00 : bf16
    %2 = vector.broadcast %cst : bf16 to vector<2x18x10x128xbf16>
    %c0_3 = arith.constant 0 : index
    %c0_4 = arith.constant 0 : index
    %c0_5 = arith.constant 0 : index
    %c0_6 = arith.constant 0 : index
    %3 = vector.load %arg9[%c0_3, %c0_4, %c0_5, %c0_6] : memref<2x18x10x128xbf16, #tpu.memory_space<vmem>>, vector<2x18x10x128xbf16>
    tpu.vector_store %arg9[%c0_3, %c0_4, %c0_5, %c0_6], %2 {strides = array<i32>} : memref<2x18x10x128xbf16, #tpu.memory_space<vmem>>, vector<2x18x10x128xbf16>,
    %c0_7 = arith.constant 0 : index
    %c0_8 = arith.constant 0 : index
    %c0_9 = arith.constant 0 : index
    %c0_10 = arith.constant 0 : index
    %4 = vector.load %arg1[%c0_7, %c0_8, %c0_9, %c0_10] : memref<1x16x8x128xbf16, #tpu.memory_space<vmem>>, vector<1x16x8x128xbf16>
    %5 = vector.shape_cast %4 : vector<1x16x8x128xbf16> to vector<16x8x128xbf16>
    %6 = arith.extf %5 : vector<16x8x128xbf16> to vector<16x8x128xf32>
    %7 = vector.shape_cast %0 : vector<1x128xf32> to vector<1x1x128xf32>
    %8 = vector.broadcast %7 : vector<1x1x128xf32> to vector<16x8x128xf32>
    %9 = arith.mulf %6, %8 : vector<16x8x128xf32>
    %10 = vector.shape_cast %1 : vector<1x128xf32> to vector<1x1x128xf32>
    %11 = vector.broadcast %10 : vector<1x1x128xf32> to vector<16x8x128xf32>
    %12 = arith.addf %9, %11 : vector<16x8x128xf32>
    %cst_11 = arith.constant 0.000000e+00 : f32
    %13 = vector.broadcast %cst_11 : f32 to vector<16x8x128xf32>
    %14 = arith.maximumf %12, %13 : vector<16x8x128xf32>
    %15 = arith.truncf %14 : vector<16x8x128xf32> to vector<16x8x128xbf16>
    %c0_12 = arith.constant 0 : index
    %c1 = arith.constant 1 : index
    %c1_13 = arith.constant 1 : index
    %c0_14 = arith.constant 0 : index
    %16 = vector.load %arg9[%c0_12, %c1, %c1_13, %c0_14] : memref<2x18x10x128xbf16, #tpu.memory_space<vmem>>, vector<1x16x8x128xbf16>
    %17 = vector.shape_cast %16 : vector<1x16x8x128xbf16> to vector<16x8x128xbf16>
    %18 = vector.shape_cast %15 : vector<16x8x128xbf16> to vector<1x16x8x128xbf16>
    tpu.vector_store %arg9[%c0_12, %c1, %c1_13, %c0_14], %18 {strides = array<i32>} : memref<2x18x10x128xbf16, #tpu.memory_space<vmem>>, vector<1x16x8x128xbf16>,
    %c0_15 = arith.constant 0 : index
    %c0_16 = arith.constant 0 : index
    %c0_17 = arith.constant 0 : index
    %c0_18 = arith.constant 0 : index
    %19 = vector.load %arg2[%c0_15, %c0_16, %c0_17, %c0_18] : memref<1x16x8x128xbf16, #tpu.memory_space<vmem>>, vector<1x16x8x128xbf16>
    %20 = vector.shape_cast %19 : vector<1x16x8x128xbf16> to vector<16x8x128xbf16>
    %21 = arith.extf %20 : vector<16x8x128xbf16> to vector<16x8x128xf32>
    %22 = vector.shape_cast %0 : vector<1x128xf32> to vector<1x1x128xf32>
    %23 = vector.broadcast %22 : vector<1x1x128xf32> to vector<16x8x128xf32>
    %24 = arith.mulf %21, %23 : vector<16x8x128xf32>
    %25 = vector.shape_cast %1 : vector<1x128xf32> to vector<1x1x128xf32>
    %26 = vector.broadcast %25 : vector<1x1x128xf32> to vector<16x8x128xf32>
    %27 = arith.addf %24, %26 : vector<16x8x128xf32>
    %cst_19 = arith.constant 0.000000e+00 : f32
    %28 = vector.broadcast %cst_19 : f32 to vector<16x8x128xf32>
    %29 = arith.maximumf %27, %28 : vector<16x8x128xf32>
    %30 = arith.truncf %29 : vector<16x8x128xf32> to vector<16x8x128xbf16>
    %c1_20 = arith.constant 1 : index
    %c1_21 = arith.constant 1 : index
    %c1_22 = arith.constant 1 : index
    %c0_23 = arith.constant 0 : index
    %31 = vector.load %arg9[%c1_20, %c1_21, %c1_22, %c0_23] : memref<2x18x10x128xbf16, #tpu.memory_space<vmem>>, vector<1x16x8x128xbf16>
    %32 = vector.shape_cast %31 : vector<1x16x8x128xbf16> to vector<16x8x128xbf16>
    %33 = vector.shape_cast %30 : vector<16x8x128xbf16> to vector<1x16x8x128xbf16>
    tpu.vector_store %arg9[%c1_20, %c1_21, %c1_22, %c0_23], %33 {strides = array<i32>} : memref<2x18x10x128xbf16, #tpu.memory_space<vmem>>, vector<1x16x8x128xbf16>,
    %cst_24 = arith.constant 0.000000e+00 : f32
    %34 = vector.broadcast %cst_24 : f32 to vector<1x128xf32>
    %cst_25 = arith.constant 0.000000e+00 : f32
    %35 = vector.broadcast %cst_25 : f32 to vector<1x128xf32>
    %cst_26 = arith.constant 0.000000e+00 : f32
    %36 = vector.broadcast %cst_26 : f32 to vector<64x128xf32>
    %c0_27 = arith.constant 0 : index
    %c0_28 = arith.constant 0 : index
    %c0_29 = arith.constant 0 : index
    %c0_30 = arith.constant 0 : index
    %37 = vector.load %arg9[%c0_27, %c0_28, %c0_29, %c0_30] : memref<2x18x10x128xbf16, #tpu.memory_space<vmem>>, vector<1x16x10x128xbf16>
    %38 = vector.shape_cast %37 : vector<1x16x10x128xbf16> to vector<16x10x128xbf16>
    %39 = vector.shape_cast %38 : vector<16x10x128xbf16> to vector<8x2x10x128xbf16>
    %40 = vector.extract_strided_slice %39 {offsets = [0, 0, 0, 0], sizes = [8, 1, 10, 128], strides = [1, 1, 1, 1]} : vector<8x2x10x128xbf16> to vector<8x1x10x128xbf16>
    %41 = vector.shape_cast %40 : vector<8x1x10x128xbf16> to vector<8x10x128xbf16>
    %c1_31 = arith.constant 1 : index
    %c0_32 = arith.constant 0 : index
    %c0_33 = arith.constant 0 : index
    %c0_34 = arith.constant 0 : index
    %42 = vector.load %arg9[%c1_31, %c0_32, %c0_33, %c0_34] : memref<2x18x10x128xbf16, #tpu.memory_space<vmem>>, vector<1x16x10x128xbf16>
    %43 = vector.shape_cast %42 : vector<1x16x10x128xbf16> to vector<16x10x128xbf16>
    %44 = vector.shape_cast %43 : vector<16x10x128xbf16> to vector<8x2x10x128xbf16>
    %45 = vector.extract_strided_slice %44 {offsets = [0, 0, 0, 0], sizes = [8, 1, 10, 128], strides = [1, 1, 1, 1]} : vector<8x2x10x128xbf16> to vector<8x1x10x128xbf16>
    %46 = vector.shape_cast %45 : vector<8x1x10x128xbf16> to vector<8x10x128xbf16>
    %47 = vector.extract_strided_slice %46 {offsets = [0, 0, 0], sizes = [8, 8, 128], strides = [1, 1, 1]} : vector<8x10x128xbf16> to vector<8x8x128xbf16>
    %48 = vector.shape_cast %47 : vector<8x8x128xbf16> to vector<64x128xbf16>
    %c0_35 = arith.constant 0 : index
    %c0_36 = arith.constant 0 : index
    %c0_37 = arith.constant 0 : index
    %49 = vector.load %arg3[%c0_35, %c0_36, %c0_37] : memref<9x128x128xbf16, #tpu.memory_space<vmem>>, vector<1x128x128xbf16>
    %50 = vector.shape_cast %49 : vector<1x128x128xbf16> to vector<128x128xbf16>
    %cst_38 = arith.constant dense<0.000000e+00> : vector<64x128xf32>
    %51 = tpu.matmul %48, %50, %cst_38 {dimension_numbers = #tpu.dot_dimension_numbers<[1], [0], [0], [1], [0, 0, 1, 1], [], []>} : vector<64x128xbf16>, vector<128x128xbf16>, vector<64x128xf32> -> vector<64x128xf32>
    %52 = arith.addf %36, %51 : vector<64x128xf32>
    %53 = vector.extract_strided_slice %41 {offsets = [0, 1, 0], sizes = [8, 8, 128], strides = [1, 1, 1]} : vector<8x10x128xbf16> to vector<8x8x128xbf16>
    %54 = vector.shape_cast %53 : vector<8x8x128xbf16> to vector<64x128xbf16>
    %c1_39 = arith.constant 1 : index
    %c0_40 = arith.constant 0 : index
    %c0_41 = arith.constant 0 : index
    %55 = vector.load %arg3[%c1_39, %c0_40, %c0_41] : memref<9x128x128xbf16, #tpu.memory_space<vmem>>, vector<1x128x128xbf16>
    %56 = vector.shape_cast %55 : vector<1x128x128xbf16> to vector<128x128xbf16>
    %cst_42 = arith.constant dense<0.000000e+00> : vector<64x128xf32>
    %57 = tpu.matmul %54, %56, %cst_42 {dimension_numbers = #tpu.dot_dimension_numbers<[1], [0], [0], [1], [0, 0, 1, 1], [], []>} : vector<64x128xbf16>, vector<128x128xbf16>, vector<64x128xf32> -> vector<64x128xf32>
    %58 = arith.addf %52, %57 : vector<64x128xf32>
    %59 = vector.extract_strided_slice %46 {offsets = [0, 1, 0], sizes = [8, 8, 128], strides = [1, 1, 1]} : vector<8x10x128xbf16> to vector<8x8x128xbf16>
    %60 = vector.shape_cast %59 : vector<8x8x128xbf16> to vector<64x128xbf16>
    %c2 = arith.constant 2 : index
    %c0_43 = arith.constant 0 : index
    %c0_44 = arith.constant 0 : index
    %61 = vector.load %arg3[%c2, %c0_43, %c0_44] : memref<9x128x128xbf16, #tpu.memory_space<vmem>>, vector<1x128x128xbf16>
    %62 = vector.shape_cast %61 : vector<1x128x128xbf16> to vector<128x128xbf16>
    %cst_45 = arith.constant dense<0.000000e+00> : vector<64x128xf32>
    %63 = tpu.matmul %60, %62, %cst_45 {dimension_numbers = #tpu.dot_dimension_numbers<[1], [0], [0], [1], [0, 0, 1, 1], [], []>} : vector<64x128xbf16>, vector<128x128xbf16>, vector<64x128xf32> -> vector<64x128xf32>
    %64 = arith.addf %58, %63 : vector<64x128xf32>
    %c0_46 = arith.constant 0 : index
    %c1_47 = arith.constant 1 : index
    %c0_48 = arith.constant 0 : index
    %c0_49 = arith.constant 0 : index
    %65 = vector.load %arg9[%c0_46, %c1_47, %c0_48, %c0_49] : memref<2x18x10x128xbf16, #tpu.memory_space<vmem>>, vector<1x16x10x128xbf16>
    %66 = vector.shape_cast %65 : vector<1x16x10x128xbf16> to vector<16x10x128xbf16>
    %67 = vector.shape_cast %66 : vector<16x10x128xbf16> to vector<8x2x10x128xbf16>
    %68 = vector.extract_strided_slice %67 {offsets = [0, 0, 0, 0], sizes = [8, 1, 10, 128], strides = [1, 1, 1, 1]} : vector<8x2x10x128xbf16> to vector<8x1x10x128xbf16>
    %69 = vector.shape_cast %68 : vector<8x1x10x128xbf16> to vector<8x10x128xbf16>
    %c1_50 = arith.constant 1 : index
    %c1_51 = arith.constant 1 : index
    %c0_52 = arith.constant 0 : index
    %c0_53 = arith.constant 0 : index
    %70 = vector.load %arg9[%c1_50, %c1_51, %c0_52, %c0_53] : memref<2x18x10x128xbf16, #tpu.memory_space<vmem>>, vector<1x16x10x128xbf16>
    %71 = vector.shape_cast %70 : vector<1x16x10x128xbf16> to vector<16x10x128xbf16>
    %72 = vector.shape_cast %71 : vector<16x10x128xbf16> to vector<8x2x10x128xbf16>
    %73 = vector.extract_strided_slice %72 {offsets = [0, 0, 0, 0], sizes = [8, 1, 10, 128], strides = [1, 1, 1, 1]} : vector<8x2x10x128xbf16> to vector<8x1x10x128xbf16>
    %74 = vector.shape_cast %73 : vector<8x1x10x128xbf16> to vector<8x10x128xbf16>
    %75 = vector.extract_strided_slice %74 {offsets = [0, 0, 0], sizes = [8, 8, 128], strides = [1, 1, 1]} : vector<8x10x128xbf16> to vector<8x8x128xbf16>
    %76 = vector.shape_cast %75 : vector<8x8x128xbf16> to vector<64x128xbf16>
    %c3 = arith.constant 3 : index
    %c0_54 = arith.constant 0 : index
    %c0_55 = arith.constant 0 : index
    %77 = vector.load %arg3[%c3, %c0_54, %c0_55] : memref<9x128x128xbf16, #tpu.memory_space<vmem>>, vector<1x128x128xbf16>
    %78 = vector.shape_cast %77 : vector<1x128x128xbf16> to vector<128x128xbf16>
    %cst_56 = arith.constant dense<0.000000e+00> : vector<64x128xf32>
    %79 = tpu.matmul %76, %78, %cst_56 {dimension_numbers = #tpu.dot_dimension_numbers<[1], [0], [0], [1], [0, 0, 1, 1], [], []>} : vector<64x128xbf16>, vector<128x128xbf16>, vector<64x128xf32> -> vector<64x128xf32>
    %80 = arith.addf %64, %79 : vector<64x128xf32>
    %81 = vector.extract_strided_slice %69 {offsets = [0, 1, 0], sizes = [8, 8, 128], strides = [1, 1, 1]} : vector<8x10x128xbf16> to vector<8x8x128xbf16>
    %82 = vector.shape_cast %81 : vector<8x8x128xbf16> to vector<64x128xbf16>
    %c4 = arith.constant 4 : index
    %c0_57 = arith.constant 0 : index
    %c0_58 = arith.constant 0 : index
    %83 = vector.load %arg3[%c4, %c0_57, %c0_58] : memref<9x128x128xbf16, #tpu.memory_space<vmem>>, vector<1x128x128xbf16>
    %84 = vector.shape_cast %83 : vector<1x128x128xbf16> to vector<128x128xbf16>
    %cst_59 = arith.constant dense<0.000000e+00> : vector<64x128xf32>
    %85 = tpu.matmul %82, %84, %cst_59 {dimension_numbers = #tpu.dot_dimension_numbers<[1], [0], [0], [1], [0, 0, 1, 1], [], []>} : vector<64x128xbf16>, vector<128x128xbf16>, vector<64x128xf32> -> vector<64x128xf32>
    %86 = arith.addf %80, %85 : vector<64x128xf32>
    %87 = vector.extract_strided_slice %74 {offsets = [0, 1, 0], sizes = [8, 8, 128], strides = [1, 1, 1]} : vector<8x10x128xbf16> to vector<8x8x128xbf16>
    %88 = vector.shape_cast %87 : vector<8x8x128xbf16> to vector<64x128xbf16>
    %c5 = arith.constant 5 : index
    %c0_60 = arith.constant 0 : index
    %c0_61 = arith.constant 0 : index
    %89 = vector.load %arg3[%c5, %c0_60, %c0_61] : memref<9x128x128xbf16, #tpu.memory_space<vmem>>, vector<1x128x128xbf16>
    %90 = vector.shape_cast %89 : vector<1x128x128xbf16> to vector<128x128xbf16>
    %cst_62 = arith.constant dense<0.000000e+00> : vector<64x128xf32>
    %91 = tpu.matmul %88, %90, %cst_62 {dimension_numbers = #tpu.dot_dimension_numbers<[1], [0], [0], [1], [0, 0, 1, 1], [], []>} : vector<64x128xbf16>, vector<128x128xbf16>, vector<64x128xf32> -> vector<64x128xf32>
    %92 = arith.addf %86, %91 : vector<64x128xf32>
    %c0_63 = arith.constant 0 : index
    %c2_64 = arith.constant 2 : index
    %c0_65 = arith.constant 0 : index
    %c0_66 = arith.constant 0 : index
    %93 = vector.load %arg9[%c0_63, %c2_64, %c0_65, %c0_66] : memref<2x18x10x128xbf16, #tpu.memory_space<vmem>>, vector<1x16x10x128xbf16>
    %94 = vector.shape_cast %93 : vector<1x16x10x128xbf16> to vector<16x10x128xbf16>
    %95 = vector.shape_cast %94 : vector<16x10x128xbf16> to vector<8x2x10x128xbf16>
    %96 = vector.extract_strided_slice %95 {offsets = [0, 0, 0, 0], sizes = [8, 1, 10, 128], strides = [1, 1, 1, 1]} : vector<8x2x10x128xbf16> to vector<8x1x10x128xbf16>
    %97 = vector.shape_cast %96 : vector<8x1x10x128xbf16> to vector<8x10x128xbf16>
    %c1_67 = arith.constant 1 : index
    %c2_68 = arith.constant 2 : index
    %c0_69 = arith.constant 0 : index
    %c0_70 = arith.constant 0 : index
    %98 = vector.load %arg9[%c1_67, %c2_68, %c0_69, %c0_70] : memref<2x18x10x128xbf16, #tpu.memory_space<vmem>>, vector<1x16x10x128xbf16>
    %99 = vector.shape_cast %98 : vector<1x16x10x128xbf16> to vector<16x10x128xbf16>
    %100 = vector.shape_cast %99 : vector<16x10x128xbf16> to vector<8x2x10x128xbf16>
    %101 = vector.extract_strided_slice %100 {offsets = [0, 0, 0, 0], sizes = [8, 1, 10, 128], strides = [1, 1, 1, 1]} : vector<8x2x10x128xbf16> to vector<8x1x10x128xbf16>
    %102 = vector.shape_cast %101 : vector<8x1x10x128xbf16> to vector<8x10x128xbf16>
    %103 = vector.extract_strided_slice %102 {offsets = [0, 0, 0], sizes = [8, 8, 128], strides = [1, 1, 1]} : vector<8x10x128xbf16> to vector<8x8x128xbf16>
    %104 = vector.shape_cast %103 : vector<8x8x128xbf16> to vector<64x128xbf16>
    %c6 = arith.constant 6 : index
    %c0_71 = arith.constant 0 : index
    %c0_72 = arith.constant 0 : index
    %105 = vector.load %arg3[%c6, %c0_71, %c0_72] : memref<9x128x128xbf16, #tpu.memory_space<vmem>>, vector<1x128x128xbf16>
    %106 = vector.shape_cast %105 : vector<1x128x128xbf16> to vector<128x128xbf16>
    %cst_73 = arith.constant dense<0.000000e+00> : vector<64x128xf32>
    %107 = tpu.matmul %104, %106, %cst_73 {dimension_numbers = #tpu.dot_dimension_numbers<[1], [0], [0], [1], [0, 0, 1, 1], [], []>} : vector<64x128xbf16>, vector<128x128xbf16>, vector<64x128xf32> -> vector<64x128xf32>
    %108 = arith.addf %92, %107 : vector<64x128xf32>
    %109 = vector.extract_strided_slice %97 {offsets = [0, 1, 0], sizes = [8, 8, 128], strides = [1, 1, 1]} : vector<8x10x128xbf16> to vector<8x8x128xbf16>
    %110 = vector.shape_cast %109 : vector<8x8x128xbf16> to vector<64x128xbf16>
    %c7 = arith.constant 7 : index
    %c0_74 = arith.constant 0 : index
    %c0_75 = arith.constant 0 : index
    %111 = vector.load %arg3[%c7, %c0_74, %c0_75] : memref<9x128x128xbf16, #tpu.memory_space<vmem>>, vector<1x128x128xbf16>
    %112 = vector.shape_cast %111 : vector<1x128x128xbf16> to vector<128x128xbf16>
    %cst_76 = arith.constant dense<0.000000e+00> : vector<64x128xf32>
    %113 = tpu.matmul %110, %112, %cst_76 {dimension_numbers = #tpu.dot_dimension_numbers<[1], [0], [0], [1], [0, 0, 1, 1], [], []>} : vector<64x128xbf16>, vector<128x128xbf16>, vector<64x128xf32> -> vector<64x128xf32>
    %114 = arith.addf %108, %113 : vector<64x128xf32>
    %115 = vector.extract_strided_slice %102 {offsets = [0, 1, 0], sizes = [8, 8, 128], strides = [1, 1, 1]} : vector<8x10x128xbf16> to vector<8x8x128xbf16>
    %116 = vector.shape_cast %115 : vector<8x8x128xbf16> to vector<64x128xbf16>
    %c8 = arith.constant 8 : index
    %c0_77 = arith.constant 0 : index
    %c0_78 = arith.constant 0 : index
    %117 = vector.load %arg3[%c8, %c0_77, %c0_78] : memref<9x128x128xbf16, #tpu.memory_space<vmem>>, vector<1x128x128xbf16>
    %118 = vector.shape_cast %117 : vector<1x128x128xbf16> to vector<128x128xbf16>
    %cst_79 = arith.constant dense<0.000000e+00> : vector<64x128xf32>
    %119 = tpu.matmul %116, %118, %cst_79 {dimension_numbers = #tpu.dot_dimension_numbers<[1], [0], [0], [1], [0, 0, 1, 1], [], []>} : vector<64x128xbf16>, vector<128x128xbf16>, vector<64x128xf32> -> vector<64x128xf32>
    %120 = arith.addf %114, %119 : vector<64x128xf32>
    %121 = arith.truncf %120 : vector<64x128xf32> to vector<64x128xbf16>
    %c0_80 = arith.constant 0 : index
    %c0_81 = arith.constant 0 : index
    %c0_82 = arith.constant 0 : index
    %122 = vector.load %arg6[%c0_80, %c0_81, %c0_82] : memref<1x64x128xbf16, #tpu.memory_space<vmem>>, vector<1x64x128xbf16>
    %123 = vector.shape_cast %122 : vector<1x64x128xbf16> to vector<64x128xbf16>
    %124 = vector.shape_cast %121 : vector<64x128xbf16> to vector<1x64x128xbf16>
    tpu.vector_store %arg6[%c0_80, %c0_81, %c0_82], %124 {strides = array<i32>} : memref<1x64x128xbf16, #tpu.memory_space<vmem>>, vector<1x64x128xbf16>,
    %cst_83 = arith.constant dense<0.000000e+00> : vector<128xf32>
    %125 = vector.multi_reduction <add>, %120, %cst_83 [0] : vector<64x128xf32> to vector<128xf32>
    %126 = vector.shape_cast %125 : vector<128xf32> to vector<1x128xf32>
    %127 = arith.addf %34, %126 : vector<1x128xf32>
    %128 = arith.mulf %120, %120 : vector<64x128xf32>
    %cst_84 = arith.constant dense<0.000000e+00> : vector<128xf32>
    %129 = vector.multi_reduction <add>, %128, %cst_84 [0] : vector<64x128xf32> to vector<128xf32>
    %130 = vector.shape_cast %129 : vector<128xf32> to vector<1x128xf32>
    %131 = arith.addf %35, %130 : vector<1x128xf32>
    %c0_i32 = arith.constant 0 : i32
    %132 = arith.cmpi eq, %arg0, %c0_i32 : i32
    %133 = arith.extui %132 : i1 to i32
    %c0_i32_85 = arith.constant 0 : i32
    %134 = arith.cmpi ne, %133, %c0_i32_85 : i32
    scf.if %134 {
      %cst_94 = arith.constant 0.000000e+00 : f32
      %141 = vector.broadcast %cst_94 : f32 to vector<1x128xf32>
      %c0_95 = arith.constant 0 : index
      %c0_96 = arith.constant 0 : index
      %142 = vector.load %arg7[%c0_95, %c0_96] : memref<1x128xf32, #tpu.memory_space<vmem>>, vector<1x128xf32>
      tpu.vector_store %arg7[%c0_95, %c0_96], %141 {strides = array<i32>} : memref<1x128xf32, #tpu.memory_space<vmem>>, vector<1x128xf32>,
      %cst_97 = arith.constant 0.000000e+00 : f32
      %143 = vector.broadcast %cst_97 : f32 to vector<1x128xf32>
      %c0_98 = arith.constant 0 : index
      %c0_99 = arith.constant 0 : index
      %144 = vector.load %arg8[%c0_98, %c0_99] : memref<1x128xf32, #tpu.memory_space<vmem>>, vector<1x128xf32>
      tpu.vector_store %arg8[%c0_98, %c0_99], %143 {strides = array<i32>} : memref<1x128xf32, #tpu.memory_space<vmem>>, vector<1x128xf32>,
    } else {
    }
    %c0_86 = arith.constant 0 : index
    %c0_87 = arith.constant 0 : index
    %135 = vector.load %arg7[%c0_86, %c0_87] : memref<1x128xf32, #tpu.memory_space<vmem>>, vector<1x128xf32>
    %136 = arith.addf %135, %127 : vector<1x128xf32>
    %c0_88 = arith.constant 0 : index
    %c0_89 = arith.constant 0 : index
    %137 = vector.load %arg7[%c0_88, %c0_89] : memref<1x128xf32, #tpu.memory_space<vmem>>, vector<1x128xf32>
    tpu.vector_store %arg7[%c0_88, %c0_89], %136 {strides = array<i32>} : memref<1x128xf32, #tpu.memory_space<vmem>>, vector<1x128xf32>,
    %c0_90 = arith.constant 0 : index
    %c0_91 = arith.constant 0 : index
    %138 = vector.load %arg8[%c0_90, %c0_91] : memref<1x128xf32, #tpu.memory_space<vmem>>, vector<1x128xf32>
    %139 = arith.addf %138, %131 : vector<1x128xf32>
    %c0_92 = arith.constant 0 : index
    %c0_93 = arith.constant 0 : index
    %140 = vector.load %arg8[%c0_92, %c0_93] : memref<1x128xf32, #tpu.memory_space<vmem>>, vector<1x128xf32>
    tpu.vector_store %arg8[%c0_92, %c0_93], %139 {strides = array<i32>} : memref<1x128xf32, #tpu.memory_space<vmem>>, vector<1x128xf32>,
    return
  }
  func.func @transform_0(%arg0: i32) -> (i32, i32, i32, i32) {
    %c0_i32 = arith.constant 0 : i32
    %c0_i32_0 = arith.constant 0 : i32
    %c0_i32_1 = arith.constant 0 : i32
    %c0_i32_2 = arith.constant 0 : i32
    return %arg0, %c0_i32, %c0_i32_0, %c0_i32_1 : i32, i32, i32, i32
  }
  func.func @transform_1(%arg0: i32) -> (i32, i32, i32, i32) {
    %c0_i32 = arith.constant 0 : i32
    %c0_i32_0 = arith.constant 0 : i32
    %c0_i32_1 = arith.constant 0 : i32
    %c0_i32_2 = arith.constant 0 : i32
    return %arg0, %c0_i32, %c0_i32_0, %c0_i32_1 : i32, i32, i32, i32
  }
  func.func @transform_2(%arg0: i32) -> (i32, i32, i32) {
    %c0_i32 = arith.constant 0 : i32
    %c0_i32_0 = arith.constant 0 : i32
    %c0_i32_1 = arith.constant 0 : i32
    %c0_i32_2 = arith.constant 0 : i32
    return %c0_i32, %c0_i32_0, %c0_i32_1 : i32, i32, i32
  }
  func.func @transform_3(%arg0: i32) -> (i32, i32) {
    %c0_i32 = arith.constant 0 : i32
    %c0_i32_0 = arith.constant 0 : i32
    %c0_i32_1 = arith.constant 0 : i32
    return %c0_i32, %c0_i32_0 : i32, i32
  }
  func.func @transform_4(%arg0: i32) -> (i32, i32) {
    %c0_i32 = arith.constant 0 : i32
    %c0_i32_0 = arith.constant 0 : i32
    %c0_i32_1 = arith.constant 0 : i32
    return %c0_i32, %c0_i32_0 : i32, i32
  }
  func.func @transform_5(%arg0: i32) -> (i32, i32, i32) {
    %c0_i32 = arith.constant 0 : i32
    %c0_i32_0 = arith.constant 0 : i32
    %c0_i32_1 = arith.constant 0 : i32
    return %arg0, %c0_i32, %c0_i32_0 : i32, i32, i32
  }
  func.func @transform_6(%arg0: i32) -> (i32, i32) {
    %c0_i32 = arith.constant 0 : i32
    %c0_i32_0 = arith.constant 0 : i32
    %c0_i32_1 = arith.constant 0 : i32
    return %c0_i32, %c0_i32_0 : i32, i32
  }
  func.func @transform_7(%arg0: i32) -> (i32, i32) {
    %c0_i32 = arith.constant 0 : i32
    %c0_i32_0 = arith.constant 0 : i32
    %c0_i32_1 = arith.constant 0 : i32
    return %c0_i32, %c0_i32_0 : i32, i32
  }
}

module attributes {stable_mosaic.version = 11 : i64} {
  func.func @_mm_bnstats_kernel(%arg0: i32, %arg1: memref<128x128xbf16, #tpu.memory_space<vmem>>, %arg2: memref<128x128xbf16, #tpu.memory_space<vmem>>, %arg3: memref<128x128xbf16, #tpu.memory_space<vmem>>, %arg4: memref<1x128xf32, #tpu.memory_space<vmem>>, %arg5: memref<1x128xf32, #tpu.memory_space<vmem>>) attributes {dimension_semantics = [#tpu.dimension_semantics<arbitrary>], iteration_bounds = array<i64: 1>, scalar_prefetch = 0 : i64, scratch_operands = 0 : i64, tpu.core_type = #tpu.core_type<tc>, window_params = [{transform_indices = @transform_0, window_bounds = array<i64: 128, 128>}, {pipeline_mode = #tpu.pipeline_mode<synchronous>, transform_indices = @transform_1, window_bounds = array<i64: 128, 128>}, {transform_indices = @transform_2, window_bounds = array<i64: 128, 128>}, {pipeline_mode = #tpu.pipeline_mode<synchronous>, transform_indices = @transform_3, window_bounds = array<i64: 1, 128>}, {pipeline_mode = #tpu.pipeline_mode<synchronous>, transform_indices = @transform_4, window_bounds = array<i64: 1, 128>}]} {
    %c0 = arith.constant 0 : index
    %c0_0 = arith.constant 0 : index
    %0 = vector.load %arg1[%c0, %c0_0] : memref<128x128xbf16, #tpu.memory_space<vmem>>, vector<128x128xbf16>
    %c0_1 = arith.constant 0 : index
    %c0_2 = arith.constant 0 : index
    %1 = vector.load %arg2[%c0_1, %c0_2] : memref<128x128xbf16, #tpu.memory_space<vmem>>, vector<128x128xbf16>
    %cst = arith.constant dense<0.000000e+00> : vector<128x128xf32>
    %2 = tpu.matmul %0, %1, %cst {dimension_numbers = #tpu.dot_dimension_numbers<[1], [0], [0], [1], [0, 0, 1, 1], [], []>} : vector<128x128xbf16>, vector<128x128xbf16>, vector<128x128xf32> -> vector<128x128xf32>
    %3 = arith.truncf %2 : vector<128x128xf32> to vector<128x128xbf16>
    %c0_3 = arith.constant 0 : index
    %c0_4 = arith.constant 0 : index
    %4 = vector.load %arg3[%c0_3, %c0_4] : memref<128x128xbf16, #tpu.memory_space<vmem>>, vector<128x128xbf16>
    tpu.vector_store %arg3[%c0_3, %c0_4], %3 {strides = array<i32>} : memref<128x128xbf16, #tpu.memory_space<vmem>>, vector<128x128xbf16>,
    %c0_i32 = arith.constant 0 : i32
    %5 = arith.cmpi eq, %arg0, %c0_i32 : i32
    %6 = arith.extui %5 : i1 to i32
    %c0_i32_5 = arith.constant 0 : i32
    %7 = arith.cmpi ne, %6, %c0_i32_5 : i32
    scf.if %7 {
      %cst_16 = arith.constant 0.000000e+00 : f32
      %19 = vector.broadcast %cst_16 : f32 to vector<1x128xf32>
      %c0_17 = arith.constant 0 : index
      %c0_18 = arith.constant 0 : index
      %20 = vector.load %arg4[%c0_17, %c0_18] : memref<1x128xf32, #tpu.memory_space<vmem>>, vector<1x128xf32>
      tpu.vector_store %arg4[%c0_17, %c0_18], %19 {strides = array<i32>} : memref<1x128xf32, #tpu.memory_space<vmem>>, vector<1x128xf32>,
      %cst_19 = arith.constant 0.000000e+00 : f32
      %21 = vector.broadcast %cst_19 : f32 to vector<1x128xf32>
      %c0_20 = arith.constant 0 : index
      %c0_21 = arith.constant 0 : index
      %22 = vector.load %arg5[%c0_20, %c0_21] : memref<1x128xf32, #tpu.memory_space<vmem>>, vector<1x128xf32>
      tpu.vector_store %arg5[%c0_20, %c0_21], %21 {strides = array<i32>} : memref<1x128xf32, #tpu.memory_space<vmem>>, vector<1x128xf32>,
    } else {
    }
    %c0_6 = arith.constant 0 : index
    %c0_7 = arith.constant 0 : index
    %8 = vector.load %arg4[%c0_6, %c0_7] : memref<1x128xf32, #tpu.memory_space<vmem>>, vector<1x128xf32>
    %cst_8 = arith.constant dense<0.000000e+00> : vector<128xf32>
    %9 = vector.multi_reduction <add>, %2, %cst_8 [0] : vector<128x128xf32> to vector<128xf32>
    %10 = vector.shape_cast %9 : vector<128xf32> to vector<1x128xf32>
    %11 = arith.addf %8, %10 : vector<1x128xf32>
    %c0_9 = arith.constant 0 : index
    %c0_10 = arith.constant 0 : index
    %12 = vector.load %arg4[%c0_9, %c0_10] : memref<1x128xf32, #tpu.memory_space<vmem>>, vector<1x128xf32>
    tpu.vector_store %arg4[%c0_9, %c0_10], %11 {strides = array<i32>} : memref<1x128xf32, #tpu.memory_space<vmem>>, vector<1x128xf32>,
    %c0_11 = arith.constant 0 : index
    %c0_12 = arith.constant 0 : index
    %13 = vector.load %arg5[%c0_11, %c0_12] : memref<1x128xf32, #tpu.memory_space<vmem>>, vector<1x128xf32>
    %14 = arith.mulf %2, %2 : vector<128x128xf32>
    %cst_13 = arith.constant dense<0.000000e+00> : vector<128xf32>
    %15 = vector.multi_reduction <add>, %14, %cst_13 [0] : vector<128x128xf32> to vector<128xf32>
    %16 = vector.shape_cast %15 : vector<128xf32> to vector<1x128xf32>
    %17 = arith.addf %13, %16 : vector<1x128xf32>
    %c0_14 = arith.constant 0 : index
    %c0_15 = arith.constant 0 : index
    %18 = vector.load %arg5[%c0_14, %c0_15] : memref<1x128xf32, #tpu.memory_space<vmem>>, vector<1x128xf32>
    tpu.vector_store %arg5[%c0_14, %c0_15], %17 {strides = array<i32>} : memref<1x128xf32, #tpu.memory_space<vmem>>, vector<1x128xf32>,
    return
  }
  func.func @transform_0(%arg0: i32) -> (i32, i32) {
    %c0_i32 = arith.constant 0 : i32
    %c0_i32_0 = arith.constant 0 : i32
    return %arg0, %c0_i32 : i32, i32
  }
  func.func @transform_1(%arg0: i32) -> (i32, i32) {
    %c0_i32 = arith.constant 0 : i32
    %c0_i32_0 = arith.constant 0 : i32
    %c0_i32_1 = arith.constant 0 : i32
    return %c0_i32, %c0_i32_0 : i32, i32
  }
  func.func @transform_2(%arg0: i32) -> (i32, i32) {
    %c0_i32 = arith.constant 0 : i32
    %c0_i32_0 = arith.constant 0 : i32
    return %arg0, %c0_i32 : i32, i32
  }
  func.func @transform_3(%arg0: i32) -> (i32, i32) {
    %c0_i32 = arith.constant 0 : i32
    %c0_i32_0 = arith.constant 0 : i32
    %c0_i32_1 = arith.constant 0 : i32
    return %c0_i32, %c0_i32_0 : i32, i32
  }
  func.func @transform_4(%arg0: i32) -> (i32, i32) {
    %c0_i32 = arith.constant 0 : i32
    %c0_i32_0 = arith.constant 0 : i32
    %c0_i32_1 = arith.constant 0 : i32
    return %c0_i32, %c0_i32_0 : i32, i32
  }
}

module attributes {stable_mosaic.version = 11 : i64} {
  func.func @_bn_add_relu_kernel(%arg0: i32, %arg1: memref<128x128xbf16, #tpu.memory_space<vmem>>, %arg2: memref<128x128xbf16, #tpu.memory_space<vmem>>, %arg3: memref<1x128xf32, #tpu.memory_space<vmem>>, %arg4: memref<1x128xf32, #tpu.memory_space<vmem>>, %arg5: memref<1x128xf32, #tpu.memory_space<vmem>>, %arg6: memref<1x128xf32, #tpu.memory_space<vmem>>, %arg7: memref<128x128xbf16, #tpu.memory_space<vmem>>) attributes {dimension_semantics = [#tpu.dimension_semantics<parallel>], iteration_bounds = array<i64: 1>, scalar_prefetch = 0 : i64, scratch_operands = 0 : i64, tpu.core_type = #tpu.core_type<tc>, window_params = [{transform_indices = @transform_0, window_bounds = array<i64: 128, 128>}, {transform_indices = @transform_1, window_bounds = array<i64: 128, 128>}, {pipeline_mode = #tpu.pipeline_mode<synchronous>, transform_indices = @transform_2, window_bounds = array<i64: 1, 128>}, {pipeline_mode = #tpu.pipeline_mode<synchronous>, transform_indices = @transform_3, window_bounds = array<i64: 1, 128>}, {pipeline_mode = #tpu.pipeline_mode<synchronous>, transform_indices = @transform_4, window_bounds = array<i64: 1, 128>}, {pipeline_mode = #tpu.pipeline_mode<synchronous>, transform_indices = @transform_5, window_bounds = array<i64: 1, 128>}, {transform_indices = @transform_6, window_bounds = array<i64: 128, 128>}]} {
    %c0 = arith.constant 0 : index
    %c0_0 = arith.constant 0 : index
    %0 = vector.load %arg1[%c0, %c0_0] : memref<128x128xbf16, #tpu.memory_space<vmem>>, vector<128x128xbf16>
    %1 = arith.extf %0 : vector<128x128xbf16> to vector<128x128xf32>
    %c0_1 = arith.constant 0 : index
    %c0_2 = arith.constant 0 : index
    %2 = vector.load %arg3[%c0_1, %c0_2] : memref<1x128xf32, #tpu.memory_space<vmem>>, vector<1x128xf32>
    %3 = vector.broadcast %2 : vector<1x128xf32> to vector<128x128xf32>
    %4 = arith.mulf %1, %3 : vector<128x128xf32>
    %c0_3 = arith.constant 0 : index
    %c0_4 = arith.constant 0 : index
    %5 = vector.load %arg4[%c0_3, %c0_4] : memref<1x128xf32, #tpu.memory_space<vmem>>, vector<1x128xf32>
    %6 = vector.broadcast %5 : vector<1x128xf32> to vector<128x128xf32>
    %7 = arith.addf %4, %6 : vector<128x128xf32>
    %c0_5 = arith.constant 0 : index
    %c0_6 = arith.constant 0 : index
    %8 = vector.load %arg2[%c0_5, %c0_6] : memref<128x128xbf16, #tpu.memory_space<vmem>>, vector<128x128xbf16>
    %9 = arith.extf %8 : vector<128x128xbf16> to vector<128x128xf32>
    %c0_7 = arith.constant 0 : index
    %c0_8 = arith.constant 0 : index
    %10 = vector.load %arg5[%c0_7, %c0_8] : memref<1x128xf32, #tpu.memory_space<vmem>>, vector<1x128xf32>
    %11 = vector.broadcast %10 : vector<1x128xf32> to vector<128x128xf32>
    %12 = arith.mulf %9, %11 : vector<128x128xf32>
    %c0_9 = arith.constant 0 : index
    %c0_10 = arith.constant 0 : index
    %13 = vector.load %arg6[%c0_9, %c0_10] : memref<1x128xf32, #tpu.memory_space<vmem>>, vector<1x128xf32>
    %14 = vector.broadcast %13 : vector<1x128xf32> to vector<128x128xf32>
    %15 = arith.addf %12, %14 : vector<128x128xf32>
    %16 = arith.addf %7, %15 : vector<128x128xf32>
    %cst = arith.constant 0.000000e+00 : f32
    %17 = vector.broadcast %cst : f32 to vector<128x128xf32>
    %18 = arith.maximumf %16, %17 : vector<128x128xf32>
    %19 = arith.truncf %18 : vector<128x128xf32> to vector<128x128xbf16>
    %c0_11 = arith.constant 0 : index
    %c0_12 = arith.constant 0 : index
    %20 = vector.load %arg7[%c0_11, %c0_12] : memref<128x128xbf16, #tpu.memory_space<vmem>>, vector<128x128xbf16>
    tpu.vector_store %arg7[%c0_11, %c0_12], %19 {strides = array<i32>} : memref<128x128xbf16, #tpu.memory_space<vmem>>, vector<128x128xbf16>,
    return
  }
  func.func @transform_0(%arg0: i32) -> (i32, i32) {
    %c0_i32 = arith.constant 0 : i32
    %c0_i32_0 = arith.constant 0 : i32
    return %arg0, %c0_i32 : i32, i32
  }
  func.func @transform_1(%arg0: i32) -> (i32, i32) {
    %c0_i32 = arith.constant 0 : i32
    %c0_i32_0 = arith.constant 0 : i32
    return %arg0, %c0_i32 : i32, i32
  }
  func.func @transform_2(%arg0: i32) -> (i32, i32) {
    %c0_i32 = arith.constant 0 : i32
    %c0_i32_0 = arith.constant 0 : i32
    %c0_i32_1 = arith.constant 0 : i32
    return %c0_i32, %c0_i32_0 : i32, i32
  }
  func.func @transform_3(%arg0: i32) -> (i32, i32) {
    %c0_i32 = arith.constant 0 : i32
    %c0_i32_0 = arith.constant 0 : i32
    %c0_i32_1 = arith.constant 0 : i32
    return %c0_i32, %c0_i32_0 : i32, i32
  }
  func.func @transform_4(%arg0: i32) -> (i32, i32) {
    %c0_i32 = arith.constant 0 : i32
    %c0_i32_0 = arith.constant 0 : i32
    %c0_i32_1 = arith.constant 0 : i32
    return %c0_i32, %c0_i32_0 : i32, i32
  }
  func.func @transform_5(%arg0: i32) -> (i32, i32) {
    %c0_i32 = arith.constant 0 : i32
    %c0_i32_0 = arith.constant 0 : i32
    %c0_i32_1 = arith.constant 0 : i32
    return %c0_i32, %c0_i32_0 : i32, i32
  }
  func.func @transform_6(%arg0: i32) -> (i32, i32) {
    %c0_i32 = arith.constant 0 : i32
    %c0_i32_0 = arith.constant 0 : i32
    return %arg0, %c0_i32 : i32, i32
  }
}

</mosaic_0001>

<bundles_post_ra>
// kernel: res_block50_forward.7
= control target key start
LH: loop header
LB: loop body
LE: loop exit
PB: predicated region body
PF: predicated region fallthrough
CT: control target
= control target key end

     0   :  { %s815_s1 = inlined_call_operand.vmem [shape: bf16[128,128], index: 1, kind: input, shape index: {}]   ;;  %s816_s0 = inlined_call_operand.vmem [shape: bf16[128,128], index: 0, kind: input, shape index: {}]   ;;  %s817_s2 = inlined_call_operand.vmem [shape: f32[1,128], index: 2, kind: input, shape index: {}]   ;;  %s818_s3 = inlined_call_operand.vmem [shape: f32[1,128], index: 3, kind: input, shape index: {}]   ;;  %s819_s5 = inlined_call_operand.vmem [shape: f32[1,128], index: 5, kind: output, shape index: {1}]   ;;  %s820_s6 = inlined_call_operand.vmem [shape: f32[1,128], index: 6, kind: output, shape index: {2}]   ;;  %s821_s4 = inlined_call_operand.vmem [shape: bf16[128,128], index: 4, kind: output, shape index: {0}]  }
   0x1   :  { %v639_v0 = vld [vmem:[%s815_s1] sm:$0xff]   ;;  %v640_v1 = vld [vmem:[%s815_s1 + $0x8] sm:$0xff]   ;;  %v641_v2 = vld [vmem:[%s815_s1 + $0x10] sm:$0xff]  }
   0x2   :  { %590 = vmatprep.subr.bf16.mxu0 %v639_v0  ;;  %622 = vmatprep.subr.bf16.mxu1 %v639_v0  ;;  %v642_v3 = vld [vmem:[%s815_s1 + $0x18] sm:$0xff]   ;;  %v489_v4 = vld [vmem:[%s816_s0] sm:$0xff]   ;;  %v560_v8 = vld [vmem:[%s816_s0 + $0x8] sm:$0xff]  }
   0x3   :  { %591 = vmatpush3.bf16.msra.mxu0 %v639_v0  ;;  %630 = vmatpush3.bf16.msra.mxu1 %v639_v0  ;;  %v701_v5 = vld [vmem:[%s817_s2] ss:$0 sm:$0xff]  ;;  %v490_v6 = vunpack.c.l.bf16 %v489_v4  ;;  %v491_v7 = vunpack.c.h.bf16 %v489_v4  ;;  %v561_v9 = vld [vmem:[%s816_s0 + $0x10] sm:$0xff]   ;;  %v494_v11 = vunpack.c.l.bf16 %v560_v8  ;;  %v495_v14 = vunpack.c.h.bf16 %v560_v8  ;;  %v562_v22 = vld [vmem:[%s816_s0 + $0x18] sm:$0xff]  }
   0x4   :  { %592 = vmatprep.subr.bf16.mxu0 %v640_v1  ;;  %623 = vmatprep.subr.bf16.mxu1 %v640_v1  ;;  %v712_v10 = vld [vmem:[%s818_s3] ss:$0 sm:$0xff]  ;;  %v498_v17 = vunpack.c.l.bf16 %v561_v9  ;;  %v499_v21 = vunpack.c.h.bf16 %v561_v9  ;;  %v564_v27 = vld [vmem:[%s816_s0 + $0x28] sm:$0xff]   ;;  %v565_v30 = vld [vmem:[%s816_s0 + $0x30] sm:$0xff]   ;;  %v502_v32 = vunpack.c.l.bf16 %v562_v22  ;;  %v503_v33 = vunpack.c.h.bf16 %v562_v22 }
   0x5   :  { %v60_v12 = vmul.f32 %v490_v6, %v701_v5  ;;  %v61_v13 = vmul.f32 %v491_v7, %v701_v5  ;;  %v563_v15 = vld [vmem:[%s816_s0 + $0x20] sm:$0xff]   ;;  %v62_v20 = vmul.f32 %v494_v11, %v701_v5  ;;  %v63_v26 = vmul.f32 %v495_v14, %v701_v5  ;;  %v644_v28 = vld [vmem:[%s815_s1 + $0x28] sm:$0xff]   ;;  %v566_v39 = vld [vmem:[%s816_s0 + $0x38] sm:$0xff]  }
   0x6   :  { %v643_v16 = vld [vmem:[%s815_s1 + $0x20] sm:$0xff]   ;;  %v506_v23 = vunpack.c.l.bf16 %v563_v15  ;;  %v64_v29 = vmul.f32 %v498_v17, %v701_v5  ;;  %v507_v34 = vunpack.c.h.bf16 %v563_v15  ;;  %v65_v36 = vmul.f32 %v499_v21, %v701_v5  ;;  %v645_v44 = vld [vmem:[%s815_s1 + $0x30] sm:$0xff]   ;;  %v646_v61 = vld [vmem:[%s815_s1 + $0x38] sm:$0xff]  }
   0x7   :  { %593 = vmatpush3.bf16.msra.mxu0 %v640_v1  ;;  %631 = vmatpush3.bf16.msra.mxu1 %v640_v1  ;;  %v83_v18 = vadd.f32 %v712_v10, %v60_v12  ;;  %v84_v19 = vadd.f32 %v712_v10, %v61_v13  ;;  %v85_v35 = vadd.f32 %v712_v10, %v62_v20  ;;  %v510_v38 = vunpack.c.l.bf16 %v564_v27 }
   0x8   :  { %594 = vmatprep.subr.bf16.mxu0 %v641_v2  ;;  %624 = vmatprep.subr.bf16.mxu1 %v641_v2  ;;  %v68_v37 = vmul.f32 %v506_v23, %v701_v5  ;;  %v86_v40 = vadd.f32 %v712_v10, %v63_v26  ;;  %v69_v41 = vmul.f32 %v507_v34, %v701_v5  ;;  %v511_v42 = vunpack.c.h.bf16 %v564_v27 }
   0x9   :  { %v99_v24 = vmax.f32 %v83_v18, 0.0  ;;  %v100_v25 = vmax.f32 %v84_v19, 0.0  ;;  %v514_v43 = vunpack.c.l.bf16 %v565_v30  ;;  %v87_v45 = vadd.f32 %v712_v10, %v64_v29 }
   0xa   :  { %v91_v46 = vadd.f32 %v712_v10, %v68_v37  ;;  %v70_v47 = vmul.f32 %v510_v38, %v701_v5  ;;  %v515_v48 = vunpack.c.h.bf16 %v565_v30  ;;  %v92_v49 = vadd.f32 %v712_v10, %v69_v41 }
   0xb   :  { %595 = vmatpush3.bf16.msra.mxu0 %v641_v2  ;;  %632 = vmatpush3.bf16.msra.mxu1 %v641_v2  ;;  %v115_v31 = vpack.c.bf16 %v100_v25, %v99_v24  ;;  %v71_v50 = vmul.f32 %v511_v42, %v701_v5  ;;  %v72_v51 = vmul.f32 %v514_v43, %v701_v5  ;;  %v518_v52 = vunpack.c.l.bf16 %v566_v39 }
   0xc   :  { %596 = vmatprep.subr.bf16.mxu0 %v642_v3  ;;  %625 = vmatprep.subr.bf16.mxu1 %v642_v3  ;;  %v107_v53 = vmax.f32 %v91_v46, 0.0  ;;  %v93_v54 = vadd.f32 %v712_v10, %v70_v47  ;;  %v73_v55 = vmul.f32 %v515_v48, %v701_v5  ;;  %v519_v56 = vunpack.c.h.bf16 %v566_v39 }
   0xd   :  { %606 = vmatprep.mubr.bf16.mxu0 %v115_v31  ;;  %v88_v57 = vadd.f32 %v712_v10, %v65_v36  ;;  %v108_v58 = vmax.f32 %v92_v49, 0.0  ;;  %v94_v59 = vadd.f32 %v712_v10, %v71_v50  ;;  %v95_v60 = vadd.f32 %v712_v10, %v72_v51 }
   0xe   :  { %v66_v62 = vmul.f32 %v502_v32, %v701_v5  ;;  %v96_v63 = vadd.f32 %v712_v10, %v73_v55  ;;  %v101_v0 = vmax.f32 %v85_v35, 0.0  ;;  %v102_v1 = vmax.f32 %v86_v40, 0.0 }
   0xf   :  { %597 = vmatpush3.bf16.msra.mxu0 %v642_v3  ;;  %633 = vmatpush3.bf16.msra.mxu1 %v642_v3  ;;  %v67_v2 = vmul.f32 %v503_v33, %v701_v5  ;;  %v119_v3 = vpack.c.bf16 %v108_v58, %v107_v53  ;;  %v109_v4 = vmax.f32 %v93_v54, 0.0  ;;  %v110_v6 = vmax.f32 %v94_v59, 0.0 }
  0x10   :  { %598 = vmatprep.subr.bf16.mxu0 %v643_v16  ;;  %626 = vmatprep.subr.bf16.mxu1 %v643_v16  ;;  %v74_v7 = vmul.f32 %v518_v52, %v701_v5  ;;  %v75_v8 = vmul.f32 %v519_v56, %v701_v5  ;;  %v103_v9 = vmax.f32 %v87_v45, 0.0  ;;  %v104_v11 = vmax.f32 %v88_v57, 0.0 }
  0x11   :  { %v111_v12 = vmax.f32 %v95_v60, 0.0  ;;  %v112_v13 = vmax.f32 %v96_v63, 0.0  ;;  %v89_v14 = vadd.f32 %v712_v10, %v66_v62  ;;  %v90_v15 = vadd.f32 %v712_v10, %v67_v2  ;;  %614 = vmatprep.mubr.bf16.mxu1 %v119_v3 }
  0x12   :  { %v120_v17 = vpack.c.bf16 %v110_v6, %v109_v4  ;;  %v97_v18 = vadd.f32 %v712_v10, %v74_v7  ;;  %v98_v19 = vadd.f32 %v712_v10, %v75_v8  ;;  %v117_v5 = vpack.c.bf16 %v104_v11, %v103_v9 }
  0x13   :  { %599 = vmatpush3.bf16.msra.mxu0 %v643_v16  ;;  %634 = vmatpush3.bf16.msra.mxu1 %v643_v16  ;;  %v116_v16 = vpack.c.bf16 %v102_v1, %v101_v0  ;;  %v121_v20 = vpack.c.bf16 %v112_v13, %v111_v12  ;;  %v105_v21 = vmax.f32 %v89_v14, 0.0  ;;  %v106_v22 = vmax.f32 %v90_v15, 0.0 }
  0x14   :  { %600 = vmatprep.subr.bf16.mxu0 %v644_v28  ;;  %627 = vmatprep.subr.bf16.mxu1 %v644_v28  ;;  %v113_v23 = vmax.f32 %v97_v18, 0.0  ;;  %v114_v24 = vmax.f32 %v98_v19, 0.0  ;;  %v647_v27 = vmov 0.0  }
  0x15   :  { %v118_v25 = vpack.c.bf16 %v106_v22, %v105_v21  ;;  %368 = vst [vmem:[%s819_s5] sm:$0x1] %v647_v27  ;;  %369 = vst [vmem:[%s820_s6] sm:$0x1] %v647_v27 }
  0x16   :  { %v122_v26 = vpack.c.bf16 %v114_v24, %v113_v23 }
  0x17   :  { %601 = vmatpush3.bf16.msra.mxu0 %v644_v28  ;;  %635 = vmatpush3.bf16.msra.mxu1 %v644_v28 }
  0x18   :  { %602 = vmatprep.subr.bf16.mxu0 %v645_v44  ;;  %628 = vmatprep.subr.bf16.mxu1 %v645_v44 }
  0x1b   :  { %603 = vmatpush3.bf16.msra.mxu0 %v645_v44  ;;  %636 = vmatpush3.bf16.msra.mxu1 %v645_v44 }
  0x1c   :  { %604 = vmatprep.subr.bf16.mxu0 %v646_v61  ;;  %629 = vmatprep.subr.bf16.mxu1 %v646_v61 }
  0x1f   :  { %605 = vmatpush3.bf16.msra.mxu0 %v646_v61  ;;  %637 = vmatpush3.bf16.msra.mxu1 %v646_v61 }
  0x22   :  { %607 = vmatmul.mubr.bf16.vlgmr.msra.gmra.mrb[0].mxu0 %v116_v16  ;;  %615 = vmatmul.mubr.bf16.vlgmr.msra.gmra.mrb[0].mxu1 %v120_v17 }
  0x23   :  { %610 = vmatprep.mubr.bf16.mxu0 %v117_v5  ;;  %618 = vmatprep.mubr.bf16.mxu1 %v121_v20 }
  0x2a   :  { %611 = vmatmul.mubr.bf16.gmra.mrb[4].mxu0 %v118_v25  ;;  %619 = vmatmul.mubr.bf16.gmra.mrb[4].mxu1 %v122_v26 }
  0xf5   :  { %v608_v10 = vpop.f32.mrb[0].mxu0  ;;  %v616_v28 = vpop.f32.mrb[0].mxu1 }
  0xf6   :  { %v221_v29 = vpop.f32.mrb[1].mxu0  ;;  %v253_v30 = vpop.f32.mrb[1].mxu1  ;;  %v397_v42 = vmul.f32 %v608_v10, %v608_v10  ;;  %v405_v16 = vmul.f32 %v616_v28, %v616_v28 }
  0xf7   :  { %v609_v31 = vpop.f32.mrb[2].mxu0  ;;  %v617_v32 = vpop.f32.mrb[2].mxu1  ;;  %v395_v33 = vmul.f32 %v221_v29, %v221_v29  ;;  %v403_v9 = vmul.f32 %v253_v30, %v253_v30 }
  0xf8   :  { %v528_v34 = vpack.c.bf16 %v609_v31, %v608_v10  ;;  %v224_v35 = vpop.f32.mrb[3].mxu0  ;;  %v548_v36 = vpack.c.bf16 %v617_v32, %v616_v28  ;;  %v256_v37 = vpop.f32.mrb[3].mxu1  ;;  %v398_v45 = vmul.f32 %v609_v31, %v609_v31  ;;  %v406_v19 = vmul.f32 %v617_v32, %v617_v32 }
  0xf9   :  { %v523_v38 = vpack.c.bf16 %v224_v35, %v221_v29  ;;  %v371_v39 = vadd.f32 %v224_v35, %v221_v29  ;;  %v396_v40 = vmul.f32 %v224_v35, %v224_v35  ;;  %v543_v41 = vpack.c.bf16 %v256_v37, %v253_v30 }
  0xfa   :  { %567 = vst [vmem:[%s821_s4 + $0x8] sm:$0xff] %v528_v34   ;;  %571 = vst [vmem:[%s821_s4 + $0x28] sm:$0xff] %v548_v36   ;;  %v404_v15 = vmul.f32 %v256_v37, %v256_v37 }
  0xfb   :  { %524 = vst [vmem:[%s821_s4] sm:$0xff] %v523_v38   ;;  %v372_v43 = vadd.f32 %v608_v10, %v371_v39  ;;  %v411_v44 = vadd.f32 %v396_v40, %v395_v33  ;;  %570 = vst [vmem:[%s821_s4 + $0x20] sm:$0xff] %v543_v41  }
  0xfd   :  { %v412_v46 = vadd.f32 %v411_v44, %v397_v42  ;;  %v612_v47 = vpop.f32.mrb[4].mxu0  ;;  %v373_v48 = vadd.f32 %v609_v31, %v372_v43  ;;  %v620_v49 = vpop.f32.mrb[4].mxu1  ;;  %v370_v42 = vld [vmem:[%s819_s5] sm:$0x1] }
  0xfe   :  { %v237_v50 = vpop.f32.mrb[5].mxu0  ;;  %v269_v51 = vpop.f32.mrb[5].mxu1  ;;  %v401_v2 = vmul.f32 %v612_v47, %v612_v47  ;;  %v409_v27 = vmul.f32 %v620_v49, %v620_v49 }
  0xff   :  { %v374_v52 = vadd.f32 %v373_v48, %v237_v50  ;;  %v399_v53 = vmul.f32 %v237_v50, %v237_v50  ;;  %v413_v54 = vadd.f32 %v412_v46, %v398_v45  ;;  %v613_v55 = vpop.f32.mrb[6].mxu0  ;;  %v621_v56 = vpop.f32.mrb[6].mxu1  ;;  %v407_v21 = vmul.f32 %v269_v51, %v269_v51  ;;  %v394_v45 = vld [vmem:[%s820_s6] sm:$0x1] }
 0x100   :  { %v538_v57 = vpack.c.bf16 %v613_v55, %v612_v47  ;;  %v240_v58 = vpop.f32.mrb[7].mxu0  ;;  %v558_v59 = vpack.c.bf16 %v621_v56, %v620_v49  ;;  %v272_v60 = vpop.f32.mrb[7].mxu1  ;;  %v402_v6 = vmul.f32 %v613_v55, %v613_v55 }
 0x101   :  { %v414_v61 = vadd.f32 %v413_v54, %v399_v53  ;;  %v533_v62 = vpack.c.bf16 %v240_v58, %v237_v50  ;;  %v375_v63 = vadd.f32 %v374_v52, %v240_v58  ;;  %v400_v0 = vmul.f32 %v240_v58, %v240_v58 }
 0x102   :  { %569 = vst [vmem:[%s821_s4 + $0x18] sm:$0xff] %v538_v57   ;;  %573 = vst [vmem:[%s821_s4 + $0x38] sm:$0xff] %v558_v59   ;;  %v553_v1 = vpack.c.bf16 %v272_v60, %v269_v51  ;;  %v408_v26 = vmul.f32 %v272_v60, %v272_v60 }
 0x103   :  { %568 = vst [vmem:[%s821_s4 + $0x10] sm:$0xff] %v533_v62   ;;  %v376_v3 = vadd.f32 %v612_v47, %v375_v63  ;;  %v415_v4 = vadd.f32 %v414_v61, %v400_v0 }
 0x104   :  { %572 = vst [vmem:[%s821_s4 + $0x30] sm:$0xff] %v553_v1  }
 0x105   :  { %v416_v7 = vadd.f32 %v415_v4, %v401_v2  ;;  %v377_v8 = vadd.f32 %v613_v55, %v376_v3 }
 0x107   :  { %v378_v11 = vadd.f32 %v377_v8, %v253_v30  ;;  %v417_v12 = vadd.f32 %v416_v7, %v402_v6  ;;  %v410_v30 = vmul.f32 %v621_v56, %v621_v56 }
 0x109   :  { %v418_v13 = vadd.f32 %v417_v12, %v403_v9  ;;  %v379_v14 = vadd.f32 %v378_v11, %v256_v37 }
 0x10b   :  { %v380_v17 = vadd.f32 %v616_v28, %v379_v14  ;;  %v419_v18 = vadd.f32 %v418_v13, %v404_v15 }
 0x10d   :  { %v420_v5 = vadd.f32 %v419_v18, %v405_v16  ;;  %v381_v20 = vadd.f32 %v617_v32, %v380_v17 }
 0x10f   :  { %v382_v22 = vadd.f32 %v381_v20, %v269_v51  ;;  %v421_v23 = vadd.f32 %v420_v5, %v406_v19 }
 0x111   :  { %v422_v24 = vadd.f32 %v421_v23, %v407_v21  ;;  %v383_v25 = vadd.f32 %v382_v22, %v272_v60 }
 0x113   :  { %v384_v10 = vadd.f32 %v620_v49, %v383_v25  ;;  %v423_v29 = vadd.f32 %v422_v24, %v408_v26 }
 0x115   :  { %v385_v31 = vadd.f32 %v621_v56, %v384_v10  ;;  %v424_v33 = vadd.f32 %v423_v29, %v409_v27 }
 0x117   :  { %v386_v34 = vrot.slane %v385_v31, 4  ;;  %v425_v35 = vadd.f32 %v424_v33, %v410_v30 }
 0x119   :  { %v387_v36 = vadd.f32 %v386_v34, %v385_v31  ;;  %v426_v28 = vrot.slane %v425_v35, 4 }
 0x11b   :  { %v388_v37 = vrot.slane %v387_v36, 2  ;;  %v427_v38 = vadd.f32 %v426_v28, %v425_v35 }
 0x11d   :  { %v389_v39 = vadd.f32 %v388_v37, %v387_v36  ;;  %v428_v32 = vrot.slane %v427_v38, 2 }
 0x11f   :  { %v390_v40 = vrot.slane %v389_v39, 1  ;;  %v429_v41 = vadd.f32 %v428_v32, %v427_v38 }
 0x121   :  { %v391_v43 = vadd.f32 %v390_v40, %v389_v39  ;;  %v430_v44 = vrot.slane %v429_v41, 1 }
 0x123   :  { %v392_v46 = vadd.f32 %v391_v43, %v370_v42  ;;  %v431_v47 = vadd.f32 %v430_v44, %v429_v41 }
 0x125   :  { %393 = vst [vmem:[%s819_s5] sm:$0x1] %v392_v46  ;;  %v432_v48 = vadd.f32 %v431_v47, %v394_v45 }
 0x127   :  { %433 = vst [vmem:[%s820_s6] sm:$0x1] %v432_v48 }

// kernel: res_block50_forward.5
= control target key start
LH: loop header
LB: loop body
LE: loop exit
PB: predicated region body
PF: predicated region fallthrough
CT: control target
= control target key end

     0   :  { %v1706_v40 = vmov 0.0   ;;  %s2158_s1 = inlined_call_operand.vmem [shape: bf16[128,128], index: 1, kind: input, shape index: {}]   ;;  %s2159_s0 = inlined_call_operand.vmem [shape: bf16[512,128], index: 0, kind: input, shape index: {}]   ;;  %s2160_s3 = inlined_call_operand.vmem [shape: f32[1,128], index: 3, kind: output, shape index: {1}]   ;;  %s2161_s4 = inlined_call_operand.vmem [shape: f32[1,128], index: 4, kind: output, shape index: {2}]   ;;  %s2162_s2 = inlined_call_operand.vmem [shape: bf16[512,128], index: 2, kind: output, shape index: {0}]  }
   0x1   :  { %v1666_v0 = vld [vmem:[%s2158_s1] sm:$0xff]   ;;  %v1667_v1 = vld [vmem:[%s2158_s1 + $0x8] sm:$0xff]   ;;  %v1668_v2 = vld [vmem:[%s2158_s1 + $0x10] sm:$0xff]   ;;  %948 = vst [vmem:[%s2160_s3] sm:$0x1] %v1706_v40 }
   0x2   :  { %1569 = vmatprep.subr.bf16.mxu0 %v1666_v0  ;;  %1649 = vmatprep.subr.bf16.mxu1 %v1666_v0  ;;  %v1669_v3 = vld [vmem:[%s2158_s1 + $0x18] sm:$0xff]   ;;  %v1674_v4 = vld [vmem:[%s2159_s0] sm:$0xff]   ;;  %v1671_v6 = vld [vmem:[%s2158_s1 + $0x28] sm:$0xff]   ;;  %949 = vst [vmem:[%s2161_s4] sm:$0x1] %v1706_v40 }
   0x3   :  { %1570 = vmatpush3.bf16.msra.mxu0 %v1666_v0  ;;  %1657 = vmatpush3.bf16.msra.mxu1 %v1666_v0  ;;  %v1670_v5 = vld [vmem:[%s2158_s1 + $0x20] sm:$0xff]   ;;  %v1672_v7 = vld [vmem:[%s2158_s1 + $0x30] sm:$0xff]   ;;  %v1673_v8 = vld [vmem:[%s2158_s1 + $0x38] sm:$0xff]  }
   0x4   :  { %1571 = vmatprep.subr.bf16.mxu0 %v1667_v1  ;;  %1650 = vmatprep.subr.bf16.mxu1 %v1667_v1  ;;  %v1690_v9 = vld [vmem:[%s2159_s0 + $0x80] sm:$0xff]   ;;  %v1675_v10 = vld [vmem:[%s2159_s0 + $0x8] sm:$0xff]   ;;  %v1676_v11 = vld [vmem:[%s2159_s0 + $0x10] sm:$0xff]  }
   0x5   :  { %1585 = vmatprep.mubr.bf16.mxu0 %v1674_v4  ;;  %1617 = vmatprep.mubr.bf16.mxu1 %v1690_v9  ;;  %v1691_v12 = vld [vmem:[%s2159_s0 + $0x88] sm:$0xff]   ;;  %v1692_v13 = vld [vmem:[%s2159_s0 + $0x90] sm:$0xff]   ;;  %v1677_v14 = vld [vmem:[%s2159_s0 + $0x18] sm:$0xff]  }
   0x6   :  { %v1678_v15 = vld [vmem:[%s2159_s0 + $0x20] sm:$0xff]   ;;  %v1693_v16 = vld [vmem:[%s2159_s0 + $0x98] sm:$0xff]   ;;  %v1679_v18 = vld [vmem:[%s2159_s0 + $0x28] sm:$0xff]  }
   0x7   :  { %1572 = vmatpush3.bf16.msra.mxu0 %v1667_v1  ;;  %1658 = vmatpush3.bf16.msra.mxu1 %v1667_v1  ;;  %v1694_v17 = vld [vmem:[%s2159_s0 + $0xa0] sm:$0xff]   ;;  %v1695_v19 = vld [vmem:[%s2159_s0 + $0xa8] sm:$0xff]   ;;  %v1680_v20 = vld [vmem:[%s2159_s0 + $0x30] sm:$0xff]  }
   0x8   :  { %1573 = vmatprep.subr.bf16.mxu0 %v1668_v2  ;;  %1651 = vmatprep.subr.bf16.mxu1 %v1668_v2  ;;  %v1696_v21 = vld [vmem:[%s2159_s0 + $0xb0] sm:$0xff]   ;;  %v1681_v22 = vld [vmem:[%s2159_s0 + $0x38] sm:$0xff]   ;;  %v1682_v24 = vld [vmem:[%s2159_s0 + $0x40] sm:$0xff]  }
   0x9   :  { %v1697_v23 = vld [vmem:[%s2159_s0 + $0xb8] sm:$0xff]   ;;  %v1698_v25 = vld [vmem:[%s2159_s0 + $0xc0] sm:$0xff]   ;;  %v1683_v26 = vld [vmem:[%s2159_s0 + $0x48] sm:$0xff]  }
   0xa   :  { %v1699_v27 = vld [vmem:[%s2159_s0 + $0xc8] sm:$0xff]   ;;  %v1684_v28 = vld [vmem:[%s2159_s0 + $0x50] sm:$0xff]   ;;  %v1685_v30 = vld [vmem:[%s2159_s0 + $0x58] sm:$0xff]  }
   0xb   :  { %1574 = vmatpush3.bf16.msra.mxu0 %v1668_v2  ;;  %1659 = vmatpush3.bf16.msra.mxu1 %v1668_v2  ;;  %v1700_v29 = vld [vmem:[%s2159_s0 + $0xd0] sm:$0xff]   ;;  %v1701_v31 = vld [vmem:[%s2159_s0 + $0xd8] sm:$0xff]   ;;  %v1686_v32 = vld [vmem:[%s2159_s0 + $0x60] sm:$0xff]  }
   0xc   :  { %1575 = vmatprep.subr.bf16.mxu0 %v1669_v3  ;;  %1652 = vmatprep.subr.bf16.mxu1 %v1669_v3  ;;  %v1702_v33 = vld [vmem:[%s2159_s0 + $0xe0] sm:$0xff]   ;;  %v1687_v34 = vld [vmem:[%s2159_s0 + $0x68] sm:$0xff]   ;;  %v1688_v36 = vld [vmem:[%s2159_s0 + $0x70] sm:$0xff]  }
   0xd   :  { %v1703_v35 = vld [vmem:[%s2159_s0 + $0xe8] sm:$0xff]   ;;  %v1704_v37 = vld [vmem:[%s2159_s0 + $0xf0] sm:$0xff]   ;;  %v1689_v38 = vld [vmem:[%s2159_s0 + $0x78] sm:$0xff]  }
   0xe   :  { %v1705_v39 = vld [vmem:[%s2159_s0 + $0xf8] sm:$0xff]  }
   0xf   :  { %1576 = vmatpush3.bf16.msra.mxu0 %v1669_v3  ;;  %1660 = vmatpush3.bf16.msra.mxu1 %v1669_v3 }
  0x10   :  { %1577 = vmatprep.subr.bf16.mxu0 %v1670_v5  ;;  %1653 = vmatprep.subr.bf16.mxu1 %v1670_v5 }
  0x13   :  { %1578 = vmatpush3.bf16.msra.mxu0 %v1670_v5  ;;  %1661 = vmatpush3.bf16.msra.mxu1 %v1670_v5 }
  0x14   :  { %1579 = vmatprep.subr.bf16.mxu0 %v1671_v6  ;;  %1654 = vmatprep.subr.bf16.mxu1 %v1671_v6 }
  0x17   :  { %1580 = vmatpush3.bf16.msra.mxu0 %v1671_v6  ;;  %1662 = vmatpush3.bf16.msra.mxu1 %v1671_v6 }
  0x18   :  { %1581 = vmatprep.subr.bf16.mxu0 %v1672_v7  ;;  %1655 = vmatprep.subr.bf16.mxu1 %v1672_v7 }
  0x1b   :  { %1582 = vmatpush3.bf16.msra.mxu0 %v1672_v7  ;;  %1663 = vmatpush3.bf16.msra.mxu1 %v1672_v7 }
  0x1c   :  { %1583 = vmatprep.subr.bf16.mxu0 %v1673_v8  ;;  %1656 = vmatprep.subr.bf16.mxu1 %v1673_v8 }
  0x1f   :  { %1584 = vmatpush3.bf16.msra.mxu0 %v1673_v8  ;;  %1664 = vmatpush3.bf16.msra.mxu1 %v1673_v8 }
  0x22   :  { %1586 = vmatmul.mubr.bf16.vlgmr.msra.gmra.mrb[0].mxu0 %v1675_v10  ;;  %1618 = vmatmul.mubr.bf16.vlgmr.msra.gmra.mrb[0].mxu1 %v1691_v12 }
  0x23   :  { %1589 = vmatprep.mubr.bf16.mxu0 %v1676_v11  ;;  %1621 = vmatprep.mubr.bf16.mxu1 %v1692_v13 }
  0x2a   :  { %1590 = vmatmul.mubr.bf16.gmra.mrb[4].mxu0 %v1677_v14  ;;  %1622 = vmatmul.mubr.bf16.gmra.mrb[4].mxu1 %v1693_v16 }
  0x2b   :  { %1593 = vmatprep.mubr.bf16.mxu0 %v1678_v15  ;;  %1625 = vmatprep.mubr.bf16.mxu1 %v1694_v17 }
  0x32   :  { %1594 = vmatmul.mubr.bf16.gmra.mrb[8].mxu0 %v1679_v18  ;;  %1626 = vmatmul.mubr.bf16.gmra.mrb[8].mxu1 %v1695_v19 }
  0x33   :  { %1597 = vmatprep.mubr.bf16.mxu0 %v1680_v20  ;;  %1629 = vmatprep.mubr.bf16.mxu1 %v1696_v21 }
  0x3a   :  { %1598 = vmatmul.mubr.bf16.gmra.mrb[12].mxu0 %v1681_v22  ;;  %1630 = vmatmul.mubr.bf16.gmra.mrb[12].mxu1 %v1697_v23 }
  0x3b   :  { %1601 = vmatprep.mubr.bf16.mxu0 %v1682_v24  ;;  %1633 = vmatprep.mubr.bf16.mxu1 %v1698_v25 }
  0x42   :  { %1602 = vmatmul.mubr.bf16.gmra.mrb[16].mxu0 %v1683_v26  ;;  %1634 = vmatmul.mubr.bf16.gmra.mrb[16].mxu1 %v1699_v27 }
  0x43   :  { %1605 = vmatprep.mubr.bf16.mxu0 %v1684_v28  ;;  %1637 = vmatprep.mubr.bf16.mxu1 %v1700_v29 }
  0x4a   :  { %1606 = vmatmul.mubr.bf16.gmra.mrb[20].mxu0 %v1685_v30  ;;  %1638 = vmatmul.mubr.bf16.gmra.mrb[20].mxu1 %v1701_v31 }
  0x4b   :  { %1609 = vmatprep.mubr.bf16.mxu0 %v1686_v32  ;;  %1641 = vmatprep.mubr.bf16.mxu1 %v1702_v33 }
  0x52   :  { %1610 = vmatmul.mubr.bf16.gmra.mrb[24].mxu0 %v1687_v34  ;;  %1642 = vmatmul.mubr.bf16.gmra.mrb[24].mxu1 %v1703_v35 }
  0x53   :  { %1613 = vmatprep.mubr.bf16.mxu0 %v1688_v36  ;;  %1645 = vmatprep.mubr.bf16.mxu1 %v1704_v37 }
  0x5a   :  { %1614 = vmatmul.mubr.bf16.gmra.mrb[28].mxu0 %v1689_v38  ;;  %1646 = vmatmul.mubr.bf16.gmra.mrb[28].mxu1 %v1705_v39 }
  0xf5   :  { %v1587_v41 = vpop.f32.mrb[0].mxu0  ;;  %v1858_v42 = vpop.f32.mrb[0].mxu1 }
  0xf6   :  { %v369_v43 = vpop.f32.mrb[1].mxu0  ;;  %v1860_v44 = vpop.f32.mrb[1].mxu1  ;;  %v1025_v56 = vmul.f32 %v1587_v41, %v1587_v41 }
  0xf7   :  { %v1588_v45 = vpop.f32.mrb[2].mxu0  ;;  %v1862_v46 = vpop.f32.mrb[2].mxu1  ;;  %v1023_v47 = vmul.f32 %v369_v43, %v369_v43 }
  0xf8   :  { %v1346_v48 = vpack.c.bf16 %v1588_v45, %v1587_v41  ;;  %v372_v49 = vpop.f32.mrb[3].mxu0  ;;  %v1426_v50 = vpack.c.bf16 %v1862_v46, %v1858_v42  ;;  %v1866_v51 = vpop.f32.mrb[3].mxu1  ;;  %v1026_v59 = vmul.f32 %v1588_v45, %v1588_v45 }
  0xf9   :  { %v1341_v52 = vpack.c.bf16 %v372_v49, %v369_v43  ;;  %v951_v53 = vadd.f32 %v372_v49, %v369_v43  ;;  %v1024_v54 = vmul.f32 %v372_v49, %v372_v49  ;;  %v1421_v55 = vpack.c.bf16 %v1866_v51, %v1860_v44 }
  0xfa   :  { %1498 = vst [vmem:[%s2162_s2 + $0x8] sm:$0xff] %v1346_v48   ;;  %1514 = vst [vmem:[%s2162_s2 + $0x88] sm:$0xff] %v1426_v50  }
  0xfb   :  { %1342 = vst [vmem:[%s2162_s2] sm:$0xff] %v1341_v52   ;;  %v952_v57 = vadd.f32 %v1587_v41, %v951_v53  ;;  %v1087_v58 = vadd.f32 %v1024_v54, %v1023_v47  ;;  %1513 = vst [vmem:[%s2162_s2 + $0x80] sm:$0xff] %v1421_v55  }
  0xfd   :  { %v1088_v60 = vadd.f32 %v1087_v58, %v1025_v56  ;;  %v1591_v61 = vpop.f32.mrb[4].mxu0  ;;  %v953_v62 = vadd.f32 %v1588_v45, %v952_v57  ;;  %v1882_v63 = vpop.f32.mrb[4].mxu1 }
  0xfe   :  { %v385_v0 = vpop.f32.mrb[5].mxu0  ;;  %v1884_v1 = vpop.f32.mrb[5].mxu1  ;;  %v1029_v16 = vmul.f32 %v1591_v61, %v1591_v61 }
  0xff   :  { %v954_v2 = vadd.f32 %v953_v62, %v385_v0  ;;  %v1027_v3 = vmul.f32 %v385_v0, %v385_v0  ;;  %v1089_v4 = vadd.f32 %v1088_v60, %v1026_v59  ;;  %v1592_v5 = vpop.f32.mrb[6].mxu0  ;;  %v1886_v6 = vpop.f32.mrb[6].mxu1 }
 0x100   :  { %v1356_v7 = vpack.c.bf16 %v1592_v5, %v1591_v61  ;;  %v388_v8 = vpop.f32.mrb[7].mxu0  ;;  %v1436_v9 = vpack.c.bf16 %v1886_v6, %v1882_v63  ;;  %v1890_v10 = vpop.f32.mrb[7].mxu1  ;;  %v1030_v19 = vmul.f32 %v1592_v5, %v1592_v5 }
 0x101   :  { %v1090_v11 = vadd.f32 %v1089_v4, %v1027_v3  ;;  %v1351_v12 = vpack.c.bf16 %v388_v8, %v385_v0  ;;  %v955_v13 = vadd.f32 %v954_v2, %v388_v8  ;;  %v1028_v14 = vmul.f32 %v388_v8, %v388_v8 }
 0x102   :  { %1500 = vst [vmem:[%s2162_s2 + $0x18] sm:$0xff] %v1356_v7   ;;  %1516 = vst [vmem:[%s2162_s2 + $0x98] sm:$0xff] %v1436_v9   ;;  %v1431_v15 = vpack.c.bf16 %v1890_v10, %v1884_v1 }
 0x103   :  { %1499 = vst [vmem:[%s2162_s2 + $0x10] sm:$0xff] %v1351_v12   ;;  %v956_v17 = vadd.f32 %v1591_v61, %v955_v13  ;;  %v1091_v18 = vadd.f32 %v1090_v11, %v1028_v14 }
 0x104   :  { %1515 = vst [vmem:[%s2162_s2 + $0x90] sm:$0xff] %v1431_v15  }
 0x105   :  { %v1092_v20 = vadd.f32 %v1091_v18, %v1029_v16  ;;  %v1595_v21 = vpop.f32.mrb[8].mxu0  ;;  %v957_v22 = vadd.f32 %v1592_v5, %v956_v17  ;;  %v1906_v23 = vpop.f32.mrb[8].mxu1 }
 0x106   :  { %v401_v24 = vpop.f32.mrb[9].mxu0  ;;  %v1908_v25 = vpop.f32.mrb[9].mxu1  ;;  %v1033_v40 = vmul.f32 %v1595_v21, %v1595_v21 }
 0x107   :  { %v958_v26 = vadd.f32 %v957_v22, %v401_v24  ;;  %v1031_v27 = vmul.f32 %v401_v24, %v401_v24  ;;  %v1093_v28 = vadd.f32 %v1092_v20, %v1030_v19  ;;  %v1596_v29 = vpop.f32.mrb[10].mxu0  ;;  %v1910_v30 = vpop.f32.mrb[10].mxu1 }
 0x108   :  { %v1366_v31 = vpack.c.bf16 %v1596_v29, %v1595_v21  ;;  %v404_v32 = vpop.f32.mrb[11].mxu0  ;;  %v1446_v33 = vpack.c.bf16 %v1910_v30, %v1906_v23  ;;  %v1914_v34 = vpop.f32.mrb[11].mxu1  ;;  %v1034_v45 = vmul.f32 %v1596_v29, %v1596_v29 }
 0x109   :  { %v1094_v35 = vadd.f32 %v1093_v28, %v1031_v27  ;;  %v1361_v36 = vpack.c.bf16 %v404_v32, %v401_v24  ;;  %v959_v37 = vadd.f32 %v958_v26, %v404_v32  ;;  %v1032_v38 = vmul.f32 %v404_v32, %v404_v32 }
 0x10a   :  { %1502 = vst [vmem:[%s2162_s2 + $0x28] sm:$0xff] %v1366_v31   ;;  %1518 = vst [vmem:[%s2162_s2 + $0xa8] sm:$0xff] %v1446_v33   ;;  %v1441_v39 = vpack.c.bf16 %v1914_v34, %v1908_v25 }
 0x10b   :  { %1501 = vst [vmem:[%s2162_s2 + $0x20] sm:$0xff] %v1361_v36   ;;  %v960_v41 = vadd.f32 %v1595_v21, %v959_v37  ;;  %v1095_v43 = vadd.f32 %v1094_v35, %v1032_v38 }
 0x10c   :  { %1517 = vst [vmem:[%s2162_s2 + $0xa0] sm:$0xff] %v1441_v39  }
 0x10d   :  { %v1096_v47 = vadd.f32 %v1095_v43, %v1033_v40  ;;  %v1599_v48 = vpop.f32.mrb[12].mxu0  ;;  %v961_v49 = vadd.f32 %v1596_v29, %v960_v41  ;;  %v1930_v50 = vpop.f32.mrb[12].mxu1 }
 0x10e   :  { %v417_v52 = vpop.f32.mrb[13].mxu0  ;;  %v1932_v53 = vpop.f32.mrb[13].mxu1  ;;  %v1037_v7 = vmul.f32 %v1599_v48, %v1599_v48 }
 0x10f   :  { %v962_v54 = vadd.f32 %v961_v49, %v417_v52  ;;  %v1035_v55 = vmul.f32 %v417_v52, %v417_v52  ;;  %v1097_v56 = vadd.f32 %v1096_v47, %v1034_v45  ;;  %v1600_v57 = vpop.f32.mrb[14].mxu0  ;;  %v1934_v58 = vpop.f32.mrb[14].mxu1 }
 0x110   :  { %v1376_v59 = vpack.c.bf16 %v1600_v57, %v1599_v48  ;;  %v420_v60 = vpop.f32.mrb[15].mxu0  ;;  %v1456_v61 = vpack.c.bf16 %v1934_v58, %v1930_v50  ;;  %v1938_v62 = vpop.f32.mrb[15].mxu1  ;;  %v1038_v11 = vmul.f32 %v1600_v57, %v1600_v57 }
 0x111   :  { %v1098_v0 = vadd.f32 %v1097_v56, %v1035_v55  ;;  %v1371_v2 = vpack.c.bf16 %v420_v60, %v417_v52  ;;  %v963_v3 = vadd.f32 %v962_v54, %v420_v60  ;;  %v1036_v4 = vmul.f32 %v420_v60, %v420_v60 }
 0x112   :  { %1504 = vst [vmem:[%s2162_s2 + $0x38] sm:$0xff] %v1376_v59   ;;  %1520 = vst [vmem:[%s2162_s2 + $0xb8] sm:$0xff] %v1456_v61   ;;  %v1451_v5 = vpack.c.bf16 %v1938_v62, %v1932_v53 }
 0x113   :  { %1503 = vst [vmem:[%s2162_s2 + $0x30] sm:$0xff] %v1371_v2   ;;  %v964_v8 = vadd.f32 %v1599_v48, %v963_v3  ;;  %v1099_v9 = vadd.f32 %v1098_v0, %v1036_v4 }
 0x114   :  { %1519 = vst [vmem:[%s2162_s2 + $0xb0] sm:$0xff] %v1451_v5  }
 0x115   :  { %v1100_v12 = vadd.f32 %v1099_v9, %v1037_v7  ;;  %v1603_v13 = vpop.f32.mrb[16].mxu0  ;;  %v965_v14 = vadd.f32 %v1600_v57, %v964_v8  ;;  %v1954_v15 = vpop.f32.mrb[16].mxu1 }
 0x116   :  { %v433_v16 = vpop.f32.mrb[17].mxu0  ;;  %v1956_v17 = vpop.f32.mrb[17].mxu1  ;;  %v1041_v36 = vmul.f32 %v1603_v13, %v1603_v13 }
 0x117   :  { %v966_v18 = vadd.f32 %v965_v14, %v433_v16  ;;  %v1039_v19 = vmul.f32 %v433_v16, %v433_v16  ;;  %v1101_v20 = vadd.f32 %v1100_v12, %v1038_v11  ;;  %v1604_v21 = vpop.f32.mrb[18].mxu0  ;;  %v1958_v22 = vpop.f32.mrb[18].mxu1 }
 0x118   :  { %v1386_v24 = vpack.c.bf16 %v1604_v21, %v1603_v13  ;;  %v436_v26 = vpop.f32.mrb[19].mxu0  ;;  %v1466_v27 = vpack.c.bf16 %v1958_v22, %v1954_v15  ;;  %v1962_v28 = vpop.f32.mrb[19].mxu1  ;;  %v1042_v39 = vmul.f32 %v1604_v21, %v1604_v21 }
 0x119   :  { %v1102_v29 = vadd.f32 %v1101_v20, %v1039_v19  ;;  %v1381_v31 = vpack.c.bf16 %v436_v26, %v433_v16  ;;  %v967_v32 = vadd.f32 %v966_v18, %v436_v26  ;;  %v1040_v33 = vmul.f32 %v436_v26, %v436_v26 }
 0x11a   :  { %1506 = vst [vmem:[%s2162_s2 + $0x48] sm:$0xff] %v1386_v24   ;;  %1522 = vst [vmem:[%s2162_s2 + $0xc8] sm:$0xff] %v1466_v27   ;;  %v1461_v35 = vpack.c.bf16 %v1962_v28, %v1956_v17 }
 0x11b   :  { %1505 = vst [vmem:[%s2162_s2 + $0x40] sm:$0xff] %v1381_v31   ;;  %v968_v37 = vadd.f32 %v1603_v13, %v967_v32  ;;  %v1103_v38 = vadd.f32 %v1102_v29, %v1040_v33 }
 0x11c   :  { %1521 = vst [vmem:[%s2162_s2 + $0xc0] sm:$0xff] %v1461_v35  }
 0x11d   :  { %v1104_v40 = vadd.f32 %v1103_v38, %v1041_v36  ;;  %v1607_v41 = vpop.f32.mrb[20].mxu0  ;;  %v969_v43 = vadd.f32 %v1604_v21, %v968_v37  ;;  %v1978_v45 = vpop.f32.mrb[20].mxu1 }
 0x11e   :  { %v449_v47 = vpop.f32.mrb[21].mxu0  ;;  %v1980_v48 = vpop.f32.mrb[21].mxu1  ;;  %v1045_v7 = vmul.f32 %v1607_v41, %v1607_v41 }
 0x11f   :  { %v970_v49 = vadd.f32 %v969_v43, %v449_v47  ;;  %v1043_v52 = vmul.f32 %v449_v47, %v449_v47  ;;  %v1105_v54 = vadd.f32 %v1104_v40, %v1042_v39  ;;  %v1608_v55 = vpop.f32.mrb[22].mxu0  ;;  %v1982_v56 = vpop.f32.mrb[22].mxu1 }
 0x120   :  { %v1396_v57 = vpack.c.bf16 %v1608_v55, %v1607_v41  ;;  %v452_v59 = vpop.f32.mrb[23].mxu0  ;;  %v1476_v60 = vpack.c.bf16 %v1982_v56, %v1978_v45  ;;  %v1986_v61 = vpop.f32.mrb[23].mxu1  ;;  %v1046_v11 = vmul.f32 %v1608_v55, %v1608_v55 }
 0x121   :  { %v1106_v0 = vadd.f32 %v1105_v54, %v1043_v52  ;;  %v1391_v2 = vpack.c.bf16 %v452_v59, %v449_v47  ;;  %v971_v3 = vadd.f32 %v970_v49, %v452_v59  ;;  %v1044_v4 = vmul.f32 %v452_v59, %v452_v59 }
 0x122   :  { %1508 = vst [vmem:[%s2162_s2 + $0x58] sm:$0xff] %v1396_v57   ;;  %1524 = vst [vmem:[%s2162_s2 + $0xd8] sm:$0xff] %v1476_v60   ;;  %v1471_v5 = vpack.c.bf16 %v1986_v61, %v1980_v48 }
 0x123   :  { %1507 = vst [vmem:[%s2162_s2 + $0x50] sm:$0xff] %v1391_v2   ;;  %v972_v8 = vadd.f32 %v1607_v41, %v971_v3  ;;  %v1107_v9 = vadd.f32 %v1106_v0, %v1044_v4 }
 0x124   :  { %1523 = vst [vmem:[%s2162_s2 + $0xd0] sm:$0xff] %v1471_v5  }
 0x125   :  { %v1108_v12 = vadd.f32 %v1107_v9, %v1045_v7  ;;  %v1611_v13 = vpop.f32.mrb[24].mxu0  ;;  %v973_v14 = vadd.f32 %v1608_v55, %v972_v8  ;;  %v2002_v16 = vpop.f32.mrb[24].mxu1 }
 0x126   :  { %v465_v18 = vpop.f32.mrb[25].mxu0  ;;  %v2004_v19 = vpop.f32.mrb[25].mxu1  ;;  %v1049_v40 = vmul.f32 %v1611_v13, %v1611_v13 }
 0x127   :  { %v974_v20 = vadd.f32 %v973_v14, %v465_v18  ;;  %v1047_v21 = vmul.f32 %v465_v18, %v465_v18  ;;  %v1109_v24 = vadd.f32 %v1108_v12, %v1046_v11  ;;  %v1612_v26 = vpop.f32.mrb[26].mxu0  ;;  %v2006_v27 = vpop.f32.mrb[26].mxu1 }
 0x128   :  { %v1406_v29 = vpack.c.bf16 %v1612_v26, %v1611_v13  ;;  %v468_v31 = vpop.f32.mrb[27].mxu0  ;;  %v1486_v32 = vpack.c.bf16 %v2006_v27, %v2002_v16  ;;  %v2010_v33 = vpop.f32.mrb[27].mxu1  ;;  %v1050_v47 = vmul.f32 %v1612_v26, %v1612_v26 }
 0x129   :  { %v1110_v35 = vadd.f32 %v1109_v24, %v1047_v21  ;;  %v1401_v36 = vpack.c.bf16 %v468_v31, %v465_v18  ;;  %v975_v37 = vadd.f32 %v974_v20, %v468_v31  ;;  %v1048_v38 = vmul.f32 %v468_v31, %v468_v31 }
 0x12a   :  { %1510 = vst [vmem:[%s2162_s2 + $0x68] sm:$0xff] %v1406_v29   ;;  %1526 = vst [vmem:[%s2162_s2 + $0xe8] sm:$0xff] %v1486_v32   ;;  %v1481_v39 = vpack.c.bf16 %v2010_v33, %v2004_v19  ;;  %v1055_v32 = vmul.f32 %v1860_v44, %v1860_v44 }
 0x12b   :  { %1509 = vst [vmem:[%s2162_s2 + $0x60] sm:$0xff] %v1401_v36   ;;  %v976_v41 = vadd.f32 %v1611_v13, %v975_v37  ;;  %v1111_v43 = vadd.f32 %v1110_v35, %v1048_v38 }
 0x12c   :  { %1525 = vst [vmem:[%s2162_s2 + $0xe0] sm:$0xff] %v1481_v39   ;;  %v1056_v39 = vmul.f32 %v1866_v51, %v1866_v51 }
 0x12d   :  { %v1112_v49 = vadd.f32 %v1111_v43, %v1049_v40  ;;  %v1615_v52 = vpop.f32.mrb[28].mxu0  ;;  %v977_v54 = vadd.f32 %v1612_v26, %v976_v41  ;;  %v2026_v55 = vpop.f32.mrb[28].mxu1  ;;  %v1057_v40 = vmul.f32 %v1858_v42, %v1858_v42 }
 0x12e   :  { %v481_v57 = vpop.f32.mrb[29].mxu0  ;;  %v2028_v59 = vpop.f32.mrb[29].mxu1  ;;  %v1053_v20 = vmul.f32 %v1615_v52, %v1615_v52 }
 0x12f   :  { %v978_v60 = vadd.f32 %v977_v54, %v481_v57  ;;  %v1051_v0 = vmul.f32 %v481_v57, %v481_v57  ;;  %v1113_v2 = vadd.f32 %v1112_v49, %v1050_v47  ;;  %v1616_v3 = vpop.f32.mrb[30].mxu0  ;;  %v2030_v4 = vpop.f32.mrb[30].mxu1  ;;  %v1058_v47 = vmul.f32 %v1862_v46, %v1862_v46 }
 0x130   :  { %v1416_v5 = vpack.c.bf16 %v1616_v3, %v1615_v52  ;;  %v484_v7 = vpop.f32.mrb[31].mxu0  ;;  %v1496_v8 = vpack.c.bf16 %v2030_v4, %v2026_v55  ;;  %v2034_v9 = vpop.f32.mrb[31].mxu1  ;;  %v1054_v26 = vmul.f32 %v1616_v3, %v1616_v3 }
 0x131   :  { %v1114_v11 = vadd.f32 %v1113_v2, %v1051_v0  ;;  %v1411_v12 = vpack.c.bf16 %v484_v7, %v481_v57  ;;  %v979_v13 = vadd.f32 %v978_v60, %v484_v7  ;;  %v1052_v14 = vmul.f32 %v484_v7, %v484_v7 }
 0x132   :  { %1512 = vst [vmem:[%s2162_s2 + $0x78] sm:$0xff] %v1416_v5   ;;  %1528 = vst [vmem:[%s2162_s2 + $0xf8] sm:$0xff] %v1496_v8   ;;  %v1491_v18 = vpack.c.bf16 %v2034_v9, %v2028_v59  ;;  %v1060_v0 = vmul.f32 %v1890_v10, %v1890_v10 }
 0x133   :  { %1511 = vst [vmem:[%s2162_s2 + $0x70] sm:$0xff] %v1411_v12   ;;  %v980_v21 = vadd.f32 %v1615_v52, %v979_v13  ;;  %v1115_v24 = vadd.f32 %v1114_v11, %v1052_v14  ;;  %v1064_v13 = vmul.f32 %v1914_v34, %v1914_v34 }
 0x134   :  { %1527 = vst [vmem:[%s2162_s2 + $0xf0] sm:$0xff] %v1491_v18  }
 0x135   :  { %v1116_v29 = vadd.f32 %v1115_v24, %v1053_v20  ;;  %v981_v31 = vadd.f32 %v1616_v3, %v980_v21 }
 0x137   :  { %v982_v35 = vadd.f32 %v981_v31, %v1860_v44  ;;  %v1117_v36 = vadd.f32 %v1116_v29, %v1054_v26  ;;  %v1059_v44 = vmul.f32 %v1884_v1, %v1884_v1  ;;  %v1068_v31 = vmul.f32 %v1938_v62, %v1938_v62 }
 0x139   :  { %v1118_v37 = vadd.f32 %v1117_v36, %v1055_v32  ;;  %v983_v38 = vadd.f32 %v982_v35, %v1866_v51 }
 0x13b   :  { %v984_v41 = vadd.f32 %v1858_v42, %v983_v38  ;;  %v1119_v43 = vadd.f32 %v1118_v37, %v1056_v39  ;;  %v1061_v42 = vmul.f32 %v1882_v63, %v1882_v63 }
 0x13d   :  { %v1120_v49 = vadd.f32 %v1119_v43, %v1057_v40  ;;  %v985_v52 = vadd.f32 %v1862_v46, %v984_v41  ;;  %v1062_v46 = vmul.f32 %v1886_v6, %v1886_v6  ;;  %v1072_v41 = vmul.f32 %v1962_v28, %v1962_v28 }
 0x13f   :  { %v986_v54 = vadd.f32 %v985_v52, %v1884_v1  ;;  %v1121_v57 = vadd.f32 %v1120_v49, %v1058_v47  ;;  %v1063_v1 = vmul.f32 %v1908_v25, %v1908_v25 }
 0x141   :  { %v1122_v60 = vadd.f32 %v1121_v57, %v1059_v44  ;;  %v987_v51 = vadd.f32 %v986_v54, %v1890_v10 }
 0x143   :  { %v988_v2 = vadd.f32 %v1882_v63, %v987_v51  ;;  %v1123_v3 = vadd.f32 %v1122_v60, %v1060_v0  ;;  %v1065_v63 = vmul.f32 %v1906_v23, %v1906_v23  ;;  %v1076_v60 = vmul.f32 %v1986_v61, %v1986_v61 }
 0x145   :  { %v1124_v5 = vadd.f32 %v1123_v3, %v1061_v42  ;;  %v989_v7 = vadd.f32 %v1886_v6, %v988_v2  ;;  %v1066_v6 = vmul.f32 %v1910_v30, %v1910_v30 }
 0x147   :  { %v990_v8 = vadd.f32 %v989_v7, %v1908_v25  ;;  %v1125_v11 = vadd.f32 %v1124_v5, %v1062_v46  ;;  %v1067_v25 = vmul.f32 %v1932_v53, %v1932_v53  ;;  %v1080_v7 = vmul.f32 %v2010_v33, %v2010_v33 }
 0x149   :  { %v1126_v12 = vadd.f32 %v1125_v11, %v1063_v1  ;;  %v991_v10 = vadd.f32 %v990_v8, %v1914_v34 }
 0x14b   :  { %v992_v14 = vadd.f32 %v1906_v23, %v991_v10  ;;  %v1127_v18 = vadd.f32 %v1126_v12, %v1064_v13  ;;  %v1069_v23 = vmul.f32 %v1930_v50, %v1930_v50 }
 0x14d   :  { %v1128_v20 = vadd.f32 %v1127_v18, %v1065_v63  ;;  %v993_v21 = vadd.f32 %v1910_v30, %v992_v14  ;;  %v1070_v30 = vmul.f32 %v1934_v58, %v1934_v58  ;;  %v1084_v14 = vmul.f32 %v2034_v9, %v2034_v9 }
 0x14f   :  { %v994_v24 = vadd.f32 %v993_v21, %v1932_v53  ;;  %v1129_v26 = vadd.f32 %v1128_v20, %v1066_v6  ;;  %v1071_v53 = vmul.f32 %v1956_v17, %v1956_v17 }
 0x151   :  { %v1130_v29 = vadd.f32 %v1129_v26, %v1067_v25  ;;  %v995_v34 = vadd.f32 %v994_v24, %v1938_v62 }
 0x153   :  { %v996_v32 = vadd.f32 %v1930_v50, %v995_v34  ;;  %v1131_v35 = vadd.f32 %v1130_v29, %v1068_v31  ;;  %v1073_v50 = vmul.f32 %v1954_v15, %v1954_v15 }
 0x155   :  { %v1132_v36 = vadd.f32 %v1131_v35, %v1069_v23  ;;  %v997_v37 = vadd.f32 %v1934_v58, %v996_v32  ;;  %v1074_v58 = vmul.f32 %v1958_v22, %v1958_v22 }
 0x157   :  { %v998_v38 = vadd.f32 %v997_v37, %v1956_v17  ;;  %v1133_v39 = vadd.f32 %v1132_v36, %v1070_v30  ;;  %v1075_v17 = vmul.f32 %v1980_v48, %v1980_v48 }
 0x159   :  { %v1134_v40 = vadd.f32 %v1133_v39, %v1071_v53  ;;  %v999_v62 = vadd.f32 %v998_v38, %v1962_v28 }
 0x15b   :  { %v1000_v43 = vadd.f32 %v1954_v15, %v999_v62  ;;  %v1135_v47 = vadd.f32 %v1134_v40, %v1072_v41  ;;  %v1077_v15 = vmul.f32 %v1978_v45, %v1978_v45 }
 0x15d   :  { %v1136_v49 = vadd.f32 %v1135_v47, %v1073_v50  ;;  %v1001_v52 = vadd.f32 %v1958_v22, %v1000_v43  ;;  %v1078_v22 = vmul.f32 %v1982_v56, %v1982_v56 }
 0x15f   :  { %v1002_v44 = vadd.f32 %v1001_v52, %v1980_v48  ;;  %v1137_v54 = vadd.f32 %v1136_v49, %v1074_v58  ;;  %v1079_v48 = vmul.f32 %v2004_v19, %v2004_v19 }
 0x161   :  { %v1138_v57 = vadd.f32 %v1137_v54, %v1075_v17  ;;  %v1003_v28 = vadd.f32 %v1002_v44, %v1986_v61 }
 0x163   :  { %v1004_v51 = vadd.f32 %v1978_v45, %v1003_v28  ;;  %v1139_v0 = vadd.f32 %v1138_v57, %v1076_v60  ;;  %v1081_v45 = vmul.f32 %v2002_v16, %v2002_v16 }
 0x165   :  { %v1140_v42 = vadd.f32 %v1139_v0, %v1077_v15  ;;  %v1005_v2 = vadd.f32 %v1982_v56, %v1004_v51  ;;  %v1082_v56 = vmul.f32 %v2006_v27, %v2006_v27 }
 0x167   :  { %v1006_v3 = vadd.f32 %v1005_v2, %v2004_v19  ;;  %v1141_v46 = vadd.f32 %v1140_v42, %v1078_v22  ;;  %v1083_v19 = vmul.f32 %v2028_v59, %v2028_v59 }
 0x169   :  { %v1142_v5 = vadd.f32 %v1141_v46, %v1079_v48  ;;  %v1007_v61 = vadd.f32 %v1006_v3, %v2010_v33 }
 0x16b   :  { %v1008_v1 = vadd.f32 %v2002_v16, %v1007_v61  ;;  %v1143_v8 = vadd.f32 %v1142_v5, %v1080_v7  ;;  %v1085_v16 = vmul.f32 %v2026_v55, %v2026_v55 }
 0x16d   :  { %v1144_v11 = vadd.f32 %v1143_v8, %v1081_v45  ;;  %v1009_v12 = vadd.f32 %v2006_v27, %v1008_v1  ;;  %v1086_v27 = vmul.f32 %v2030_v4, %v2030_v4 }
 0x16f   :  { %v1010_v10 = vadd.f32 %v1009_v12, %v2028_v59  ;;  %v1145_v13 = vadd.f32 %v1144_v11, %v1082_v56 }
 0x171   :  { %v1146_v63 = vadd.f32 %v1145_v13, %v1083_v19  ;;  %v1011_v33 = vadd.f32 %v1010_v10, %v2034_v9 }
 0x173   :  { %v1012_v18 = vadd.f32 %v2026_v55, %v1011_v33  ;;  %v1147_v6 = vadd.f32 %v1146_v63, %v1084_v14  ;;  %v950_v55 = vld [vmem:[%s2160_s3] sm:$0x1] }
 0x175   :  { %v1013_v20 = vadd.f32 %v2030_v4, %v1012_v18  ;;  %v1148_v21 = vadd.f32 %v1147_v6, %v1085_v16  ;;  %v1022_v4 = vld [vmem:[%s2161_s4] sm:$0x1] }
 0x177   :  { %v1014_v59 = vrot.slane %v1013_v20, 4  ;;  %v1149_v25 = vadd.f32 %v1148_v21, %v1086_v27 }
 0x179   :  { %v1015_v24 = vadd.f32 %v1014_v59, %v1013_v20  ;;  %v1150_v26 = vrot.slane %v1149_v25, 4 }
 0x17b   :  { %v1016_v29 = vrot.slane %v1015_v24, 2  ;;  %v1151_v34 = vadd.f32 %v1150_v26, %v1149_v25 }
 0x17d   :  { %v1017_v31 = vadd.f32 %v1016_v29, %v1015_v24  ;;  %v1152_v9 = vrot.slane %v1151_v34, 2 }
 0x17f   :  { %v1018_v23 = vrot.slane %v1017_v31, 1  ;;  %v1153_v32 = vadd.f32 %v1152_v9, %v1151_v34 }
 0x181   :  { %v1019_v35 = vadd.f32 %v1018_v23, %v1017_v31  ;;  %v1154_v30 = vrot.slane %v1153_v32, 1 }
 0x183   :  { %v1020_v36 = vadd.f32 %v1019_v35, %v950_v55  ;;  %v1155_v37 = vadd.f32 %v1154_v30, %v1153_v32 }
 0x185   :  { %1021 = vst [vmem:[%s2160_s3] sm:$0x1] %v1020_v36  ;;  %v1156_v53 = vadd.f32 %v1155_v37, %v1022_v4 }
 0x187   :  { %1157 = vst [vmem:[%s2161_s4] sm:$0x1] %v1156_v53 }

// kernel: res_block50_forward.8
= control target key start
LH: loop header
LB: loop body
LE: loop exit
PB: predicated region body
PF: predicated region fallthrough
CT: control target
= control target key end

     0   :  { %v578_v16 = vmov 0.0   ;;  %s694_s1 = inlined_call_operand.vmem [shape: bf16[128,128], index: 1, kind: input, shape index: {}]   ;;  %s695_s0 = inlined_call_operand.vmem [shape: bf16[128,128], index: 0, kind: input, shape index: {}]   ;;  %s696_s3 = inlined_call_operand.vmem [shape: f32[1,128], index: 3, kind: output, shape index: {1}]   ;;  %s697_s4 = inlined_call_operand.vmem [shape: f32[1,128], index: 4, kind: output, shape index: {2}]   ;;  %s698_s2 = inlined_call_operand.vmem [shape: bf16[128,128], index: 2, kind: output, shape index: {0}]  }
   0x1   :  { %v562_v0 = vld [vmem:[%s694_s1] sm:$0xff]   ;;  %v563_v1 = vld [vmem:[%s694_s1 + $0x8] sm:$0xff]   ;;  %v564_v2 = vld [vmem:[%s694_s1 + $0x10] sm:$0xff]   ;;  %324 = vst [vmem:[%s696_s3] sm:$0x1] %v578_v16 }
   0x2   :  { %513 = vmatprep.subr.bf16.mxu0 %v562_v0  ;;  %545 = vmatprep.subr.bf16.mxu1 %v562_v0  ;;  %v565_v3 = vld [vmem:[%s694_s1 + $0x18] sm:$0xff]   ;;  %v570_v4 = vld [vmem:[%s695_s0] sm:$0xff]   ;;  %v567_v7 = vld [vmem:[%s694_s1 + $0x28] sm:$0xff]   ;;  %325 = vst [vmem:[%s697_s4] sm:$0x1] %v578_v16 }
   0x3   :  { %514 = vmatpush3.bf16.msra.mxu0 %v562_v0  ;;  %553 = vmatpush3.bf16.msra.mxu1 %v562_v0  ;;  %v566_v5 = vld [vmem:[%s694_s1 + $0x20] sm:$0xff]   ;;  %v568_v8 = vld [vmem:[%s694_s1 + $0x30] sm:$0xff]   ;;  %v569_v9 = vld [vmem:[%s694_s1 + $0x38] sm:$0xff]  }
   0x4   :  { %515 = vmatprep.subr.bf16.mxu0 %v563_v1  ;;  %546 = vmatprep.subr.bf16.mxu1 %v563_v1  ;;  %v574_v6 = vld [vmem:[%s695_s0 + $0x20] sm:$0xff]   ;;  %v571_v10 = vld [vmem:[%s695_s0 + $0x8] sm:$0xff]   ;;  %v572_v12 = vld [vmem:[%s695_s0 + $0x10] sm:$0xff]  }
   0x5   :  { %529 = vmatprep.mubr.bf16.mxu0 %v570_v4  ;;  %537 = vmatprep.mubr.bf16.mxu1 %v574_v6  ;;  %v575_v11 = vld [vmem:[%s695_s0 + $0x28] sm:$0xff]   ;;  %v576_v13 = vld [vmem:[%s695_s0 + $0x30] sm:$0xff]   ;;  %v573_v14 = vld [vmem:[%s695_s0 + $0x18] sm:$0xff]  }
   0x6   :  { %v577_v15 = vld [vmem:[%s695_s0 + $0x38] sm:$0xff]  }
   0x7   :  { %516 = vmatpush3.bf16.msra.mxu0 %v563_v1  ;;  %554 = vmatpush3.bf16.msra.mxu1 %v563_v1 }
   0x8   :  { %517 = vmatprep.subr.bf16.mxu0 %v564_v2  ;;  %547 = vmatprep.subr.bf16.mxu1 %v564_v2 }
   0xb   :  { %518 = vmatpush3.bf16.msra.mxu0 %v564_v2  ;;  %555 = vmatpush3.bf16.msra.mxu1 %v564_v2 }
   0xc   :  { %519 = vmatprep.subr.bf16.mxu0 %v565_v3  ;;  %548 = vmatprep.subr.bf16.mxu1 %v565_v3 }
   0xf   :  { %520 = vmatpush3.bf16.msra.mxu0 %v565_v3  ;;  %556 = vmatpush3.bf16.msra.mxu1 %v565_v3 }
  0x10   :  { %521 = vmatprep.subr.bf16.mxu0 %v566_v5  ;;  %549 = vmatprep.subr.bf16.mxu1 %v566_v5 }
  0x13   :  { %522 = vmatpush3.bf16.msra.mxu0 %v566_v5  ;;  %557 = vmatpush3.bf16.msra.mxu1 %v566_v5 }
  0x14   :  { %523 = vmatprep.subr.bf16.mxu0 %v567_v7  ;;  %550 = vmatprep.subr.bf16.mxu1 %v567_v7 }
  0x17   :  { %524 = vmatpush3.bf16.msra.mxu0 %v567_v7  ;;  %558 = vmatpush3.bf16.msra.mxu1 %v567_v7 }
  0x18   :  { %525 = vmatprep.subr.bf16.mxu0 %v568_v8  ;;  %551 = vmatprep.subr.bf16.mxu1 %v568_v8 }
  0x1b   :  { %526 = vmatpush3.bf16.msra.mxu0 %v568_v8  ;;  %559 = vmatpush3.bf16.msra.mxu1 %v568_v8 }
  0x1c   :  { %527 = vmatprep.subr.bf16.mxu0 %v569_v9  ;;  %552 = vmatprep.subr.bf16.mxu1 %v569_v9 }
  0x1f   :  { %528 = vmatpush3.bf16.msra.mxu0 %v569_v9  ;;  %560 = vmatpush3.bf16.msra.mxu1 %v569_v9 }
  0x22   :  { %530 = vmatmul.mubr.bf16.vlgmr.msra.gmra.mrb[0].mxu0 %v571_v10  ;;  %538 = vmatmul.mubr.bf16.vlgmr.msra.gmra.mrb[0].mxu1 %v575_v11 }
  0x23   :  { %533 = vmatprep.mubr.bf16.mxu0 %v572_v12  ;;  %541 = vmatprep.mubr.bf16.mxu1 %v576_v13 }
  0x2a   :  { %534 = vmatmul.mubr.bf16.gmra.mrb[4].mxu0 %v573_v14  ;;  %542 = vmatmul.mubr.bf16.gmra.mrb[4].mxu1 %v577_v15 }
  0xf5   :  { %v531_v17 = vpop.f32.mrb[0].mxu0  ;;  %v539_v18 = vpop.f32.mrb[0].mxu1 }
  0xf6   :  { %v177_v19 = vpop.f32.mrb[1].mxu0  ;;  %v209_v20 = vpop.f32.mrb[1].mxu1  ;;  %v353_v32 = vmul.f32 %v531_v17, %v531_v17  ;;  %v361_v4 = vmul.f32 %v539_v18, %v539_v18 }
  0xf7   :  { %v532_v21 = vpop.f32.mrb[2].mxu0  ;;  %v540_v22 = vpop.f32.mrb[2].mxu1  ;;  %v351_v23 = vmul.f32 %v177_v19, %v177_v19  ;;  %v359_v62 = vmul.f32 %v209_v20, %v209_v20 }
  0xf8   :  { %v458_v24 = vpack.c.bf16 %v532_v21, %v531_v17  ;;  %v180_v25 = vpop.f32.mrb[3].mxu0  ;;  %v478_v26 = vpack.c.bf16 %v540_v22, %v539_v18  ;;  %v212_v27 = vpop.f32.mrb[3].mxu1  ;;  %v354_v35 = vmul.f32 %v532_v21, %v532_v21  ;;  %v362_v7 = vmul.f32 %v540_v22, %v540_v22 }
  0xf9   :  { %v453_v28 = vpack.c.bf16 %v180_v25, %v177_v19  ;;  %v327_v29 = vadd.f32 %v180_v25, %v177_v19  ;;  %v352_v30 = vmul.f32 %v180_v25, %v180_v25  ;;  %v473_v31 = vpack.c.bf16 %v212_v27, %v209_v20 }
  0xfa   :  { %490 = vst [vmem:[%s698_s2 + $0x8] sm:$0xff] %v458_v24   ;;  %494 = vst [vmem:[%s698_s2 + $0x28] sm:$0xff] %v478_v26   ;;  %v360_v3 = vmul.f32 %v212_v27, %v212_v27 }
  0xfb   :  { %454 = vst [vmem:[%s698_s2] sm:$0xff] %v453_v28   ;;  %v328_v33 = vadd.f32 %v531_v17, %v327_v29  ;;  %v367_v34 = vadd.f32 %v352_v30, %v351_v23  ;;  %493 = vst [vmem:[%s698_s2 + $0x20] sm:$0xff] %v473_v31  }
  0xfd   :  { %v368_v36 = vadd.f32 %v367_v34, %v353_v32  ;;  %v535_v37 = vpop.f32.mrb[4].mxu0  ;;  %v329_v38 = vadd.f32 %v532_v21, %v328_v33  ;;  %v543_v39 = vpop.f32.mrb[4].mxu1  ;;  %v326_v32 = vld [vmem:[%s696_s3] sm:$0x1] }
  0xfe   :  { %v193_v40 = vpop.f32.mrb[5].mxu0  ;;  %v225_v41 = vpop.f32.mrb[5].mxu1  ;;  %v357_v56 = vmul.f32 %v535_v37, %v535_v37  ;;  %v365_v16 = vmul.f32 %v543_v39, %v543_v39 }
  0xff   :  { %v330_v42 = vadd.f32 %v329_v38, %v193_v40  ;;  %v355_v43 = vmul.f32 %v193_v40, %v193_v40  ;;  %v369_v44 = vadd.f32 %v368_v36, %v354_v35  ;;  %v536_v45 = vpop.f32.mrb[6].mxu0  ;;  %v544_v46 = vpop.f32.mrb[6].mxu1  ;;  %v363_v10 = vmul.f32 %v225_v41, %v225_v41  ;;  %v350_v35 = vld [vmem:[%s697_s4] sm:$0x1] }
 0x100   :  { %v468_v47 = vpack.c.bf16 %v536_v45, %v535_v37  ;;  %v196_v48 = vpop.f32.mrb[7].mxu0  ;;  %v488_v49 = vpack.c.bf16 %v544_v46, %v543_v39  ;;  %v228_v50 = vpop.f32.mrb[7].mxu1  ;;  %v358_v59 = vmul.f32 %v536_v45, %v536_v45 }
 0x101   :  { %v370_v51 = vadd.f32 %v369_v44, %v355_v43  ;;  %v463_v52 = vpack.c.bf16 %v196_v48, %v193_v40  ;;  %v331_v53 = vadd.f32 %v330_v42, %v196_v48  ;;  %v356_v54 = vmul.f32 %v196_v48, %v196_v48 }
 0x102   :  { %492 = vst [vmem:[%s698_s2 + $0x18] sm:$0xff] %v468_v47   ;;  %496 = vst [vmem:[%s698_s2 + $0x38] sm:$0xff] %v488_v49   ;;  %v483_v55 = vpack.c.bf16 %v228_v50, %v225_v41  ;;  %v364_v15 = vmul.f32 %v228_v50, %v228_v50 }
 0x103   :  { %491 = vst [vmem:[%s698_s2 + $0x10] sm:$0xff] %v463_v52   ;;  %v332_v57 = vadd.f32 %v535_v37, %v331_v53  ;;  %v371_v58 = vadd.f32 %v370_v51, %v356_v54 }
 0x104   :  { %495 = vst [vmem:[%s698_s2 + $0x30] sm:$0xff] %v483_v55  }
 0x105   :  { %v372_v60 = vadd.f32 %v371_v58, %v357_v56  ;;  %v333_v61 = vadd.f32 %v536_v45, %v332_v57 }
 0x107   :  { %v334_v63 = vadd.f32 %v333_v61, %v209_v20  ;;  %v373_v0 = vadd.f32 %v372_v60, %v358_v59  ;;  %v366_v20 = vmul.f32 %v544_v46, %v544_v46 }
 0x109   :  { %v374_v1 = vadd.f32 %v373_v0, %v359_v62  ;;  %v335_v2 = vadd.f32 %v334_v63, %v212_v27 }
 0x10b   :  { %v336_v5 = vadd.f32 %v539_v18, %v335_v2  ;;  %v375_v6 = vadd.f32 %v374_v1, %v360_v3 }
 0x10d   :  { %v376_v8 = vadd.f32 %v375_v6, %v361_v4  ;;  %v337_v9 = vadd.f32 %v540_v22, %v336_v5 }
 0x10f   :  { %v338_v11 = vadd.f32 %v337_v9, %v225_v41  ;;  %v377_v12 = vadd.f32 %v376_v8, %v362_v7 }
 0x111   :  { %v378_v13 = vadd.f32 %v377_v12, %v363_v10  ;;  %v339_v14 = vadd.f32 %v338_v11, %v228_v50 }
 0x113   :  { %v340_v17 = vadd.f32 %v543_v39, %v339_v14  ;;  %v379_v19 = vadd.f32 %v378_v13, %v364_v15 }
 0x115   :  { %v341_v21 = vadd.f32 %v544_v46, %v340_v17  ;;  %v380_v23 = vadd.f32 %v379_v19, %v365_v16 }
 0x117   :  { %v342_v24 = vrot.slane %v341_v21, 4  ;;  %v381_v25 = vadd.f32 %v380_v23, %v366_v20 }
 0x119   :  { %v343_v26 = vadd.f32 %v342_v24, %v341_v21  ;;  %v382_v18 = vrot.slane %v381_v25, 4 }
 0x11b   :  { %v344_v27 = vrot.slane %v343_v26, 2  ;;  %v383_v28 = vadd.f32 %v382_v18, %v381_v25 }
 0x11d   :  { %v345_v29 = vadd.f32 %v344_v27, %v343_v26  ;;  %v384_v22 = vrot.slane %v383_v28, 2 }
 0x11f   :  { %v346_v30 = vrot.slane %v345_v29, 1  ;;  %v385_v31 = vadd.f32 %v384_v22, %v383_v28 }
 0x121   :  { %v347_v33 = vadd.f32 %v346_v30, %v345_v29  ;;  %v386_v34 = vrot.slane %v385_v31, 1 }
 0x123   :  { %v348_v36 = vadd.f32 %v347_v33, %v326_v32  ;;  %v387_v37 = vadd.f32 %v386_v34, %v385_v31 }
 0x125   :  { %349 = vst [vmem:[%s696_s3] sm:$0x1] %v348_v36  ;;  %v388_v38 = vadd.f32 %v387_v37, %v350_v35 }
 0x127   :  { %389 = vst [vmem:[%s697_s4] sm:$0x1] %v388_v38 }

// kernel: res_block50_forward.9
= control target key start
LH: loop header
LB: loop body
LE: loop exit
PB: predicated region body
PF: predicated region fallthrough
CT: control target
= control target key end

     0   :  { %s647_s0 = inlined_call_operand.vmem [shape: bf16[128,128], index: 0, kind: input, shape index: {}]   ;;  %s648_s1 = inlined_call_operand.vmem [shape: bf16[128,128], index: 1, kind: input, shape index: {}]   ;;  %s649_s2 = inlined_call_operand.vmem [shape: f32[1,128], index: 2, kind: input, shape index: {}]   ;;  %s650_s3 = inlined_call_operand.vmem [shape: f32[1,128], index: 3, kind: input, shape index: {}]   ;;  %s651_s4 = inlined_call_operand.vmem [shape: f32[1,128], index: 4, kind: input, shape index: {}]   ;;  %s652_s5 = inlined_call_operand.vmem [shape: f32[1,128], index: 5, kind: input, shape index: {}]   ;;  %s653_s6 = inlined_call_operand.vmem [shape: bf16[128,128], index: 6, kind: output, shape index: {}]  }
   0x1   :  { %v332_v0 = vld [vmem:[%s647_s0] sm:$0xff]   ;;  %v435_v9 = vld [vmem:[%s647_s0 + $0x8] sm:$0xff]   ;;  %v436_v20 = vld [vmem:[%s647_s0 + $0x10] sm:$0xff]  }
   0x2   :  { %v497_v1 = vld [vmem:[%s649_s2] ss:$0 sm:$0xff]  ;;  %v333_v2 = vunpack.c.l.bf16 %v332_v0  ;;  %v334_v3 = vunpack.c.h.bf16 %v332_v0  ;;  %v442_v10 = vld [vmem:[%s648_s1 + $0x8] sm:$0xff]   ;;  %v337_v14 = vunpack.c.l.bf16 %v435_v9  ;;  %v338_v15 = vunpack.c.h.bf16 %v435_v9  ;;  %v443_v29 = vld [vmem:[%s648_s1 + $0x10] sm:$0xff]  }
   0x3   :  { %v364_v4 = vld [vmem:[%s648_s1] sm:$0xff]   ;;  %v369_v18 = vunpack.c.l.bf16 %v442_v10  ;;  %v370_v19 = vunpack.c.h.bf16 %v442_v10  ;;  %v341_v32 = vunpack.c.l.bf16 %v436_v20  ;;  %v342_v33 = vunpack.c.h.bf16 %v436_v20  ;;  %v437_v42 = vld [vmem:[%s647_s0 + $0x18] sm:$0xff]  }
   0x4   :  { %v505_v5 = vld [vmem:[%s651_s4] ss:$0 sm:$0xff]  ;;  %v365_v7 = vunpack.c.l.bf16 %v364_v4  ;;  %v366_v8 = vunpack.c.h.bf16 %v364_v4  ;;  %v62_v11 = vmul.f32 %v333_v2, %v497_v1  ;;  %v63_v12 = vmul.f32 %v334_v3, %v497_v1  ;;  %v444_v47 = vld [vmem:[%s648_s1 + $0x18] sm:$0xff]  }
   0x5   :  { %v510_v6 = vld [vmem:[%s650_s3] ss:$0 sm:$0xff]  ;;  %v64_v23 = vmul.f32 %v337_v14, %v497_v1  ;;  %v65_v24 = vmul.f32 %v338_v15, %v497_v1  ;;  %v142_v27 = vmul.f32 %v369_v18, %v505_v5  ;;  %v143_v28 = vmul.f32 %v370_v19, %v505_v5  ;;  %v439_v14 = vld [vmem:[%s647_s0 + $0x28] sm:$0xff]  }
   0x6   :  { %v523_v13 = vld [vmem:[%s652_s5] ss:$0 sm:$0xff]  ;;  %v140_v16 = vmul.f32 %v365_v7, %v505_v5  ;;  %v141_v17 = vmul.f32 %v366_v8, %v505_v5  ;;  %v85_v21 = vadd.f32 %v510_v6, %v62_v11  ;;  %v86_v22 = vadd.f32 %v510_v6, %v63_v12 }
   0x7   :  { %v87_v30 = vadd.f32 %v510_v6, %v64_v23  ;;  %v88_v31 = vadd.f32 %v510_v6, %v65_v24  ;;  %v165_v36 = vadd.f32 %v523_v13, %v142_v27  ;;  %v166_v37 = vadd.f32 %v523_v13, %v143_v28  ;;  %v438_v52 = vld [vmem:[%s647_s0 + $0x20] sm:$0xff]   ;;  %v446_v23 = vld [vmem:[%s648_s1 + $0x28] sm:$0xff]  }
   0x8   :  { %v163_v25 = vadd.f32 %v523_v13, %v140_v16  ;;  %v164_v26 = vadd.f32 %v523_v13, %v141_v17  ;;  %v66_v38 = vmul.f32 %v341_v32, %v497_v1  ;;  %v67_v39 = vmul.f32 %v342_v33, %v497_v1  ;;  %v445_v8 = vld [vmem:[%s648_s1 + $0x20] sm:$0xff]   ;;  %v440_v32 = vld [vmem:[%s647_s0 + $0x30] sm:$0xff]  }
   0x9   :  { %v373_v40 = vunpack.c.l.bf16 %v443_v29  ;;  %v374_v41 = vunpack.c.h.bf16 %v443_v29  ;;  %v181_v45 = vadd.f32 %v165_v36, %v87_v30  ;;  %v182_v46 = vadd.f32 %v166_v37, %v88_v31 }
   0xa   :  { %v179_v34 = vadd.f32 %v163_v25, %v85_v21  ;;  %v180_v35 = vadd.f32 %v164_v26, %v86_v22  ;;  %v89_v48 = vadd.f32 %v510_v6, %v66_v38  ;;  %v90_v49 = vadd.f32 %v510_v6, %v67_v39 }
   0xb   :  { %v144_v50 = vmul.f32 %v373_v40, %v505_v5  ;;  %v145_v51 = vmul.f32 %v374_v41, %v505_v5  ;;  %v197_v54 = vmax.f32 %v181_v45, 0.0  ;;  %v198_v55 = vmax.f32 %v182_v46, 0.0  ;;  %v447_v45 = vld [vmem:[%s648_s1 + $0x30] sm:$0xff]  }
   0xc   :  { %v195_v43 = vmax.f32 %v179_v34, 0.0  ;;  %v196_v44 = vmax.f32 %v180_v35, 0.0  ;;  %v345_v56 = vunpack.c.l.bf16 %v437_v42  ;;  %v346_v59 = vunpack.c.h.bf16 %v437_v42 }
   0xd   :  { %v167_v57 = vadd.f32 %v523_v13, %v144_v50  ;;  %v168_v58 = vadd.f32 %v523_v13, %v145_v51  ;;  %v377_v60 = vunpack.c.l.bf16 %v444_v47  ;;  %v403_v61 = vpack.c.bf16 %v198_v55, %v197_v54  ;;  %v441_v54 = vld [vmem:[%s647_s0 + $0x38] sm:$0xff]  }
   0xe   :  { %v398_v53 = vpack.c.bf16 %v196_v44, %v195_v43  ;;  %v68_v62 = vmul.f32 %v345_v56, %v497_v1  ;;  %v378_v63 = vunpack.c.h.bf16 %v444_v47  ;;  %v349_v0 = vunpack.c.l.bf16 %v438_v52 }
   0xf   :  { %v183_v2 = vadd.f32 %v167_v57, %v89_v48  ;;  %v184_v3 = vadd.f32 %v168_v58, %v90_v49  ;;  %v69_v4 = vmul.f32 %v346_v59, %v497_v1  ;;  %v146_v7 = vmul.f32 %v377_v60, %v505_v5  ;;  %449 = vst [vmem:[%s653_s6 + $0x8] sm:$0xff] %v403_v61  }
  0x10   :  { %399 = vst [vmem:[%s653_s6] sm:$0xff] %v398_v53   ;;  %v91_v9 = vadd.f32 %v510_v6, %v68_v62  ;;  %v147_v10 = vmul.f32 %v378_v63, %v505_v5  ;;  %v350_v11 = vunpack.c.h.bf16 %v438_v52  ;;  %v70_v12 = vmul.f32 %v349_v0, %v497_v1 }
  0x11   :  { %v199_v15 = vmax.f32 %v183_v2, 0.0  ;;  %v200_v16 = vmax.f32 %v184_v3, 0.0  ;;  %v92_v17 = vadd.f32 %v510_v6, %v69_v4  ;;  %v169_v18 = vadd.f32 %v523_v13, %v146_v7  ;;  %v448_v4 = vld [vmem:[%s648_s1 + $0x38] sm:$0xff]  }
  0x12   :  { %v170_v19 = vadd.f32 %v523_v13, %v147_v10  ;;  %v71_v20 = vmul.f32 %v350_v11, %v497_v1  ;;  %v93_v21 = vadd.f32 %v510_v6, %v70_v12  ;;  %v381_v22 = vunpack.c.l.bf16 %v445_v8 }
  0x13   :  { %v408_v24 = vpack.c.bf16 %v200_v16, %v199_v15  ;;  %v185_v25 = vadd.f32 %v169_v18, %v91_v9  ;;  %v382_v26 = vunpack.c.h.bf16 %v445_v8  ;;  %v353_v27 = vunpack.c.l.bf16 %v439_v14 }
  0x14   :  { %v186_v28 = vadd.f32 %v170_v19, %v92_v17  ;;  %v94_v29 = vadd.f32 %v510_v6, %v71_v20  ;;  %v148_v30 = vmul.f32 %v381_v22, %v505_v5  ;;  %v354_v31 = vunpack.c.h.bf16 %v439_v14 }
  0x15   :  { %450 = vst [vmem:[%s653_s6 + $0x10] sm:$0xff] %v408_v24   ;;  %v201_v33 = vmax.f32 %v185_v25, 0.0  ;;  %v149_v34 = vmul.f32 %v382_v26, %v505_v5  ;;  %v72_v35 = vmul.f32 %v353_v27, %v497_v1  ;;  %v385_v36 = vunpack.c.l.bf16 %v446_v23 }
  0x16   :  { %v202_v37 = vmax.f32 %v186_v28, 0.0  ;;  %v171_v38 = vadd.f32 %v523_v13, %v148_v30  ;;  %v73_v39 = vmul.f32 %v354_v31, %v497_v1  ;;  %v386_v40 = vunpack.c.h.bf16 %v446_v23 }
  0x17   :  { %v172_v41 = vadd.f32 %v523_v13, %v149_v34  ;;  %v95_v42 = vadd.f32 %v510_v6, %v72_v35  ;;  %v150_v43 = vmul.f32 %v385_v36, %v505_v5  ;;  %v357_v44 = vunpack.c.l.bf16 %v440_v32 }
  0x18   :  { %v413_v46 = vpack.c.bf16 %v202_v37, %v201_v33  ;;  %v187_v47 = vadd.f32 %v171_v38, %v93_v21  ;;  %v96_v48 = vadd.f32 %v510_v6, %v73_v39  ;;  %v151_v49 = vmul.f32 %v386_v40, %v505_v5 }
  0x19   :  { %v188_v50 = vadd.f32 %v172_v41, %v94_v29  ;;  %v173_v51 = vadd.f32 %v523_v13, %v150_v43  ;;  %v358_v52 = vunpack.c.h.bf16 %v440_v32  ;;  %v74_v53 = vmul.f32 %v357_v44, %v497_v1 }
  0x1a   :  { %451 = vst [vmem:[%s653_s6 + $0x18] sm:$0xff] %v413_v46   ;;  %v203_v55 = vmax.f32 %v187_v47, 0.0  ;;  %v174_v56 = vadd.f32 %v523_v13, %v151_v49  ;;  %v389_v57 = vunpack.c.l.bf16 %v447_v45  ;;  %v390_v58 = vunpack.c.h.bf16 %v447_v45 }
  0x1b   :  { %v204_v59 = vmax.f32 %v188_v50, 0.0  ;;  %v189_v60 = vadd.f32 %v173_v51, %v95_v42  ;;  %v75_v61 = vmul.f32 %v358_v52, %v497_v1  ;;  %v97_v62 = vadd.f32 %v510_v6, %v74_v53 }
  0x1c   :  { %v190_v63 = vadd.f32 %v174_v56, %v96_v48  ;;  %v152_v0 = vmul.f32 %v389_v57, %v505_v5  ;;  %v153_v2 = vmul.f32 %v390_v58, %v505_v5  ;;  %v361_v3 = vunpack.c.l.bf16 %v441_v54 }
  0x1d   :  { %v418_v7 = vpack.c.bf16 %v204_v59, %v203_v55  ;;  %v205_v8 = vmax.f32 %v189_v60, 0.0  ;;  %v98_v9 = vadd.f32 %v510_v6, %v75_v61  ;;  %v362_v10 = vunpack.c.h.bf16 %v441_v54 }
  0x1e   :  { %v206_v11 = vmax.f32 %v190_v63, 0.0  ;;  %v175_v12 = vadd.f32 %v523_v13, %v152_v0  ;;  %v176_v14 = vadd.f32 %v523_v13, %v153_v2  ;;  %v76_v15 = vmul.f32 %v361_v3, %v497_v1 }
  0x1f   :  { %452 = vst [vmem:[%s653_s6 + $0x20] sm:$0xff] %v418_v7   ;;  %v77_v16 = vmul.f32 %v362_v10, %v497_v1  ;;  %v393_v17 = vunpack.c.l.bf16 %v448_v4  ;;  %v394_v18 = vunpack.c.h.bf16 %v448_v4 }
  0x20   :  { %v423_v19 = vpack.c.bf16 %v206_v11, %v205_v8  ;;  %v191_v20 = vadd.f32 %v175_v12, %v97_v62  ;;  %v192_v21 = vadd.f32 %v176_v14, %v98_v9  ;;  %v99_v22 = vadd.f32 %v510_v6, %v76_v15 }
  0x21   :  { %v100_v23 = vadd.f32 %v510_v6, %v77_v16  ;;  %v154_v24 = vmul.f32 %v393_v17, %v505_v5  ;;  %v155_v25 = vmul.f32 %v394_v18, %v505_v5 }
  0x22   :  { %453 = vst [vmem:[%s653_s6 + $0x28] sm:$0xff] %v423_v19   ;;  %v207_v26 = vmax.f32 %v191_v20, 0.0  ;;  %v208_v27 = vmax.f32 %v192_v21, 0.0 }
  0x23   :  { %v177_v1 = vadd.f32 %v523_v13, %v154_v24  ;;  %v178_v28 = vadd.f32 %v523_v13, %v155_v25 }
  0x24   :  { %v428_v29 = vpack.c.bf16 %v208_v27, %v207_v26 }
  0x25   :  { %v193_v30 = vadd.f32 %v177_v1, %v99_v22  ;;  %v194_v31 = vadd.f32 %v178_v28, %v100_v23 }
  0x26   :  { %454 = vst [vmem:[%s653_s6 + $0x30] sm:$0xff] %v428_v29  }
  0x27   :  { %v209_v6 = vmax.f32 %v193_v30, 0.0  ;;  %v210_v32 = vmax.f32 %v194_v31, 0.0 }
  0x29   :  { %v433_v5 = vpack.c.bf16 %v210_v32, %v209_v6 }
  0x2b   :  { %455 = vst [vmem:[%s653_s6 + $0x38] sm:$0xff] %v433_v5  }

// kernel: res_block50_forward.6
= control target key start
LH: loop header
LB: loop body
LE: loop exit
PB: predicated region body
PF: predicated region fallthrough
CT: control target
= control target key end

     0   :  { %s4512_s24 = smov 0   ;;  %s5541_s0 = inlined_call_operand.vmem [shape: bf16[2,16,8,128], index: 0, kind: input, shape index: {}]   ;;  %s5542_s1 = inlined_call_operand.vmem [shape: bf16[2,16,8,128], index: 1, kind: input, shape index: {}]   ;;  %s5543_s2 = inlined_call_operand.vmem [shape: bf16[9,128,128], index: 2, kind: input, shape index: {}]   ;;  %s5544_s3 = inlined_call_operand.vmem [shape: f32[1,128], index: 3, kind: input, shape index: {}]   ;;  %s5545_s4 = inlined_call_operand.vmem [shape: f32[1,128], index: 4, kind: input, shape index: {}]   ;;  %s5546_s5 = inlined_call_operand.vmem [shape: bf16[2,64,128], index: 5, kind: output, shape index: {0}]   ;;  %s5547_s6 = inlined_call_operand.vmem [shape: f32[1,128], index: 6, kind: output, shape index: {1}]   ;;  %s5548_s7 = inlined_call_operand.vmem [shape: f32[1,128], index: 7, kind: output, shape index: {2}]  }
   0x1 LB: > { %s4518_s25 = sadd.s32 4294967295, %s4468_s24   ;;  %p3527_p0 = scmp.ge.s32.totalorder %s4468_s24, 1  ;;  %s4468_s24 = sphi %s4512_s24, %s18_s24  }
   0x2   : > { %p242_p1 = scmp.lt.s32.totalorder %s4468_s24, 3 }
   0x4   : > { %p243_p2 = pnand %p3527_p0, %p242_p1 }
   0x5   : > { %v4525_v0 = vld [vmem:[%s5543_s2 + $0x40] sm:$0xff] (!%p243_p2)   ;;  %v4536_v2 = vld [vmem:[%s5543_s2 + $0x48] sm:$0xff] (!%p243_p2)   ;;  %p279_p3 = scmp.lt.s32.totalorder (!%p243_p2), %s4518_s25, 1  ;;  %v4470_v3 = vmov (!%p243_p2), 0   ;;  %v4377_v5 = vld [vmem:[%s5543_s2 + $0x50] sm:$0xff] (!%p243_p2)   ;;  %vm686_vm0 = vcmask (!%p243_p2), 1043456  }
   0x6   : > { %246 = sbr.rel (%p243_p2) target bundleno = 517 (0x205), region = 40  ;;  %v4530_v1 = vld [vmem:[%s5543_s2 + $0x100] sm:$0xff] (!%p243_p2)   ;;  %4067 = vmatprep.subr.bf16.mxu1 (!%p243_p2), %v4525_v0  ;;  %297 = vst [vmem:[#allocation2] sm:$0xf] (!%p243_p2), %v4470_v3  ;;  %298 = vst [vmem:[#allocation2 + $0x4] sm:$0x1] (!%p243_p2), %v4470_v3 }
   0x7   : > { %301 = vst [vmem:[#allocation2 + $0x10] sm:$0xf] (!%p243_p2), %v4470_v3  ;;  %302 = vst [vmem:[#allocation2 + $0x14] sm:$0x1] (!%p243_p2), %v4470_v3  ;;  %4163 = vmatprep.subr.bf16.mxu0 (!%p243_p2), %v4530_v1  ;;  %4068 = vmatpush3.bf16.msra.mxu1 (!%p243_p2), %v4525_v0  ;;  %v4376_v4 = vld [vmem:[%s5543_s2 + $0x108] sm:$0xff] (!%p243_p2)   ;;  %v4378_v6 = vld [vmem:[%s5543_s2 + $0x110] sm:$0xff] (!%p243_p2)  }
   0x8   : > { %299 = vst [vmem:[#allocation2 + $0x8] sm:$0xf] (!%p243_p2), %v4470_v3  ;;  %300 = vst [vmem:[#allocation2 + $0xc] sm:$0x1] (!%p243_p2), %v4470_v3  ;;  %4164 = vmatpush3.bf16.msra.mxu0 (!%p243_p2), %v4530_v1  ;;  %4069 = vmatprep.subr.bf16.mxu1 (!%p243_p2), %v4536_v2  ;;  %v4379_v7 = vld [vmem:[%s5543_s2 + $0x58] sm:$0xff] (!%p243_p2)   ;;  %v4381_v9 = vld [vmem:[%s5543_s2 + $0x60] sm:$0xff] (!%p243_p2)  }
   0x9   : > { %303 = vst [vmem:[#allocation2 + $0x18] sm:$0xf] (!%p243_p2), %v4470_v3  ;;  %304 = vst [vmem:[#allocation2 + $0x1c] sm:$0x1] (!%p243_p2), %v4470_v3  ;;  %4165 = vmatprep.subr.bf16.mxu0 (!%p243_p2), %v4376_v4  ;;  %v4380_v8 = vld [vmem:[%s5543_s2 + $0x118] sm:$0xff] (!%p243_p2)   ;;  %v4382_v10 = vld [vmem:[%s5543_s2 + $0x120] sm:$0xff] (!%p243_p2)  }
   0xa   : > { %305 = vst [vmem:[#allocation2 + $0x20] sm:$0xf] (!%p243_p2), %v4470_v3  ;;  %306 = vst [vmem:[#allocation2 + $0x24] sm:$0x1] (!%p243_p2), %v4470_v3  ;;  %v4383_v11 = vld [vmem:[%s5543_s2 + $0x68] sm:$0xff] (!%p243_p2)   ;;  %vm692_vm2 = vcmask (!%p243_p2), 1040384  }
   0xb   : > { %307 = vst [vmem:[#allocation2 + $0x28] sm:$0xf] (!%p243_p2), %v4470_v3  ;;  %308 = vst [vmem:[#allocation2 + $0x2c] sm:$0x1] (!%p243_p2), %v4470_v3  ;;  %4070 = vmatpush3.bf16.msra.mxu1 (!%p243_p2), %v4536_v2  ;;  %v4652_v12 = vld [vmem:[%s5544_s3] ss:$0 sm:$0xff] (!%p243_p2) }
   0xc   : > { %309 = vst [vmem:[#allocation2 + $0x30] sm:$0xf] (!%p243_p2), %v4470_v3  ;;  %310 = vst [vmem:[#allocation2 + $0x34] sm:$0x1] (!%p243_p2), %v4470_v3  ;;  %4166 = vmatpush3.bf16.msra.mxu0 (!%p243_p2), %v4376_v4  ;;  %4071 = vmatprep.subr.bf16.mxu1 (!%p243_p2), %v4377_v5  ;;  %v4384_v14 = vld [vmem:[%s5543_s2 + $0x128] sm:$0xff] (!%p243_p2)   ;;  %v4385_v23 = vld [vmem:[%s5543_s2 + $0x70] sm:$0xff] (!%p243_p2)  }
   0xd   : > { %311 = vst [vmem:[#allocation2 + $0x38] sm:$0xf] %v4470_v3  ;;  %312 = vst [vmem:[#allocation2 + $0x3c] sm:$0x1] %v4470_v3  ;;  %s4623_s15 = scalar_select %p279_p3, %s4518_s25, 1  ;;  %4167 = vmatprep.subr.bf16.mxu0 %v4378_v6  ;;  %v4386_v26 = vld [vmem:[%s5543_s2 + $0x130] sm:$0xff]  }
   0xe   : > { %313 = vst [vmem:[#allocation2 + $0x40] sm:$0xf] %v4470_v3  ;;  %314 = vst [vmem:[#allocation2 + $0x44] sm:$0x1] %v4470_v3  ;;  %v4661_v17 = vld [vmem:[%s5545_s4] ss:$0 sm:$0xff] }
   0xf   : > { %315 = vst [vmem:[#allocation2 + $0x48] sm:$0xf] %v4470_v3  ;;  %316 = vst [vmem:[#allocation2 + $0x4c] sm:$0x1] %v4470_v3  ;;  %s3815_s20 = sshll.u32 %s4623_s15, 6  ;;  %4072 = vmatpush3.bf16.msra.mxu1 %v4377_v5  ;;  %v4387_v34 = vld [vmem:[%s5543_s2 + $0x78] sm:$0xff]  }
  0x10   : > { %317 = vst [vmem:[#allocation2 + $0x50] sm:$0xf] %v4470_v3  ;;  %318 = vst [vmem:[#allocation2 + $0x54] sm:$0x1] %v4470_v3  ;;  %4168 = vmatpush3.bf16.msra.mxu0 %v4378_v6  ;;  %4073 = vmatprep.subr.bf16.mxu1 %v4379_v7  ;;  %s4644_s29 = scalar_lea.vmem %s5541_s0, %s3815_s20  ;;  %vm687_vm1 = vsmask.f32 7938  ;;  %s4859_s27 = scalar_lea.vmem %s5542_s1, %s3815_s20 }
  0x11   : > { %319 = vst [vmem:[#allocation2 + $0x58] sm:$0xf] %v4470_v3  ;;  %320 = vst [vmem:[#allocation2 + $0x5c] sm:$0x1] %v4470_v3  ;;  %4169 = vmatprep.subr.bf16.mxu0 %v4380_v8  ;;  %v3859_v13 = vld [vmem:[%s4644_s29] sm:$0xff]   ;;  %v3942_v30 = vld [vmem:[%s4644_s29 + $0x8] sm:$0xff]  }
  0x12   : > { %321 = vst [vmem:[#allocation2 + $0x60] sm:$0xf] %v4470_v3  ;;  %322 = vst [vmem:[#allocation2 + $0x64] sm:$0x1] %v4470_v3  ;;  %v3861_v15 = vunpack.c.h.bf16 %v3859_v13  ;;  %v3860_v16 = vunpack.c.l.bf16 %v3859_v13  ;;  %v1189_v18 = vld [vmem:[#allocation2] sm:$0xf]  ;;  %v3864_v31 = vunpack.c.l.bf16 %v3942_v30  ;;  %v3865_v32 = vunpack.c.h.bf16 %v3942_v30 }
  0x13   : > { %323 = vst [vmem:[#allocation2 + $0x68] sm:$0xf] %v4470_v3  ;;  %324 = vst [vmem:[#allocation2 + $0x6c] sm:$0x1] %v4470_v3  ;;  %4074 = vmatpush3.bf16.msra.mxu1 %v4379_v7  ;;  %v1190_v20 = vld [vmem:[#allocation2 + $0x4] sm:$0x1] }
  0x14   : > { %325 = vst [vmem:[#allocation2 + $0x70] sm:$0xf] %v4470_v3  ;;  %326 = vst [vmem:[#allocation2 + $0x74] sm:$0x1] %v4470_v3  ;;  %4170 = vmatpush3.bf16.msra.mxu0 %v4380_v8  ;;  %4075 = vmatprep.subr.bf16.mxu1 %v4381_v9  ;;  %v408_v19 = vmul.f32 %v3861_v15, %v4652_v12  ;;  %vm1238_vm3 = vsmask.f32 3328  ;;  %v407_v25 = vmul.f32 %v3860_v16, %v4652_v12 }
  0x15   : > { %327 = vst [vmem:[#allocation2 + $0x78] sm:$0xf] %v4470_v3  ;;  %328 = vst [vmem:[#allocation2 + $0x7c] sm:$0x1] %v4470_v3  ;;  %4171 = vmatprep.subr.bf16.mxu0 %v4382_v10  ;;  %v1242_v21 = vshrl.u32 %v1189_v18, 16  ;;  %v1245_v22 = vshll.u32 %v1189_v18, 16  ;;  %v409_v40 = vmul.f32 %v3864_v31, %v4652_v12  ;;  %v410_v43 = vmul.f32 %v3865_v32, %v4652_v12 }
  0x16   : > { %329 = vst [vmem:[#allocation2 + $0x80] sm:$0xf] %v4470_v3  ;;  %330 = vst [vmem:[#allocation2 + $0x84] sm:$0x1] %v4470_v3  ;;  %v1251_v24 = vshll.u32 %v1190_v20, 16  ;;  %v430_v27 = vadd.f32 %v4661_v17, %v408_v19  ;;  %v429_v33 = vadd.f32 %v4661_v17, %v407_v25  ;;  %v3943_v38 = vld [vmem:[%s4644_s29 + $0x10] sm:$0xff]  }
  0x17   : > { %333 = vst [vmem:[#allocation2 + $0x90] sm:$0xf] %v4470_v3  ;;  %334 = vst [vmem:[#allocation2 + $0x94] sm:$0x1] %v4470_v3  ;;  %4076 = vmatpush3.bf16.msra.mxu1 %v4381_v9  ;;  %vm1239_vm4 = vsmask.f32 7440  ;;  %v3869_v42 = vunpack.c.h.bf16 %v3943_v38  ;;  %v3868_v48 = vunpack.c.l.bf16 %v3943_v38  ;;  %v431_v50 = vadd.f32 %v4661_v17, %v409_v40 }
  0x18   : > { %335 = vst [vmem:[#allocation2 + $0x98] sm:$0xf] %v4470_v3  ;;  %336 = vst [vmem:[#allocation2 + $0x9c] sm:$0x1] %v4470_v3  ;;  %4172 = vmatpush3.bf16.msra.mxu0 %v4382_v10  ;;  %4077 = vmatprep.subr.bf16.mxu1 %v4383_v11  ;;  %v1244_v28 = vrot.slane %v1242_v21, 4  ;;  %v1247_v29 = vrot.slane %v1245_v22, 5  ;;  %v432_v53 = vadd.f32 %v4661_v17, %v410_v43 }
  0x19   : > { %337 = vst [vmem:[#allocation2 + $0xa0] sm:$0xf] %v4470_v3  ;;  %338 = vst [vmem:[#allocation2 + $0xa4] sm:$0x1] %v4470_v3  ;;  %4173 = vmatprep.subr.bf16.mxu0 %v4384_v14  ;;  %vm693_vm5 = vsmask.f32 256  ;;  %v412_v52 = vmul.f32 %v3869_v42, %v4652_v12  ;;  %v411_v58 = vmul.f32 %v3868_v48, %v4652_v12 }
  0x1a   : > { %339 = vst [vmem:[#allocation2 + $0xa8] sm:$0xf] %v4470_v3  ;;  %340 = vst [vmem:[#allocation2 + $0xac] sm:$0x1] %v4470_v3  ;;  %v446_v35 = vmax.f32 %v430_v27, 0.0  ;;  %v1248_v36 = vor.u32 %v1247_v29, %v1244_v28  ;;  %v4677_v37 = vrot.slane %v1251_v24, 5 }
  0x1b   : > { %341 = vst [vmem:[#allocation2 + $0xb0] sm:$0xf] %v4470_v3  ;;  %342 = vst [vmem:[#allocation2 + $0xb4] sm:$0x1] %v4470_v3  ;;  %4078 = vmatpush3.bf16.msra.mxu1 %v4383_v11  ;;  %v445_v41 = vmax.f32 %v429_v33, 0.0  ;;  %v4689_v44 = vld [vmem:[%s4644_s29 + $0x18] sm:$0xff]   ;;  %v434_v1 = vadd.f32 %v4661_v17, %v412_v52  ;;  %v433_v8 = vadd.f32 %v4661_v17, %v411_v58 }
  0x1c   : > { %343 = vst [vmem:[#allocation2 + $0xb8] sm:$0xf] %v4470_v3  ;;  %344 = vst [vmem:[#allocation2 + $0xbc] sm:$0x1] %v4470_v3  ;;  %4174 = vmatpush3.bf16.msra.mxu0 %v4384_v14  ;;  %4079 = vmatprep.subr.bf16.mxu1 %v4385_v23  ;;  %v4388_v45 = vld [vmem:[%s5543_s2 + $0x138] sm:$0xff]   ;;  %v3819_v46 = vpack.c.bf16 %v446_v35, %v446_v35  ;;  %v4694_v47 = vrot.slane %v1248_v36, 4  ;;  %v3872_v49 = vunpack.c.l.bf16 %v4689_v44  ;;  %v3873_v14 = vunpack.c.h.bf16 %v4689_v44 }
  0x1d   : > { %345 = vst [vmem:[#allocation2 + $0xc0] sm:$0xf] %v4470_v3  ;;  %346 = vst [vmem:[#allocation2 + $0xc4] sm:$0x1] %v4470_v3  ;;  %4175 = vmatprep.subr.bf16.mxu0 %v4386_v26  ;;  %v3818_v51 = vpack.c.bf16 %v445_v41, %v445_v41  ;;  %v4707_v57 = vld [vmem:[%s5543_s2] sm:$0xff]   ;;  %v447_v61 = vmax.f32 %v431_v50, 0.0 }
  0x1e   : > { %347 = vst [vmem:[#allocation2 + $0xc8] sm:$0xf] %v4470_v3  ;;  %348 = vst [vmem:[#allocation2 + $0xcc] sm:$0x1] %v4470_v3  ;;  %v534_v54 = vshrl.u32 %v3819_v46, 16  ;;  %v537_v55 = vshll.u32 %v3819_v46, 16  ;;  %v413_v7 = vmul.f32 %v3872_v49, %v4652_v12  ;;  %v414_v46 = vmul.f32 %v3873_v14, %v4652_v12 }
  0x1f   : > { %349 = vst [vmem:[#allocation2 + $0xd0] sm:$0xf] %v4470_v3  ;;  %350 = vst [vmem:[#allocation2 + $0xd4] sm:$0x1] %v4470_v3  ;;  %4080 = vmatpush3.bf16.msra.mxu1 %v4385_v23  ;;  %v698_v59 = vld [vmem:[#allocation2 + $0x10] sm:$0xf]  ;;  %v3820_v10 = vpack.c.bf16 %v447_v61, %v447_v61 }
  0x20   : > { %351 = vst [vmem:[#allocation2 + $0xd8] sm:$0xf] %v4470_v3  ;;  %352 = vst [vmem:[#allocation2 + $0xdc] sm:$0x1] %v4470_v3  ;;  %4176 = vmatpush3.bf16.msra.mxu0 %v4386_v26  ;;  %4081 = vmatprep.subr.bf16.mxu1 %v4387_v34  ;;  %v701_v60 = vld [vmem:[#allocation2 + $0x14] sm:$0x1]  ;;  %v435_v19 = vadd.f32 %v4661_v17, %v413_v7  ;;  %v4748_v58 = vadd.f32 %v4661_v17, %v414_v46 }
  0x21   : > { %353 = vst [vmem:[#allocation2 + $0xe0] sm:$0xf] %v4470_v3  ;;  %354 = vst [vmem:[#allocation2 + $0xe4] sm:$0x1] %v4470_v3  ;;  %v526_v62 = vshrl.u32 %v3818_v51, 16  ;;  %v529_v63 = vshll.u32 %v3818_v51, 16  ;;  %4177 = vmatprep.subr.bf16.mxu0 %v4388_v45 }
  0x22   : > { %355 = vst [vmem:[#allocation2 + $0xe8] sm:$0xf] %v4470_v3  ;;  %356 = vst [vmem:[#allocation2 + $0xec] sm:$0x1] %v4470_v3  ;;  %v4713_v0 = vld [vmem:[%s5543_s2 + $0x140] sm:$0xff]   ;;  %v536_v2 = vrot.slane %v534_v54, 7 }
  0x23   : > { %357 = vst [vmem:[#allocation2 + $0xf0] sm:$0xf] %v4470_v3  ;;  %358 = vst [vmem:[#allocation2 + $0xf4] sm:$0x1] %v4470_v3  ;;  %v689_v4 = vld [vmem:[#allocation2 + $0x8] sm:$0xf]  ;;  %4082 = vmatpush3.bf16.msra.mxu1 %v4387_v34 }
  0x24   : > { %359 = vst [vmem:[#allocation2 + $0xf8] sm:$0xf] %v4470_v3  ;;  %360 = vst [vmem:[#allocation2 + $0xfc] sm:$0x1] %v4470_v3  ;;  %v695_v5 = vld [vmem:[#allocation2 + $0xc] sm:$0x1]  ;;  %v539_v15 = vor.u32 %v537_v55, %v536_v2  ;;  %4178 = vmatpush3.bf16.msra.mxu0 %v4388_v45  ;;  %4091 = vmatprep.subr.bf16.mxu1 %v4707_v57 }
  0x25   : > { %361 = vst [vmem:[#allocation2 + $0x100] sm:$0xf] %v4470_v3  ;;  %362 = vst [vmem:[#allocation2 + $0x104] sm:$0x1] %v4470_v3  ;;  %v448_v6 = vmax.f32 %v432_v53, 0.0  ;;  %v528_v11 = vrot.slane %v526_v62, 7  ;;  %4187 = vmatprep.subr.bf16.mxu0 %v4713_v0 }
  0x26   : > { %363 = vst [vmem:[#allocation2 + $0x108] sm:$0xf] %v4470_v3  ;;  %364 = vst [vmem:[#allocation2 + $0x10c] sm:$0x1] %v4470_v3  ;;  %v450_v13 = vmax.f32 %v434_v1, 0.0  ;;  %v540_v16 = vrot.slane %v536_v2, 4 }
  0x27   : > { %365 = vst [vmem:[#allocation2 + $0x110] sm:$0xf] %v4470_v3  ;;  %366 = vst [vmem:[#allocation2 + $0x114] sm:$0x1] %v4470_v3  ;;  %v3821_v18 = vpack.c.bf16 %v448_v6, %v448_v6  ;;  %v531_v20 = vor.u32 %v529_v63, %v528_v11  ;;  %v532_v21 = vrot.slane %v528_v11, 4  ;;  %v542_v22 = vshrl.u32 %v3820_v10, 16 }
  0x28   : > { %vm4682_vm6 = vmor %vm1238_vm3, %vm1239_vm4  ;;  %v545_v23 = vshll.u32 %v3820_v10, 16  ;;  %v704_v26 = vld [vmem:[#allocation2 + $0x18] sm:$0xf]  ;;  %v707_v27 = vld [vmem:[#allocation2 + $0x1c] sm:$0x1]  ;;  %v3823_v28 = vpack.c.bf16 %v450_v13, %v450_v13  ;;  %v449_v41 = vmax.f32 %v433_v8, 0.0 }
  0x29   : > { %v1254_v56 = vsel %vm4682_vm6, %v4694_v47, %v4677_v37  ;;  %vm4718_vm7 = vmand %vm686_vm0, %vm687_vm1  ;;  %v550_v29 = vshrl.u32 %v3821_v18, 16  ;;  %v544_v30 = vrot.slane %v542_v22, 7  ;;  %v553_v33 = vshll.u32 %v3821_v18, 16  ;;  %v710_v34 = vld [vmem:[#allocation2 + $0x20] sm:$0xf]  ;;  %v4780_v47 = vld [vmem:[%s4644_s29 + $0x28] sm:$0xff]  }
  0x2a   : > { %vm4726_vm8 = vmand %vm692_vm2, %vm693_vm5  ;;  %v699_v24 = vsel %vm4718_vm7, %v539_v15, %v698_v59  ;;  %v690_v31 = vsel %vm4718_vm7, %v531_v20, %v689_v4  ;;  %v566_v36 = vshrl.u32 %v3823_v28, 16  ;;  %v569_v38 = vshll.u32 %v3823_v28, 16  ;;  %v713_v40 = vld [vmem:[#allocation2 + $0x24] sm:$0x1]  ;;  %v722_v44 = vld [vmem:[#allocation2 + $0x30] sm:$0xf] }
  0x2b   : > { %v702_v25 = vsel %vm4726_vm8, %v540_v16, %v701_v60  ;;  %700 = vst [vmem:[#allocation2 + $0x10] sm:$0xf] %v699_v24  ;;  %v696_v32 = vsel %vm4726_vm8, %v532_v21, %v695_v5  ;;  %691 = vst [vmem:[#allocation2 + $0x8] sm:$0xf] %v690_v31  ;;  %v552_v35 = vrot.slane %v550_v29, 7  ;;  %v547_v42 = vor.u32 %v545_v23, %v544_v30  ;;  %v4755_v5 = vld [vmem:[%s4644_s29 + $0x20] sm:$0xff]  }
  0x2c   : > { %703 = vst [vmem:[#allocation2 + $0x14] sm:$0x1] %v702_v25  ;;  %697 = vst [vmem:[#allocation2 + $0xc] sm:$0x1] %v696_v32  ;;  %v548_v43 = vrot.slane %v544_v30, 4  ;;  %v451_v45 = vmax.f32 %v435_v19, 0.0  ;;  %v3822_v51 = vpack.c.bf16 %v449_v41, %v449_v41  ;;  %v3877_v11 = vunpack.c.h.bf16 %v4755_v5 }
  0x2d   : > { %v555_v48 = vor.u32 %v553_v33, %v552_v35  ;;  %v556_v49 = vrot.slane %v552_v35, 4  ;;  %v568_v50 = vrot.slane %v566_v36, 7  ;;  %v705_v52 = vsel %vm4718_vm7, %v547_v42, %v704_v26  ;;  %v725_v54 = vld [vmem:[#allocation2 + $0x34] sm:$0x1]  ;;  %v716_v33 = vld [vmem:[#allocation2 + $0x28] sm:$0xf] }
  0x2e   : > { %v708_v53 = vsel %vm4726_vm8, %v548_v43, %v707_v27  ;;  %v3824_v55 = vpack.c.bf16 %v451_v45, %v451_v45  ;;  %706 = vst [vmem:[#allocation2 + $0x18] sm:$0xf] %v705_v52  ;;  %v558_v63 = vshrl.u32 %v3822_v51, 16  ;;  %v561_v1 = vshll.u32 %v3822_v51, 16  ;;  %s3817_s13 = sshll.u32 %s4623_s15, 5  ;;  %p3812_p4 = scmp.ne.s32.totalorder %s4518_s25, 0 }
  0x2f   : > { %709 = vst [vmem:[#allocation2 + $0x1c] sm:$0x1] %v708_v53  ;;  %v571_v59 = vor.u32 %v569_v38, %v568_v50  ;;  %v572_v60 = vrot.slane %v568_v50, 4  ;;  %v711_v61 = vsel %vm4718_vm7, %v555_v48, %v710_v34  ;;  %v714_v62 = vsel %vm4726_vm8, %v556_v49, %v713_v40  ;;  %v719_v53 = vld [vmem:[#allocation2 + $0x2c] sm:$0x1]  ;;  %s293_s16 = scalar_lea.vmem %s5546_s5, %s3817_s13 }
  0x30   : > { %712 = vst [vmem:[#allocation2 + $0x20] sm:$0xf] %v711_v61  ;;  %715 = vst [vmem:[#allocation2 + $0x24] sm:$0x1] %v714_v62  ;;  %v574_v2 = vshrl.u32 %v3824_v55, 16  ;;  %v577_v4 = vshll.u32 %v3824_v55, 16  ;;  %v416_v24 = vmul.f32 %v3877_v11, %v4652_v12 }
  0x31   : > { %v723_v8 = vsel %vm4718_vm7, %v571_v59, %v722_v44  ;;  %v726_v10 = vsel %vm4726_vm8, %v572_v60, %v725_v54  ;;  %v452_v13 = vmax.f32 %v4748_v58, 0.0  ;;  %v560_v19 = vrot.slane %v558_v63, 7  ;;  %v728_v54 = vld [vmem:[#allocation2 + $0x38] sm:$0xf] }
  0x32   : > { %v1191_v6 = vld [vmem:[#allocation2 + $0x10] sm:$0xf]  ;;  %v1902_v18 = vld [vmem:[#allocation2 + $0x8] sm:$0xf]  ;;  %724 = vst [vmem:[#allocation2 + $0x30] sm:$0xf] %v723_v8 }
  0x33   : > { %v1192_v7 = vld [vmem:[#allocation2 + $0x14] sm:$0x1]  ;;  %v1256_v14 = vshrl.u32 %v1191_v6, 16  ;;  %v1259_v15 = vshll.u32 %v1191_v6, 16  ;;  %727 = vst [vmem:[#allocation2 + $0x34] sm:$0x1] %v726_v10  ;;  %v563_v31 = vor.u32 %v561_v1, %v560_v19 }
  0x34   : > { %v1265_v16 = vshll.u32 %v1192_v7, 16  ;;  %v1903_v20 = vld [vmem:[#allocation2 + $0xc] sm:$0x1]  ;;  %v2097_v21 = vshrl.u32 %v1902_v18, 16  ;;  %v2100_v22 = vshll.u32 %v1902_v18, 16  ;;  %v576_v23 = vrot.slane %v574_v2, 7 }
  0x35   : > { %v1258_v25 = vrot.slane %v1256_v14, 4  ;;  %v1261_v26 = vrot.slane %v1259_v15, 5  ;;  %v2106_v28 = vshll.u32 %v1903_v20, 16  ;;  %v564_v32 = vrot.slane %v560_v19, 4  ;;  %v1904_v35 = vld [vmem:[#allocation2 + $0x18] sm:$0xf] }
  0x36   : > { %v1267_v27 = vrot.slane %v1265_v16, 5  ;;  %v2099_v29 = vrot.slane %v2097_v21, 4  ;;  %v2102_v30 = vrot.slane %v2100_v22, 5  ;;  %v1905_v36 = vld [vmem:[#allocation2 + $0x1c] sm:$0x1]  ;;  %v579_v40 = vor.u32 %v577_v4, %v576_v23 }
  0x37   : > { %v1262_v34 = vor.u32 %v1261_v26, %v1258_v25  ;;  %v2108_v38 = vrot.slane %v2106_v28, 5  ;;  %v580_v41 = vrot.slane %v576_v23, 4  ;;  %v2111_v43 = vshrl.u32 %v1904_v35, 16  ;;  %v1193_v46 = vld [vmem:[#allocation2 + $0x20] sm:$0xf] }
  0x38   : > { %v2103_v42 = vor.u32 %v2102_v30, %v2099_v29  ;;  %v2114_v44 = vshll.u32 %v1904_v35, 16  ;;  %v2120_v45 = vshll.u32 %v1905_v36, 16  ;;  %v1194_v49 = vld [vmem:[#allocation2 + $0x24] sm:$0x1]  ;;  %v1270_v50 = vshrl.u32 %v1193_v46, 16 }
  0x39   : > { %v1263_v48 = vrot.slane %v1262_v34, 4  ;;  %v1273_v51 = vshll.u32 %v1193_v46, 16  ;;  %v717_v52 = vsel %vm4718_vm7, %v563_v31, %v716_v33  ;;  %v2113_v59 = vrot.slane %v2111_v43, 4  ;;  %v1195_v62 = vld [vmem:[#allocation2 + $0x30] sm:$0xf] }
  0x3a   : > { %v2104_v55 = vrot.slane %v2103_v42, 4  ;;  %v2116_v60 = vrot.slane %v2114_v44, 5  ;;  %v2122_v61 = vrot.slane %v2120_v45, 5  ;;  %718 = vst [vmem:[#allocation2 + $0x28] sm:$0xf] %v717_v52  ;;  %v1272_v2 = vrot.slane %v1270_v50, 4 }
  0x3b   : > { %v1268_v63 = vsel %vm4682_vm6, %v1263_v48, %v1267_v27  ;;  %v1196_v1 = vld [vmem:[#allocation2 + $0x34] sm:$0x1]  ;;  %v1275_v4 = vrot.slane %v1273_v51, 5  ;;  %v1279_v6 = vshll.u32 %v1194_v49, 16  ;;  %v1284_v11 = vshrl.u32 %v1195_v62, 16 }
  0x3c   : > { %v3584_v7 = vcombine.low %v1254_v56, %v1268_v63  ;;  %v2109_v8 = vsel %vm4682_vm6, %v2104_v55, %v2108_v38  ;;  %v2117_v10 = vor.u32 %v2116_v60, %v2113_v59  ;;  %v731_v14 = vld [vmem:[#allocation2 + $0x3c] sm:$0x1]  ;;  %v1287_v18 = vshll.u32 %v1195_v62, 16  ;;  %v734_v48 = vld [vmem:[#allocation2 + $0x40] sm:$0xf]  ;;  %v4391_v60 = vld [vmem:[%s5543_s2 + $0x8] sm:$0xff]  }
  0x3d   : > { %v1276_v15 = vor.u32 %v1275_v4, %v1272_v2  ;;  %v1281_v16 = vrot.slane %v1279_v6, 5  ;;  %v1293_v19 = vshll.u32 %v1196_v1, 16  ;;  %v1286_v21 = vrot.slane %v1284_v11, 4  ;;  %v737_v49 = vld [vmem:[#allocation2 + $0x44] sm:$0x1] }
  0x3e   : > { %4083 = vmatprep.mubr.bf16.mxu1 %v3584_v7  ;;  %v2118_v20 = vrot.slane %v2117_v10, 4  ;;  %v720_v22 = vsel %vm4726_vm8, %v564_v32, %v719_v53  ;;  %v729_v37 = vsel %vm4718_vm7, %v579_v40, %v728_v54  ;;  %v1289_v23 = vrot.slane %v1287_v18, 5 }
  0x3f   : > { %v1277_v56 = vrot.slane %v1276_v15, 4  ;;  %v1295_v25 = vrot.slane %v1293_v19, 5  ;;  %721 = vst [vmem:[#allocation2 + $0x2c] sm:$0x1] %v720_v22  ;;  %730 = vst [vmem:[#allocation2 + $0x38] sm:$0xf] %v729_v37  ;;  %v732_v26 = vsel %vm4726_vm8, %v580_v41, %v731_v14  ;;  %v438_v28 = vadd.f32 %v4661_v17, %v416_v24 }
  0x40   : > { %v2123_v27 = vsel %vm4682_vm6, %v2118_v20, %v2122_v61  ;;  %733 = vst [vmem:[#allocation2 + $0x3c] sm:$0x1] %v732_v26  ;;  %v3825_v29 = vpack.c.bf16 %v452_v13, %v452_v13  ;;  %v3876_v30 = vunpack.c.l.bf16 %v4755_v5  ;;  %v1290_v33 = vor.u32 %v1289_v23, %v1286_v21  ;;  %v746_v14 = vld [vmem:[#allocation2 + $0x50] sm:$0xf]  ;;  %v749_v15 = vld [vmem:[#allocation2 + $0x54] sm:$0x1] }
  0x41   : > { %v3680_v31 = vcombine.low %v2109_v8, %v2123_v27  ;;  %v1282_v32 = vsel %vm4682_vm6, %v1277_v56, %v1281_v16  ;;  %v1906_v34 = vld [vmem:[#allocation2 + $0x28] sm:$0xf]  ;;  %v3880_v35 = vunpack.c.l.bf16 %v4780_v47  ;;  %v454_v40 = vmax.f32 %v438_v28, 0.0  ;;  %v3947_v16 = vld [vmem:[%s4644_s29 + $0x30] sm:$0xff]  }
  0x42   : > { %v2125_v36 = vshrl.u32 %v1906_v34, 16  ;;  %v2128_v38 = vshll.u32 %v1906_v34, 16  ;;  %v582_v41 = vshrl.u32 %v3825_v29, 16  ;;  %v1291_v24 = vrot.slane %v1290_v33, 4  ;;  %v4393_v37 = vld [vmem:[%s5543_s2 + $0x10] sm:$0xff]  }
  0x43   : > { %4179 = vmatprep.mubr.bf16.mxu0 %v3680_v31  ;;  %v585_v42 = vshll.u32 %v3825_v29, 16  ;;  %v415_v58 = vmul.f32 %v3876_v30, %v4652_v12  ;;  %v417_v13 = vmul.f32 %v3880_v35, %v4652_v12  ;;  %v3827_v44 = vpack.c.bf16 %v454_v40, %v454_v40  ;;  %v4395_v40 = vld [vmem:[%s5543_s2 + $0x18] sm:$0xff]  }
  0x44   : > { %v2127_v5 = vrot.slane %v2125_v36, 4  ;;  %v2130_v43 = vrot.slane %v2128_v38, 5  ;;  %v584_v45 = vrot.slane %v582_v41, 7  ;;  %v1296_v46 = vsel %vm4682_vm6, %v1291_v24, %v1295_v25  ;;  %v4826_v38 = vld [vmem:[%s5543_s2 + $0x148] sm:$0xff]  }
  0x45   : > { %v437_v50 = vadd.f32 %v4661_v17, %v415_v58  ;;  %v439_v51 = vadd.f32 %v4661_v17, %v417_v13  ;;  %v3881_v52 = vunpack.c.h.bf16 %v4780_v47  ;;  %v3585_v53 = vcombine.low %v1282_v32, %v1296_v46  ;;  %v4817_v32 = vld [vmem:[%s4644_s29 + $0x38] sm:$0xff]  }
  0x46   : > { %v1907_v54 = vld [vmem:[#allocation2 + $0x2c] sm:$0x1]  ;;  %v1908_v55 = vld [vmem:[#allocation2 + $0x38] sm:$0xf]  ;;  %v2131_v59 = vor.u32 %v2130_v43, %v2127_v5  ;;  %v587_v61 = vor.u32 %v585_v42, %v584_v45  ;;  %v588_v62 = vrot.slane %v584_v45, 4  ;;  %v598_v6 = vshrl.u32 %v3827_v44, 16 }
  0x47   : > { %v1909_v63 = vld [vmem:[#allocation2 + $0x3c] sm:$0x1]  ;;  %v2134_v1 = vshll.u32 %v1907_v54, 16  ;;  %v2139_v2 = vshrl.u32 %v1908_v55, 16  ;;  %v2142_v4 = vshll.u32 %v1908_v55, 16  ;;  %4084 = vmatmul.mubr.bf16.vlgmr.msra.gmra.mrb[0].mxu1 %v3585_v53  ;;  %v601_v10 = vshll.u32 %v3827_v44, 16 }
  0x48   : > { %v2132_v7 = vrot.slane %v2131_v59, 4  ;;  %v2148_v8 = vshll.u32 %v1909_v63, 16  ;;  %v735_v11 = vsel %vm4718_vm7, %v587_v61, %v734_v48  ;;  %4092 = vmatpush3.bf16.msra.mxu1 %v4707_v57  ;;  %v600_v21 = vrot.slane %v598_v6, 7  ;;  %v740_v5 = vld [vmem:[#allocation2 + $0x48] sm:$0xf] }
  0x49   : > { %v2136_v18 = vrot.slane %v2134_v1, 5  ;;  %v2141_v19 = vrot.slane %v2139_v2, 4  ;;  %v2144_v20 = vrot.slane %v2142_v4, 5  ;;  %736 = vst [vmem:[#allocation2 + $0x40] sm:$0xf] %v735_v11  ;;  %4093 = vmatprep.subr.bf16.mxu1 %v4391_v60  ;;  %v738_v47 = vsel %vm4726_vm8, %v588_v62, %v737_v49  ;;  %v4397_v62 = vld [vmem:[%s5543_s2 + $0x20] sm:$0xff]  }
  0x4a   : > { %v2150_v22 = vrot.slane %v2148_v8, 5  ;;  %v453_v56 = vmax.f32 %v437_v50, 0.0  ;;  %v455_v23 = vmax.f32 %v439_v51, 0.0  ;;  %v603_v26 = vor.u32 %v601_v10, %v600_v21  ;;  %739 = vst [vmem:[#allocation2 + $0x44] sm:$0x1] %v738_v47 }
  0x4b   : > { %v2137_v57 = vsel %vm4682_vm6, %v2132_v7, %v2136_v18  ;;  %v2145_v25 = vor.u32 %v2144_v20, %v2141_v19  ;;  %v604_v27 = vrot.slane %v600_v21, 4  ;;  %v3885_v30 = vunpack.c.h.bf16 %v3947_v16  ;;  %v743_v43 = vld [vmem:[#allocation2 + $0x4c] sm:$0x1]  ;;  %v755_v59 = vld [vmem:[#allocation2 + $0x5c] sm:$0x1] }
  0x4c   : > { %v3826_v28 = vpack.c.bf16 %v453_v56, %v453_v56  ;;  %v3828_v29 = vpack.c.bf16 %v455_v23, %v455_v23  ;;  %v418_v31 = vmul.f32 %v3881_v52, %v4652_v12  ;;  %4094 = vmatpush3.bf16.msra.mxu1 %v4391_v60  ;;  %v747_v34 = vsel %vm4718_vm7, %v603_v26, %v746_v14  ;;  %v752_v52 = vld [vmem:[#allocation2 + $0x58] sm:$0xf]  ;;  %v4394_v14 = vld [vmem:[%s5543_s2 + $0x150] sm:$0xff]   ;;  %v4399_v23 = vld [vmem:[%s5543_s2 + $0x28] sm:$0xff]  }
  0x4d   : > { %v2146_v33 = vrot.slane %v2145_v25, 4  ;;  %v750_v35 = vsel %vm4726_vm8, %v604_v27, %v749_v15  ;;  %v3884_v36 = vunpack.c.l.bf16 %v3947_v16  ;;  %4095 = vmatprep.subr.bf16.mxu1 %v4393_v37  ;;  %748 = vst [vmem:[#allocation2 + $0x50] sm:$0xf] %v747_v34  ;;  %v420_v44 = vmul.f32 %v3885_v30, %v4652_v12  ;;  %v4396_v56 = vld [vmem:[%s5543_s2 + $0x158] sm:$0xff]  }
  0x4e   : > { %751 = vst [vmem:[#allocation2 + $0x54] sm:$0x1] %v750_v35  ;;  %v590_v41 = vshrl.u32 %v3826_v28, 16  ;;  %v593_v24 = vshll.u32 %v3826_v28, 16  ;;  %v606_v42 = vshrl.u32 %v3828_v29, 16  ;;  %v609_v58 = vshll.u32 %v3828_v29, 16 }
  0x4f   : > { %v2151_v13 = vsel %vm4682_vm6, %v2146_v33, %v2150_v22  ;;  %v440_v45 = vadd.f32 %v4661_v17, %v418_v31  ;;  %v3888_v46 = vunpack.c.l.bf16 %v4817_v32  ;;  %v419_v53 = vmul.f32 %v3884_v36, %v4652_v12  ;;  %v4872_v32 = vld [vmem:[%s4859_s27] sm:$0xff]   ;;  %v4401_v36 = vld [vmem:[%s5543_s2 + $0x30] sm:$0xff]  }
  0x50   : > { %v3681_v48 = vcombine.low %v2137_v57, %v2151_v13  ;;  %v1197_v49 = vld [vmem:[#allocation2 + $0x40] sm:$0xf]  ;;  %v592_v50 = vrot.slane %v590_v41, 7  ;;  %v608_v51 = vrot.slane %v606_v42, 7  ;;  %4096 = vmatpush3.bf16.msra.mxu1 %v4393_v37  ;;  %v442_v60 = vadd.f32 %v4661_v17, %v420_v44 }
  0x51   : > { %v1298_v54 = vshrl.u32 %v1197_v49, 16  ;;  %v1301_v55 = vshll.u32 %v1197_v49, 16  ;;  %v456_v61 = vmax.f32 %v440_v45, 0.0  ;;  %4097 = vmatprep.subr.bf16.mxu1 %v4395_v40  ;;  %v1198_v63 = vld [vmem:[#allocation2 + $0x44] sm:$0x1]  ;;  %v421_v27 = vmul.f32 %v3888_v46, %v4652_v12 }
  0x52   : > { %4180 = vmatmul.mubr.bf16.vlgmr.msra.gmra.mrb[0].mxu0 %v3681_v48  ;;  %v595_v1 = vor.u32 %v593_v24, %v592_v50  ;;  %v596_v2 = vrot.slane %v592_v50, 4  ;;  %v611_v4 = vor.u32 %v609_v58, %v608_v51  ;;  %v612_v6 = vrot.slane %v608_v51, 4  ;;  %v758_v41 = vld [vmem:[#allocation2 + $0x60] sm:$0xf]  ;;  %v761_v24 = vld [vmem:[#allocation2 + $0x64] sm:$0x1] }
  0x53   : > { %4188 = vmatpush3.bf16.msra.mxu0 %v4713_v0  ;;  %v1300_v7 = vrot.slane %v1298_v54, 4  ;;  %v1303_v8 = vrot.slane %v1301_v55, 5  ;;  %v1307_v10 = vshll.u32 %v1198_v63, 16  ;;  %v458_v11 = vmax.f32 %v442_v60, 0.0  ;;  %v4398_v13 = vld [vmem:[%s5543_s2 + $0x160] sm:$0xff]  }
  0x54   : > { %4189 = vmatprep.subr.bf16.mxu0 %v4826_v38  ;;  %v741_v15 = vsel %vm4718_vm7, %v595_v1, %v740_v5  ;;  %v744_v16 = vsel %vm4726_vm8, %v596_v2, %v743_v43  ;;  %v753_v18 = vsel %vm4718_vm7, %v611_v4, %v752_v52  ;;  %v756_v0 = vsel %vm4726_vm8, %v612_v6, %v755_v59  ;;  %v1199_v19 = vld [vmem:[#allocation2 + $0x50] sm:$0xf]  ;;  %v773_v55 = vld [vmem:[#allocation2 + $0x74] sm:$0x1] }
  0x55   : > { %4098 = vmatpush3.bf16.msra.mxu1 %v4395_v40  ;;  %v1200_v20 = vld [vmem:[#allocation2 + $0x54] sm:$0x1]  ;;  %v1304_v21 = vor.u32 %v1303_v8, %v1300_v7  ;;  %v4861_v22 = vrot.slane %v1307_v10, 5  ;;  %742 = vst [vmem:[#allocation2 + $0x48] sm:$0xf] %v741_v15  ;;  %v3829_v37 = vpack.c.bf16 %v456_v61, %v456_v61  ;;  %v3831_v47 = vpack.c.bf16 %v458_v11, %v458_v11 }
  0x56   : > { %745 = vst [vmem:[#allocation2 + $0x4c] sm:$0x1] %v744_v16  ;;  %754 = vst [vmem:[#allocation2 + $0x58] sm:$0xf] %v753_v18  ;;  %4099 = vmatprep.subr.bf16.mxu1 %v4397_v62  ;;  %v1312_v57 = vshrl.u32 %v1199_v19, 16  ;;  %v1315_v25 = vshll.u32 %v1199_v19, 16  ;;  %v441_v58 = vadd.f32 %v4661_v17, %v419_v53  ;;  %v3893_v44 = vunpack.c.h.bf16 %v4872_v32 }
  0x57   : > { %757 = vst [vmem:[#allocation2 + $0x5c] sm:$0x1] %v756_v0  ;;  %v1321_v26 = vshll.u32 %v1200_v20, 16  ;;  %4190 = vmatpush3.bf16.msra.mxu0 %v4826_v38  ;;  %v1305_v28 = vrot.slane %v1304_v21, 4  ;;  %v614_v29 = vshrl.u32 %v3829_v37, 16  ;;  %v617_v30 = vshll.u32 %v3829_v37, 16 }
  0x58   : > { %v630_v31 = vshrl.u32 %v3831_v47, 16  ;;  %4191 = vmatprep.subr.bf16.mxu0 %v4394_v14  ;;  %v1314_v33 = vrot.slane %v1312_v57, 4  ;;  %v1317_v34 = vrot.slane %v1315_v25, 5  ;;  %v633_v40 = vshll.u32 %v3831_v47, 16  ;;  %v770_v49 = vld [vmem:[#allocation2 + $0x70] sm:$0xf] }
  0x59   : > { %v1323_v35 = vrot.slane %v1321_v26, 5  ;;  %4100 = vmatpush3.bf16.msra.mxu1 %v4397_v62  ;;  %v616_v42 = vrot.slane %v614_v29, 7  ;;  %v1310_v5 = vsel %vm4682_vm6, %v1305_v28, %v4861_v22  ;;  %v443_v50 = vadd.f32 %v4661_v17, %v421_v27  ;;  %v4400_v18 = vld [vmem:[%s5543_s2 + $0x168] sm:$0xff]   ;;  %v4910_v27 = vld [vmem:[%s5543_s2 + $0x80] sm:$0xff]  }
  0x5a   : > { %v632_v38 = vrot.slane %v630_v31, 7  ;;  %4101 = vmatprep.subr.bf16.mxu1 %v4399_v23  ;;  %v1318_v43 = vor.u32 %v1317_v34, %v1314_v33  ;;  %v457_v59 = vmax.f32 %v441_v58, 0.0  ;;  %v821_v60 = vmul.f32 %v3893_v44, %v4652_v12  ;;  %v4403_v12 = vld [vmem:[%s5543_s2 + $0x38] sm:$0xff]   ;;  %v4902_v21 = vld [vmem:[%s4859_s27 + $0x8] sm:$0xff]   ;;  %v4402_v34 = vld [vmem:[%s5543_s2 + $0x170] sm:$0xff]  }
  0x5b   : > { %4192 = vmatpush3.bf16.msra.mxu0 %v4394_v14  ;;  %v619_v45 = vor.u32 %v617_v30, %v616_v42  ;;  %v620_v46 = vrot.slane %v616_v42, 4  ;;  %v3892_v30 = vunpack.c.l.bf16 %v4872_v32  ;;  %v3896_v31 = vunpack.c.l.bf16 %v4902_v21  ;;  %v764_v44 = vld [vmem:[#allocation2 + $0x68] sm:$0xf] }
  0x5c   : > { %v636_v48 = vrot.slane %v632_v38, 4  ;;  %4193 = vmatprep.subr.bf16.mxu0 %v4396_v56  ;;  %v1319_v51 = vrot.slane %v1318_v43, 4  ;;  %v1910_v52 = vld [vmem:[#allocation2 + $0x48] sm:$0xf]  ;;  %v635_v54 = vor.u32 %v633_v40, %v632_v38  ;;  %v3830_v25 = vpack.c.bf16 %v457_v59, %v457_v59 }
  0x5d   : > { %v1911_v53 = vld [vmem:[#allocation2 + $0x4c] sm:$0x1]  ;;  %4102 = vmatpush3.bf16.msra.mxu1 %v4399_v23  ;;  %v1912_v61 = vld [vmem:[#allocation2 + $0x58] sm:$0xf]  ;;  %v2153_v63 = vshrl.u32 %v1910_v52, 16  ;;  %v2156_v1 = vshll.u32 %v1910_v52, 16  ;;  %v759_v2 = vsel %vm4718_vm7, %v619_v45, %v758_v41  ;;  %v762_v4 = vsel %vm4726_vm8, %v620_v46, %v761_v24 }
  0x5e   : > { %v1913_v62 = vld [vmem:[#allocation2 + $0x5c] sm:$0x1]  ;;  %v1324_v6 = vsel %vm4682_vm6, %v1319_v51, %v1323_v35  ;;  %4103 = vmatprep.subr.bf16.mxu1 %v4401_v36  ;;  %v2162_v7 = vshll.u32 %v1911_v53, 16  ;;  %v2167_v8 = vshrl.u32 %v1912_v61, 16  ;;  %v2170_v10 = vshll.u32 %v1912_v61, 16 }
  0x5f   : > { %760 = vst [vmem:[#allocation2 + $0x60] sm:$0xf] %v759_v2  ;;  %763 = vst [vmem:[#allocation2 + $0x64] sm:$0x1] %v762_v4  ;;  %4194 = vmatpush3.bf16.msra.mxu0 %v4396_v56  ;;  %v3586_v11 = vcombine.low %v1310_v5, %v1324_v6  ;;  %v2155_v14 = vrot.slane %v2153_v63, 4  ;;  %v2158_v15 = vrot.slane %v2156_v1, 5  ;;  %v771_v20 = vsel %vm4718_vm7, %v635_v54, %v770_v49 }
  0x60   : > { %v2176_v16 = vshll.u32 %v1913_v62, 16  ;;  %4195 = vmatprep.subr.bf16.mxu0 %v4398_v13  ;;  %v2169_v0 = vrot.slane %v2167_v8, 4  ;;  %v2172_v19 = vrot.slane %v2170_v10, 5  ;;  %v2164_v37 = vrot.slane %v2162_v7, 5  ;;  %772 = vst [vmem:[#allocation2 + $0x70] sm:$0xf] %v771_v20 }
  0x61   : > { %4087 = vmatprep.mubr.bf16.mxu1 %v3586_v11  ;;  %v2159_v22 = vor.u32 %v2158_v15, %v2155_v14  ;;  %v774_v47 = vsel %vm4726_vm8, %v636_v48, %v773_v55  ;;  %4104 = vmatpush3.bf16.msra.mxu1 %v4401_v36  ;;  %v459_v56 = vmax.f32 %v443_v50, 0.0  ;;  %v837_v26 = vadd.f32 %v4661_v17, %v821_v60  ;;  %v767_v45 = vld [vmem:[#allocation2 + $0x6c] sm:$0x1]  ;;  %v776_v50 = vld [vmem:[#allocation2 + $0x78] sm:$0xf] }
  0x62   : > { %v2173_v23 = vor.u32 %v2172_v19, %v2169_v0  ;;  %v2178_v57 = vrot.slane %v2176_v16, 5  ;;  %775 = vst [vmem:[#allocation2 + $0x74] sm:$0x1] %v774_v47  ;;  %4105 = vmatprep.subr.bf16.mxu1 %v4403_v12  ;;  %v622_v35 = vshrl.u32 %v3830_v25, 16  ;;  %v625_v17 = vshll.u32 %v3830_v25, 16  ;;  %v4404_v61 = vld [vmem:[%s5543_s2 + $0x178] sm:$0xff]  }
  0x63   : > { %4196 = vmatpush3.bf16.msra.mxu0 %v4398_v13  ;;  %v2160_v28 = vrot.slane %v2159_v22, 4  ;;  %v3832_v29 = vpack.c.bf16 %v459_v56, %v459_v56  ;;  %v853_v36 = vmax.f32 %v837_v26, 0.0  ;;  %v3897_v32 = vunpack.c.h.bf16 %v4902_v21  ;;  %v779_v51 = vld [vmem:[#allocation2 + $0x7c] sm:$0x1]  ;;  %v4926_v52 = vld [vmem:[%s5544_s3] ss:$0 sm:$0xff] }
  0x64   : > { %4197 = vmatprep.subr.bf16.mxu0 %v4400_v18  ;;  %v2174_v33 = vrot.slane %v2173_v23, 4  ;;  %v624_v48 = vrot.slane %v622_v35, 7  ;;  %v820_v53 = vmul.f32 %v4926_v52, %v3892_v30  ;;  %v4944_v22 = vld [vmem:[%s5543_s2 + $0x180] sm:$0xff]   ;;  %v822_v26 = vmul.f32 %v4926_v52, %v3896_v31 }
  0x65   : > { %v2165_v40 = vsel %vm4682_vm6, %v2160_v28, %v2164_v37  ;;  %v638_v42 = vshrl.u32 %v3832_v29, 16  ;;  %v641_v38 = vshll.u32 %v3832_v29, 16  ;;  %4106 = vmatpush3.bf16.msra.mxu1 %v4403_v12  ;;  %v3835_v62 = vpack.c.bf16 %v853_v36, %v853_v36  ;;  %v4957_v28 = vld [vmem:[%s5545_s4] ss:$0 sm:$0xff] }
  0x66   : > { %v1201_v41 = vld [vmem:[#allocation2 + $0x60] sm:$0xf]  ;;  %v1202_v24 = vld [vmem:[#allocation2 + $0x64] sm:$0x1]  ;;  %v2179_v58 = vsel %vm4682_vm6, %v2174_v33, %v2178_v57  ;;  %4115 = vmatprep.subr.bf16.mxu1 %v4910_v27  ;;  %v627_v4 = vor.u32 %v625_v17, %v624_v48  ;;  %v628_v6 = vrot.slane %v624_v48, 4  ;;  %v4947_v57 = vld [vmem:[%s4859_s27 + $0x18] sm:$0xff]   ;;  %v836_v29 = vadd.f32 %v4957_v28, %v820_v53 }
  0x67   : > { %v1326_v13 = vshrl.u32 %v1201_v41, 16  ;;  %v1329_v5 = vshll.u32 %v1201_v41, 16  ;;  %v1335_v43 = vshll.u32 %v1202_v24, 16  ;;  %4198 = vmatpush3.bf16.msra.mxu0 %v4400_v18  ;;  %v3682_v46 = vcombine.low %v2165_v40, %v2179_v58  ;;  %v1203_v54 = vld [vmem:[#allocation2 + $0x70] sm:$0xf] }
  0x68   : > { %v640_v49 = vrot.slane %v638_v42, 7  ;;  %4199 = vmatprep.subr.bf16.mxu0 %v4402_v34  ;;  %v1340_v1 = vshrl.u32 %v1203_v54, 16  ;;  %v1343_v2 = vshll.u32 %v1203_v54, 16  ;;  %v765_v15 = vsel %vm4718_vm7, %v627_v4, %v764_v44  ;;  %v3950_v18 = vld [vmem:[%s4859_s27 + $0x10] sm:$0xff]   ;;  %v1099_v36 = vld [vmem:[#allocation2 + $0xa0] sm:$0xf] }
  0x69   : > { %v1328_v55 = vrot.slane %v1326_v13, 4  ;;  %v1331_v59 = vrot.slane %v1329_v5, 5  ;;  %v1337_v60 = vrot.slane %v1335_v43, 5  ;;  %4183 = vmatprep.mubr.bf16.mxu0 %v3682_v46  ;;  %v1204_v63 = vld [vmem:[#allocation2 + $0x74] sm:$0x1]  ;;  %v768_v16 = vsel %vm4726_vm8, %v628_v6, %v767_v45 }
  0x6a   : > { %v1349_v8 = vshll.u32 %v1204_v63, 16  ;;  %v643_v10 = vor.u32 %v641_v38, %v640_v49  ;;  %v644_v12 = vrot.slane %v640_v49, 4  ;;  %v1342_v11 = vrot.slane %v1340_v1, 4  ;;  %766 = vst [vmem:[#allocation2 + $0x68] sm:$0xf] %v765_v15 }
  0x6b   : > { %v1332_v7 = vor.u32 %v1331_v59, %v1328_v55  ;;  %v1345_v14 = vrot.slane %v1343_v2, 5  ;;  %4200 = vmatpush3.bf16.msra.mxu0 %v4402_v34  ;;  %769 = vst [vmem:[#allocation2 + $0x6c] sm:$0x1] %v768_v16  ;;  %v941_v56 = vshrl.u32 %v3835_v62, 16  ;;  %v944_v23 = vshll.u32 %v3835_v62, 16 }
  0x6c   : > { %v777_v19 = vsel %vm4718_vm7, %v643_v10, %v776_v50  ;;  %v780_v20 = vsel %vm4726_vm8, %v644_v12, %v779_v51  ;;  %4201 = vmatprep.subr.bf16.mxu0 %v4404_v61  ;;  %v1351_v47 = vrot.slane %v1349_v8, 5  ;;  %v3900_v30 = vunpack.c.l.bf16 %v3950_v18  ;;  %v4976_v10 = vld [vmem:[#allocation2 + $0x90] sm:$0xf] }
  0x6d   : > { %v1333_v0 = vrot.slane %v1332_v7, 4  ;;  %v1346_v37 = vor.u32 %v1345_v14, %v1342_v11  ;;  %778 = vst [vmem:[#allocation2 + $0x78] sm:$0xf] %v777_v19  ;;  %781 = vst [vmem:[#allocation2 + $0x7c] sm:$0x1] %v780_v20  ;;  %v4960_v34 = vrot.slane %v941_v56, 7  ;;  %v3901_v35 = vunpack.c.h.bf16 %v3950_v18 }
  0x6e   : > { %v823_v17 = vmul.f32 %v4926_v52, %v3897_v32  ;;  %v838_v21 = vadd.f32 %v4957_v28, %v822_v26  ;;  %v852_v40 = vmax.f32 %v836_v29, 0.0  ;;  %v3904_v31 = vunpack.c.l.bf16 %v4947_v57 }
  0x6f   : > { %v1338_v25 = vsel %vm4682_vm6, %v1333_v0, %v1337_v60  ;;  %v1347_v33 = vrot.slane %v1346_v37, 4  ;;  %4202 = vmatpush3.bf16.msra.mxu0 %v4404_v61  ;;  %v946_v24 = vor.u32 %v944_v23, %v4960_v34  ;;  %v825_v42 = vmul.f32 %v4926_v52, %v3901_v35 }
  0x70   : > { %4211 = vmatprep.subr.bf16.mxu0 %v4944_v22  ;;  %v839_v38 = vadd.f32 %v4957_v28, %v823_v17  ;;  %v854_v13 = vmax.f32 %v838_v21, 0.0  ;;  %v3834_v32 = vpack.c.bf16 %v852_v40, %v852_v40  ;;  %v824_v46 = vmul.f32 %v4926_v52, %v3900_v30  ;;  %v1096_v30 = vld [vmem:[#allocation2 + $0x9c] sm:$0x1]  ;;  %v1105_v40 = vld [vmem:[#allocation2 + $0xa8] sm:$0xf] }
  0x71   : > { %v1352_v41 = vsel %vm4682_vm6, %v1347_v33, %v1351_v47  ;;  %v1914_v5 = vld [vmem:[#allocation2 + $0x68] sm:$0xf]  ;;  %v1100_v44 = vsel %vm4718_vm7, %v946_v24, %v1099_v36  ;;  %v826_v48 = vmul.f32 %v4926_v52, %v3904_v31  ;;  %v841_v55 = vadd.f32 %v4957_v28, %v825_v42  ;;  %v1108_v31 = vld [vmem:[#allocation2 + $0xac] sm:$0x1] }
  0x72   : > { %v3587_v58 = vcombine.low %v1338_v25, %v1352_v41  ;;  %v1915_v43 = vld [vmem:[#allocation2 + $0x6c] sm:$0x1]  ;;  %v855_v45 = vmax.f32 %v839_v38, 0.0  ;;  %v2181_v51 = vshrl.u32 %v1914_v5, 16  ;;  %v2184_v53 = vshll.u32 %v1914_v5, 16 }
  0x73   : > { %1101 = vst [vmem:[#allocation2 + $0xa0] sm:$0xf] %v1100_v44  ;;  %v3836_v54 = vpack.c.bf16 %v854_v13, %v854_v13  ;;  %v2190_v59 = vshll.u32 %v1915_v43, 16  ;;  %v933_v2 = vshrl.u32 %v3834_v32, 16  ;;  %v936_v4 = vshll.u32 %v3834_v32, 16  ;;  %v3952_v32 = vld [vmem:[%s4859_s27 + $0x20] sm:$0xff]  }
  0x74   : > { %4088 = vmatmul.mubr.bf16.gmra.mrb[4].mxu1 %v3587_v58  ;;  %v1916_v49 = vld [vmem:[#allocation2 + $0x78] sm:$0xf]  ;;  %v1917_v50 = vld [vmem:[#allocation2 + $0x7c] sm:$0x1]  ;;  %v2183_v63 = vrot.slane %v2181_v51, 4  ;;  %v2186_v1 = vrot.slane %v2184_v53, 5  ;;  %v840_v12 = vadd.f32 %v4957_v28, %v824_v46  ;;  %v3837_v20 = vpack.c.bf16 %v855_v45, %v855_v45 }
  0x75   : > { %v2195_v60 = vshrl.u32 %v1916_v49, 16  ;;  %v2198_v61 = vshll.u32 %v1916_v49, 16  ;;  %v2204_v62 = vshll.u32 %v1917_v50, 16  ;;  %v2192_v6 = vrot.slane %v2190_v59, 5  ;;  %v1093_v25 = vld [vmem:[#allocation2 + $0x98] sm:$0xf] }
  0x76   : > { %v2187_v11 = vor.u32 %v2186_v1, %v2183_v63  ;;  %v935_v15 = vrot.slane %v933_v2, 7  ;;  %v949_v16 = vshrl.u32 %v3836_v54, 16  ;;  %v952_v0 = vshll.u32 %v3836_v54, 16  ;;  %v1111_v44 = vld [vmem:[#allocation2 + $0xb0] sm:$0xf]  ;;  %v4994_v45 = vld [vmem:[%s4859_s27 + $0x28] sm:$0xff]  }
  0x77   : > { %v2197_v7 = vrot.slane %v2195_v60, 4  ;;  %v2200_v8 = vrot.slane %v2198_v61, 5  ;;  %v2206_v14 = vrot.slane %v2204_v62, 5  ;;  %v857_v19 = vmax.f32 %v841_v55, 0.0  ;;  %v1123_v53 = vld [vmem:[#allocation2 + $0xc0] sm:$0xf] }
  0x78   : > { %v2188_v37 = vrot.slane %v2187_v11, 4  ;;  %v938_v47 = vor.u32 %v936_v4, %v935_v15  ;;  %v939_v56 = vrot.slane %v935_v15, 4  ;;  %v951_v23 = vrot.slane %v949_v16, 7 }
  0x79   : > { %v2201_v18 = vor.u32 %v2200_v8, %v2197_v7  ;;  %v3839_v33 = vpack.c.bf16 %v857_v19, %v857_v19  ;;  %v957_v35 = vshrl.u32 %v3837_v20, 16  ;;  %v842_v17 = vadd.f32 %v4957_v28, %v826_v48  ;;  %v1117_v19 = vld [vmem:[#allocation2 + $0xb8] sm:$0xf] }
  0x7a   : > { %v4979_v29 = vld [vmem:[#allocation2 + $0xa0] sm:$0xf]  ;;  %v2193_v36 = vsel %vm4682_vm6, %v2188_v37, %v2192_v6  ;;  %v960_v41 = vshll.u32 %v3837_v20, 16  ;;  %v856_v24 = vmax.f32 %v840_v12, 0.0  ;;  %v954_v38 = vor.u32 %v952_v0, %v951_v23 }
  0x7b   : > { %v2202_v26 = vrot.slane %v2201_v18, 4  ;;  %v3596_v21 = vcombine.low %v4976_v10, %v4979_v29  ;;  %v955_v58 = vrot.slane %v951_v23, 4  ;;  %v1094_v13 = vsel %vm4718_vm7, %v938_v47, %v1093_v25 }
  0x7c   : > { %1095 = vst [vmem:[#allocation2 + $0x98] sm:$0xf] %v1094_v13  ;;  %v1097_v43 = vsel %vm4726_vm8, %v939_v56, %v1096_v30  ;;  %v1106_v46 = vsel %vm4718_vm7, %v954_v38, %v1105_v40  ;;  %v5000_v49 = vrot.slane %v957_v35, 7  ;;  %v973_v50 = vshrl.u32 %v3839_v33, 16  ;;  %v1129_v35 = vld [vmem:[#allocation2 + $0xc8] sm:$0xf] }
  0x7d   : > { %v2207_v42 = vsel %vm4682_vm6, %v2202_v26, %v2206_v14  ;;  %4107 = vmatprep.mubr.bf16.mxu1 %v3596_v21  ;;  %1098 = vst [vmem:[#allocation2 + $0x9c] sm:$0x1] %v1097_v43  ;;  %v1109_v48 = vsel %vm4726_vm8, %v955_v58, %v1108_v31  ;;  %1107 = vst [vmem:[#allocation2 + $0xa8] sm:$0xf] %v1106_v46  ;;  %v976_v51 = vshll.u32 %v3839_v33, 16  ;;  %v858_v54 = vmax.f32 %v842_v17, 0.0 }
  0x7e   : > { %v3683_v5 = vcombine.low %v2193_v36, %v2207_v42  ;;  %1110 = vst [vmem:[#allocation2 + $0xac] sm:$0x1] %v1109_v48  ;;  %v3838_v55 = vpack.c.bf16 %v856_v24, %v856_v24  ;;  %v3905_v59 = vunpack.c.h.bf16 %v4947_v57  ;;  %v962_v60 = vor.u32 %v960_v41, %v5000_v49  ;;  %v1120_v33 = vld [vmem:[#allocation2 + $0xbc] sm:$0x1]  ;;  %v1132_v17 = vld [vmem:[#allocation2 + $0xcc] sm:$0x1] }
  0x7f   : > { %v5004_v61 = vrot.slane %v973_v50, 7  ;;  %v3908_v62 = vunpack.c.l.bf16 %v3952_v32  ;;  %v3909_v63 = vunpack.c.h.bf16 %v3952_v32  ;;  %v3840_v1 = vpack.c.bf16 %v858_v54, %v858_v54 }
  0x80   : > { %4184 = vmatmul.mubr.bf16.gmra.mrb[4].mxu0 %v3683_v5  ;;  %v965_v2 = vshrl.u32 %v3838_v55, 16  ;;  %v968_v4 = vshll.u32 %v3838_v55, 16  ;;  %v827_v6 = vmul.f32 %v4926_v52, %v3905_v59  ;;  %v1112_v8 = vsel %vm4718_vm7, %v962_v60, %v1111_v44 }
  0x81   : > { %v978_v7 = vor.u32 %v976_v51, %v5004_v61  ;;  %v829_v12 = vmul.f32 %v4926_v52, %v3909_v63  ;;  %v3912_v57 = vunpack.c.l.bf16 %v4994_v45  ;;  %1113 = vst [vmem:[#allocation2 + $0xb0] sm:$0xf] %v1112_v8  ;;  %v981_v14 = vshrl.u32 %v3840_v1, 16 }
  0x82   : > { %v967_v11 = vrot.slane %v965_v2, 7  ;;  %v984_v15 = vshll.u32 %v3840_v1, 16  ;;  %v843_v16 = vadd.f32 %v4957_v28, %v827_v6  ;;  %v828_v37 = vmul.f32 %v4926_v52, %v3908_v62 }
  0x83   : > { %v5013_v18 = vld [vmem:[#allocation2 + $0x98] sm:$0xf]  ;;  %v1124_v0 = vsel %vm4718_vm7, %v978_v7, %v1123_v53  ;;  %v845_v20 = vadd.f32 %v4957_v28, %v829_v12  ;;  %v830_v47 = vmul.f32 %v4926_v52, %v3912_v57  ;;  %v983_v31 = vrot.slane %v981_v14, 7 }
  0x84   : > { %v1919_v56 = vld [vmem:[#allocation2 + $0x9c] sm:$0x1]  ;;  %v2363_v23 = vshrl.u32 %v5013_v18, 16  ;;  %v2366_v25 = vshll.u32 %v5013_v18, 16  ;;  %1125 = vst [vmem:[#allocation2 + $0xc0] sm:$0xf] %v1124_v0  ;;  %v970_v26 = vor.u32 %v968_v4, %v967_v11  ;;  %v844_v41 = vadd.f32 %v4957_v28, %v828_v37 }
  0x85   : > { %v971_v30 = vrot.slane %v967_v11, 4  ;;  %v5022_v36 = vld [vmem:[#allocation2 + $0xa8] sm:$0xf]  ;;  %v1921_v21 = vld [vmem:[#allocation2 + $0xac] sm:$0x1]  ;;  %v2372_v40 = vshll.u32 %v1919_v56, 16  ;;  %v846_v24 = vadd.f32 %v4957_v28, %v830_v47  ;;  %v986_v43 = vor.u32 %v984_v15, %v983_v31 }
  0x86   : > { %v2365_v42 = vrot.slane %v2363_v23, 4  ;;  %v2368_v38 = vrot.slane %v2366_v25, 5  ;;  %v2377_v58 = vshrl.u32 %v5022_v36, 16  ;;  %v2380_v13 = vshll.u32 %v5022_v36, 16  ;;  %v4409_v11 = vld [vmem:[%s5543_s2 + $0x88] sm:$0xff]   ;;  %v5049_v0 = vld [vmem:[%s4859_s27 + $0x30] sm:$0xff]  }
  0x87   : > { %v2374_v32 = vrot.slane %v2372_v40, 5  ;;  %v2386_v5 = vshll.u32 %v1921_v21, 16  ;;  %v987_v44 = vrot.slane %v983_v31, 4  ;;  %v1118_v51 = vsel %vm4718_vm7, %v970_v26, %v1117_v19  ;;  %v5055_v47 = vld [vmem:[%s4859_s27 + $0x38] sm:$0xff]   ;;  %v4411_v25 = vld [vmem:[%s5543_s2 + $0x90] sm:$0xff]  }
  0x88   : > { %v2369_v46 = vor.u32 %v2368_v38, %v2365_v42  ;;  %v2379_v48 = vrot.slane %v2377_v58, 4  ;;  %v2382_v50 = vrot.slane %v2380_v13, 5  ;;  %v5030_v53 = vld [vmem:[#allocation2 + $0xb0] sm:$0xf]  ;;  %1119 = vst [vmem:[#allocation2 + $0xb8] sm:$0xf] %v1118_v51  ;;  %v1121_v54 = vsel %vm4726_vm8, %v971_v30, %v1120_v33 }
  0x89   : > { %v1130_v55 = vsel %vm4718_vm7, %v986_v43, %v1129_v35  ;;  %v1133_v59 = vsel %vm4726_vm8, %v987_v44, %v1132_v17  ;;  %v2388_v63 = vrot.slane %v2386_v5, 5  ;;  %1122 = vst [vmem:[#allocation2 + $0xbc] sm:$0x1] %v1121_v54  ;;  %v859_v2 = vmax.f32 %v843_v16, 0.0  ;;  %v4413_v44 = vld [vmem:[%s5543_s2 + $0x98] sm:$0xff]  }
  0x8a   : > { %v2370_v60 = vrot.slane %v2369_v46, 4  ;;  %v2383_v62 = vor.u32 %v2382_v50, %v2379_v48  ;;  %1131 = vst [vmem:[#allocation2 + $0xc8] sm:$0xf] %v1130_v55  ;;  %1134 = vst [vmem:[#allocation2 + $0xcc] sm:$0x1] %v1133_v59  ;;  %v861_v4 = vmax.f32 %v845_v20, 0.0  ;;  %v3916_v42 = vunpack.c.l.bf16 %v5049_v0 }
  0x8b   : > { %v5038_v1 = vld [vmem:[#allocation2 + $0xc0] sm:$0xf]  ;;  %v860_v6 = vmax.f32 %v844_v41, 0.0  ;;  %v862_v7 = vmax.f32 %v846_v24, 0.0  ;;  %v1637_v14 = vshrl.u32 %v4976_v10, 16  ;;  %v3841_v15 = vpack.c.bf16 %v859_v2, %v859_v2 }
  0x8c   : > { %v2375_v8 = vsel %vm4682_vm6, %v2370_v60, %v2374_v32  ;;  %v2384_v12 = vrot.slane %v2383_v62, 4  ;;  %v3597_v57 = vcombine.low %v5030_v53, %v5038_v1  ;;  %v1640_v16 = vshll.u32 %v4976_v10, 16  ;;  %v1135_v46 = vld [vmem:[#allocation2 + $0xd0] sm:$0xf]  ;;  %v1147_v48 = vld [vmem:[#allocation2 + $0xe0] sm:$0xf] }
  0x8d   : > { %v3843_v20 = vpack.c.bf16 %v861_v4, %v861_v4  ;;  %v3842_v37 = vpack.c.bf16 %v860_v6, %v860_v6  ;;  %v1651_v56 = vshrl.u32 %v4979_v29, 16  ;;  %v989_v26 = vshrl.u32 %v3841_v15, 16 }
  0x8e   : > { %v2389_v19 = vsel %vm4682_vm6, %v2384_v12, %v2388_v63  ;;  %4108 = vmatmul.mubr.bf16.vlgmr.msra.gmra.mrb[0].mxu1 %v3597_v57  ;;  %v5062_v30 = vpack.c.bf16 %v862_v7, %v862_v7  ;;  %v992_v35 = vshll.u32 %v3841_v15, 16  ;;  %v3917_v38 = vunpack.c.h.bf16 %v5049_v0 }
  0x8f   : > { %v3708_v23 = vcombine.low %v2375_v8, %v2389_v19  ;;  %4116 = vmatpush3.bf16.msra.mxu1 %v4910_v27  ;;  %v5064_v33 = vld [vmem:[#allocation2 + $0xb8] sm:$0xf]  ;;  %v1005_v17 = vshrl.u32 %v3843_v20, 16  ;;  %v1008_v21 = vshll.u32 %v3843_v20, 16  ;;  %v997_v40 = vshrl.u32 %v3842_v37, 16 }
  0x90   : > { %4117 = vmatprep.subr.bf16.mxu1 %v4409_v11  ;;  %v1923_v31 = vld [vmem:[#allocation2 + $0xbc] sm:$0x1]  ;;  %v3913_v27 = vunpack.c.h.bf16 %v4994_v45  ;;  %v3920_v58 = vunpack.c.l.bf16 %v5055_v47  ;;  %v2391_v13 = vshrl.u32 %v5064_v33, 16  ;;  %v2394_v32 = vshll.u32 %v5064_v33, 16  ;;  %v1141_v20 = vld [vmem:[#allocation2 + $0xd8] sm:$0xf] }
  0x91   : > { %4203 = vmatprep.mubr.bf16.mxu0 %v3708_v23  ;;  %v5066_v41 = vld [vmem:[#allocation2 + $0xc8] sm:$0xf]  ;;  %v1925_v24 = vld [vmem:[#allocation2 + $0xcc] sm:$0x1]  ;;  %v2400_v5 = vshll.u32 %v1923_v31, 16  ;;  %v5079_v51 = vrot.slane %v989_v26, 7 }
  0x92   : > { %v2405_v43 = vshrl.u32 %v5066_v41, 16  ;;  %v2408_v45 = vshll.u32 %v5066_v41, 16  ;;  %v2414_v50 = vshll.u32 %v1925_v24, 16  ;;  %v5081_v54 = vrot.slane %v1005_v17, 7  ;;  %v4415_v26 = vld [vmem:[%s5543_s2 + $0xa0] sm:$0xff]  }
  0x93   : > { %4118 = vmatpush3.bf16.msra.mxu1 %v4409_v11  ;;  %v2393_v55 = vrot.slane %v2391_v13, 4  ;;  %v2396_v59 = vrot.slane %v2394_v32, 5  ;;  %v2402_v60 = vrot.slane %v2400_v5, 5  ;;  %v994_v4 = vor.u32 %v992_v35, %v5079_v51  ;;  %v1144_v17 = vld [vmem:[#allocation2 + $0xdc] sm:$0x1]  ;;  %v4410_v5 = vld [vmem:[%s5543_s2 + $0x188] sm:$0xff]  }
  0x94   : > { %v2407_v62 = vrot.slane %v2405_v43, 4  ;;  %4119 = vmatprep.subr.bf16.mxu1 %v4411_v25  ;;  %v2410_v63 = vrot.slane %v2408_v45, 5  ;;  %v2416_v2 = vrot.slane %v2414_v50, 5  ;;  %v1010_v6 = vor.u32 %v1008_v21, %v5081_v54  ;;  %v1156_v31 = vld [vmem:[#allocation2 + $0xec] sm:$0x1] }
  0x95   : > { %v2397_v7 = vor.u32 %v2396_v59, %v2393_v55  ;;  %v999_v8 = vrot.slane %v997_v40, 7  ;;  %v1000_v12 = vshll.u32 %v3842_v37, 16  ;;  %v1013_v57 = vshrl.u32 %v5062_v30, 16  ;;  %v1153_v40 = vld [vmem:[#allocation2 + $0xe8] sm:$0xf] }
  0x96   : > { %v2411_v11 = vor.u32 %v2410_v63, %v2407_v62  ;;  %v1136_v15 = vsel %vm4718_vm7, %v994_v4, %v1135_v46  ;;  %v1148_v0 = vsel %vm4718_vm7, %v1010_v6, %v1147_v48  ;;  %v1016_v19 = vshll.u32 %v5062_v30, 16  ;;  %v1102_v50 = vld [vmem:[#allocation2 + $0xa4] sm:$0x1] }
  0x97   : > { %4120 = vmatpush3.bf16.msra.mxu1 %v4411_v25  ;;  %v2398_v23 = vrot.slane %v2397_v7, 4  ;;  %1137 = vst [vmem:[#allocation2 + $0xd0] sm:$0xf] %v1136_v15  ;;  %1149 = vst [vmem:[#allocation2 + $0xe0] sm:$0xf] %v1148_v0  ;;  %v1002_v37 = vor.u32 %v1000_v12, %v999_v8  ;;  %v1003_v35 = vrot.slane %v999_v8, 4  ;;  %v831_v24 = vmul.f32 %v4926_v52, %v3913_v27 }
  0x98   : > { %4121 = vmatprep.subr.bf16.mxu1 %v4413_v44  ;;  %v1015_v25 = vrot.slane %v1013_v57, 7  ;;  %v2412_v21 = vrot.slane %v2411_v11, 4  ;;  %v833_v30 = vmul.f32 %v4926_v52, %v3917_v38  ;;  %v832_v13 = vmul.f32 %v4926_v52, %v3916_v42  ;;  %v4412_v57 = vld [vmem:[%s5543_s2 + $0x190] sm:$0xff]  }
  0x99   : > { %v2403_v32 = vsel %vm4682_vm6, %v2398_v23, %v2402_v60  ;;  %v1142_v48 = vsel %vm4718_vm7, %v1002_v37, %v1141_v20  ;;  %v1145_v27 = vsel %vm4726_vm8, %v1003_v35, %v1144_v17  ;;  %v847_v42 = vadd.f32 %v4957_v28, %v831_v24  ;;  %v4417_v60 = vld [vmem:[%s5543_s2 + $0xa8] sm:$0xff]  }
  0x9a   : > { %v1018_v43 = vor.u32 %v1016_v19, %v1015_v25  ;;  %v1019_v46 = vrot.slane %v1015_v25, 4  ;;  %v2417_v45 = vsel %vm4682_vm6, %v2412_v21, %v2416_v2  ;;  %1143 = vst [vmem:[#allocation2 + $0xd8] sm:$0xf] %v1142_v48  ;;  %v849_v38 = vadd.f32 %v4957_v28, %v833_v30  ;;  %1146 = vst [vmem:[#allocation2 + $0xdc] sm:$0x1] %v1145_v27  ;;  %v4423_v25 = vld [vmem:[%s5543_s2 + $0xb8] sm:$0xff]  }
  0x9b   : > { %4122 = vmatpush3.bf16.msra.mxu1 %v4413_v44  ;;  %v1654_v55 = vshll.u32 %v4979_v29, 16  ;;  %v3709_v59 = vcombine.low %v2403_v32, %v2417_v45  ;;  %v863_v63 = vmax.f32 %v847_v42, 0.0  ;;  %v848_v4 = vadd.f32 %v4957_v28, %v832_v13  ;;  %v1207_v19 = vld [vmem:[#allocation2 + $0x94] sm:$0x1]  ;;  %v4414_v29 = vld [vmem:[%s5543_s2 + $0x198] sm:$0xff]  }
  0x9c   : > { %4123 = vmatprep.subr.bf16.mxu1 %v4415_v26  ;;  %v1154_v44 = vsel %vm4718_vm7, %v1018_v43, %v1153_v40  ;;  %v1157_v62 = vsel %vm4726_vm8, %v1019_v46, %v1156_v31  ;;  %v865_v2 = vmax.f32 %v849_v38, 0.0  ;;  %v947_v6 = vrot.slane %v4960_v34, 4  ;;  %v1159_v30 = vld [vmem:[#allocation2 + $0xf0] sm:$0xf] }
  0x9d   : > { %1155 = vst [vmem:[#allocation2 + $0xe8] sm:$0xf] %v1154_v44  ;;  %1158 = vst [vmem:[#allocation2 + $0xec] sm:$0x1] %v1157_v62  ;;  %v5122_v7 = vrot.slane %v1637_v14, 4  ;;  %v5126_v8 = vrot.slane %v1640_v16, 5  ;;  %4204 = vmatmul.mubr.bf16.vlgmr.msra.gmra.mrb[0].mxu0 %v3709_v59  ;;  %v834_v12 = vmul.f32 %v4926_v52, %v3920_v58  ;;  %v3845_v11 = vpack.c.bf16 %v863_v63, %v863_v63 }
  0x9e   : > { %4212 = vmatpush3.bf16.msra.mxu0 %v4944_v22  ;;  %v5135_v34 = vld [vmem:[#allocation2 + $0xd0] sm:$0xf]  ;;  %v5137_v14 = vld [vmem:[#allocation2 + $0xe0] sm:$0xf]  ;;  %v3847_v10 = vpack.c.bf16 %v865_v2, %v865_v2  ;;  %v1103_v16 = vsel %vm4726_vm8, %v947_v6, %v1102_v50  ;;  %v5143_v15 = vrot.slane %v1651_v56, 4  ;;  %v5145_v52 = vrot.slane %v1654_v55, 5 }
  0x9f   : > { %4124 = vmatpush3.bf16.msra.mxu1 %v4415_v26  ;;  %4213 = vmatprep.subr.bf16.mxu0 %v4410_v5  ;;  %v3598_v22 = vcombine.low %v5135_v34, %v5137_v14  ;;  %v4420_v58 = vld [vmem:[%s5543_s2 + $0xb0] sm:$0xff]   ;;  %v864_v0 = vmax.f32 %v848_v4, 0.0  ;;  %1104 = vst [vmem:[#allocation2 + $0xa4] sm:$0x1] %v1103_v16  ;;  %v1021_v20 = vshrl.u32 %v3845_v11, 16  ;;  %v1024_v26 = vshll.u32 %v3845_v11, 16 }
  0xa0   : > { %4125 = vmatprep.subr.bf16.mxu1 %v4417_v60  ;;  %v1037_v23 = vshrl.u32 %v3847_v10, 16  ;;  %v1040_v37 = vshll.u32 %v3847_v10, 16  ;;  %v850_v35 = vadd.f32 %v4957_v28, %v834_v12  ;;  %v1643_v17 = vor.u32 %v5126_v8, %v5122_v7  ;;  %v1171_v50 = vld [vmem:[#allocation2 + $0x100] sm:$0xf] }
  0xa1   : > { %4111 = vmatprep.mubr.bf16.mxu1 %v3598_v22  ;;  %v5155_v56 = vld [vmem:[#allocation2 + $0xd8] sm:$0xf]  ;;  %v1927_v21 = vld [vmem:[#allocation2 + $0xdc] sm:$0x1]  ;;  %v5165_v24 = vrot.slane %v1021_v20, 7  ;;  %v1646_v13 = vshll.u32 %v1207_v19, 16  ;;  %v3846_v48 = vpack.c.bf16 %v864_v0, %v864_v0 }
  0xa2   : > { %4214 = vmatpush3.bf16.msra.mxu0 %v4410_v5  ;;  %v2419_v40 = vshrl.u32 %v5155_v56, 16  ;;  %v2422_v31 = vshll.u32 %v5155_v56, 16  ;;  %v2428_v43 = vshll.u32 %v1927_v21, 16  ;;  %v5169_v46 = vrot.slane %v1037_v23, 7  ;;  %v4416_v62 = vld [vmem:[%s5543_s2 + $0x1a0] sm:$0xff]  }
  0xa3   : > { %4126 = vmatpush3.bf16.msra.mxu1 %v4417_v60  ;;  %4215 = vmatprep.subr.bf16.mxu0 %v4412_v57  ;;  %v1657_v5 = vor.u32 %v5145_v52, %v5143_v15  ;;  %v1026_v60 = vor.u32 %v1024_v26, %v5165_v24  ;;  %v866_v6 = vmax.f32 %v850_v35, 0.0  ;;  %v5183_v7 = vld [vmem:[%s5543_s2 + $0xc0] sm:$0xff]   ;;  %v1029_v11 = vshrl.u32 %v3846_v48, 16  ;;  %v1168_v0 = vld [vmem:[#allocation2 + $0xfc] sm:$0x1] }
  0xa4   : > { %4127 = vmatprep.subr.bf16.mxu1 %v4420_v58  ;;  %v5167_v28 = vld [vmem:[#allocation2 + $0xe8] sm:$0xf]  ;;  %v1929_v32 = vld [vmem:[#allocation2 + $0xec] sm:$0x1]  ;;  %v2421_v45 = vrot.slane %v2419_v40, 4  ;;  %v2424_v27 = vrot.slane %v2422_v31, 5  ;;  %v1042_v44 = vor.u32 %v1040_v37, %v5169_v46 }
  0xa5   : > { %v2433_v42 = vshrl.u32 %v5167_v28, 16  ;;  %v2436_v38 = vshll.u32 %v5167_v28, 16  ;;  %v2430_v55 = vrot.slane %v2428_v43, 5  ;;  %v2442_v59 = vshll.u32 %v1929_v32, 16  ;;  %v4418_v37 = vld [vmem:[%s5543_s2 + $0x1a8] sm:$0xff]  }
  0xa6   : > { %4216 = vmatpush3.bf16.msra.mxu0 %v4412_v57  ;;  %v2425_v63 = vor.u32 %v2424_v27, %v2421_v45  ;;  %v1160_v12 = vsel %vm4718_vm7, %v1026_v60, %v1159_v30  ;;  %v1172_v57 = vsel %vm4718_vm7, %v1042_v44, %v1171_v50  ;;  %v1209_v10 = vld [vmem:[#allocation2 + $0xa4] sm:$0x1]  ;;  %v3848_v52 = vpack.c.bf16 %v866_v6, %v866_v6 }
  0xa7   : > { %v2435_v2 = vrot.slane %v2433_v42, 4  ;;  %v2438_v4 = vrot.slane %v2436_v38, 5  ;;  %4128 = vmatpush3.bf16.msra.mxu1 %v4420_v58  ;;  %4217 = vmatprep.subr.bf16.mxu0 %v4414_v29  ;;  %v2444_v8 = vrot.slane %v2442_v59, 5  ;;  %1161 = vst [vmem:[#allocation2 + $0xf0] sm:$0xf] %v1160_v12  ;;  %v1032_v22 = vshll.u32 %v3846_v48, 16 }
  0xa8   : > { %4129 = vmatprep.subr.bf16.mxu1 %v4423_v25  ;;  %v2426_v16 = vrot.slane %v2425_v63, 4  ;;  %1173 = vst [vmem:[#allocation2 + $0x100] sm:$0xf] %v1172_v57  ;;  %v1165_v58 = vld [vmem:[#allocation2 + $0xf8] sm:$0xf]  ;;  %v1031_v19 = vrot.slane %v1029_v11, 7 }
  0xa9   : > { %v2439_v15 = vor.u32 %v2438_v4, %v2435_v2  ;;  %v1644_v20 = vrot.slane %v1643_v17, 4  ;;  %v1648_v23 = vrot.slane %v1646_v13, 5  ;;  %v1658_v26 = vrot.slane %v1657_v5, 4  ;;  %v1177_v13 = vld [vmem:[#allocation2 + $0x108] sm:$0xf] }
  0xaa   : > { %4218 = vmatpush3.bf16.msra.mxu0 %v4414_v29  ;;  %v2431_v35 = vsel %vm4682_vm6, %v2426_v16, %v2430_v55  ;;  %v1045_v40 = vshrl.u32 %v3848_v52, 16  ;;  %v1048_v31 = vshll.u32 %v3848_v52, 16  ;;  %v1034_v30 = vor.u32 %v1032_v22, %v1031_v19  ;;  %v1180_v38 = vld [vmem:[#allocation2 + $0x10c] sm:$0x1]  ;;  %v4421_v55 = vld [vmem:[%s5543_s2 + $0x1b0] sm:$0xff]   ;;  %v4424_v52 = vld [vmem:[%s5543_s2 + $0x1b8] sm:$0xff]  }
  0xab   : > { %v2440_v21 = vrot.slane %v2439_v15, 4  ;;  %4130 = vmatpush3.bf16.msra.mxu1 %v4423_v25  ;;  %4219 = vmatprep.subr.bf16.mxu0 %v4416_v62  ;;  %v1035_v32 = vrot.slane %v1031_v19, 4  ;;  %v1660_v43 = vshll.u32 %v1209_v10, 16  ;;  %v1649_v50 = vsel %vm4682_vm6, %v1644_v20, %v1648_v23  ;;  %v1126_v16 = vld [vmem:[#allocation2 + $0xc4] sm:$0x1] }
  0xac   : > { %4139 = vmatprep.subr.bf16.mxu1 %v5183_v7  ;;  %v1047_v17 = vrot.slane %v1045_v40, 7  ;;  %v1166_v5 = vsel %vm4718_vm7, %v1034_v30, %v1165_v58  ;;  %v1668_v63 = vshll.u32 %v5030_v53, 16  ;;  %v1679_v2 = vshrl.u32 %v5038_v1, 16 }
  0xad   : > { %v2445_v29 = vsel %vm4682_vm6, %v2440_v21, %v2444_v8  ;;  %v1169_v45 = vsel %vm4726_vm8, %v1035_v32, %v1168_v0  ;;  %v1662_v27 = vrot.slane %v1660_v43, 5  ;;  %1167 = vst [vmem:[#allocation2 + $0xf8] sm:$0xf] %v1166_v5  ;;  %v1682_v6 = vshll.u32 %v5038_v1, 16  ;;  %v1138_v43 = vld [vmem:[#allocation2 + $0xd4] sm:$0x1] }
  0xae   : > { %v3710_v48 = vcombine.low %v2431_v35, %v2445_v29  ;;  %4220 = vmatpush3.bf16.msra.mxu0 %v4416_v62  ;;  %v1050_v25 = vor.u32 %v1048_v31, %v1047_v17  ;;  %v1051_v42 = vrot.slane %v1047_v17, 4  ;;  %1170 = vst [vmem:[#allocation2 + $0xfc] sm:$0x1] %v1169_v45  ;;  %v5206_v59 = vld [vmem:[#allocation2 + $0xf0] sm:$0xf]  ;;  %v1665_v62 = vshrl.u32 %v5030_v53, 16 }
  0xaf   : > { %4221 = vmatprep.subr.bf16.mxu0 %v4418_v37  ;;  %v5208_v60 = vld [vmem:[#allocation2 + $0x100] sm:$0xf]  ;;  %v1663_v44 = vsel %vm4682_vm6, %v1658_v26, %v1662_v27  ;;  %v1693_v11 = vshrl.u32 %v5135_v34, 16  ;;  %v1696_v10 = vshll.u32 %v5135_v34, 16  ;;  %v1114_v53 = vld [vmem:[#allocation2 + $0xb4] sm:$0x1] }
  0xb0   : > { %4207 = vmatprep.mubr.bf16.mxu0 %v3710_v48  ;;  %v3599_v4 = vcombine.low %v5206_v59, %v5208_v60  ;;  %v1178_v8 = vsel %vm4718_vm7, %v1050_v25, %v1177_v13  ;;  %v1181_v12 = vsel %vm4726_vm8, %v1051_v42, %v1180_v38  ;;  %v3624_v57 = vcombine.low %v1649_v50, %v1663_v44  ;;  %v5253_v48 = vld [vmem:[#allocation2 + $0xa0] sm:$0xf]  ;;  %v1150_v45 = vld [vmem:[#allocation2 + $0xe4] sm:$0x1] }
  0xb1   : > { %1179 = vst [vmem:[#allocation2 + $0x108] sm:$0xf] %v1178_v8  ;;  %1182 = vst [vmem:[#allocation2 + $0x10c] sm:$0x1] %v1181_v12  ;;  %v1707_v15 = vshrl.u32 %v5137_v14, 16  ;;  %v1710_v1 = vshll.u32 %v5137_v14, 16 }
  0xb2   : > { %4222 = vmatpush3.bf16.msra.mxu0 %v4418_v37  ;;  %4112 = vmatmul.mubr.bf16.gmra.mrb[4].mxu1 %v3599_v4  ;;  %v963_v22 = vrot.slane %v5000_v49, 4  ;;  %v979_v58 = vrot.slane %v5004_v61, 4  ;;  %v1667_v34 = vrot.slane %v1665_v62, 4  ;;  %v1670_v0 = vrot.slane %v1668_v63, 5  ;;  %v5244_v61 = vld [vmem:[%s5543_s2 + $0x1c0] sm:$0xff]  }
  0xb3   : > { %4223 = vmatprep.subr.bf16.mxu0 %v4421_v55  ;;  %4131 = vmatprep.mubr.bf16.mxu1 %v3624_v57  ;;  %v1681_v19 = vrot.slane %v1679_v2, 4  ;;  %v1684_v20 = vrot.slane %v1682_v6, 5  ;;  %v5237_v35 = vrot.slane %v1693_v11, 4  ;;  %v5246_v40 = vrot.slane %v1696_v10, 5  ;;  %v5262_v4 = vld [vmem:[#allocation2 + $0xb0] sm:$0xf] }
  0xb4   : > { %v5231_v23 = vld [vmem:[#allocation2 + $0xf8] sm:$0xf]  ;;  %v1115_v14 = vsel %vm4726_vm8, %v963_v22, %v1114_v53  ;;  %v1127_v37 = vsel %vm4726_vm8, %v979_v58, %v1126_v16  ;;  %v5248_v31 = vrot.slane %v1707_v15, 4  ;;  %v5250_v30 = vrot.slane %v1710_v1, 5 }
  0xb5   : > { %v1931_v26 = vld [vmem:[#allocation2 + $0xfc] sm:$0x1]  ;;  %v2447_v21 = vshrl.u32 %v5231_v23, 16  ;;  %v2450_v49 = vshll.u32 %v5231_v23, 16  ;;  %1116 = vst [vmem:[#allocation2 + $0xb4] sm:$0x1] %v1115_v14  ;;  %v1671_v38 = vor.u32 %v1670_v0, %v1667_v34  ;;  %v1685_v50 = vor.u32 %v1684_v20, %v1681_v19 }
  0xb6   : > { %4224 = vmatpush3.bf16.msra.mxu0 %v4421_v55  ;;  %1128 = vst [vmem:[#allocation2 + $0xc4] sm:$0x1] %v1127_v37  ;;  %v2456_v32 = vshll.u32 %v1931_v26, 16  ;;  %v1721_v29 = vshrl.u32 %v5206_v59, 16  ;;  %v995_v5 = vrot.slane %v5079_v51, 4  ;;  %v1724_v27 = vshll.u32 %v5206_v59, 16 }
  0xb7   : > { %4225 = vmatprep.subr.bf16.mxu0 %v4424_v52  ;;  %v2449_v17 = vrot.slane %v2447_v21, 4  ;;  %v2452_v13 = vrot.slane %v2450_v49, 5  ;;  %v1011_v55 = vrot.slane %v5081_v54, 4  ;;  %v1735_v51 = vshrl.u32 %v5208_v60, 16  ;;  %v1162_v26 = vld [vmem:[#allocation2 + $0xf4] sm:$0x1] }
  0xb8   : > { %v5257_v25 = vld [vmem:[#allocation2 + $0x108] sm:$0xf]  ;;  %v1933_v42 = vld [vmem:[#allocation2 + $0x10c] sm:$0x1]  ;;  %v2458_v6 = vrot.slane %v2456_v32, 5  ;;  %v1139_v59 = vsel %vm4726_vm8, %v995_v5, %v1138_v43  ;;  %v1738_v8 = vshll.u32 %v5208_v60, 16  ;;  %v3736_v10 = vcombine.low %v5253_v48, %v5262_v4 }
  0xb9   : > { %v2453_v44 = vor.u32 %v2452_v13, %v2449_v17  ;;  %v2461_v62 = vshrl.u32 %v5257_v25, 16  ;;  %v2464_v63 = vshll.u32 %v5257_v25, 16  ;;  %v2470_v2 = vshll.u32 %v1933_v42, 16  ;;  %1140 = vst [vmem:[#allocation2 + $0xd4] sm:$0x1] %v1139_v59 }
  0xba   : > { %4226 = vmatpush3.bf16.msra.mxu0 %v4424_v52  ;;  %v1151_v54 = vsel %vm4726_vm8, %v1011_v55, %v1150_v45  ;;  %v1672_v15 = vrot.slane %v1671_v38, 4  ;;  %v1686_v1 = vrot.slane %v1685_v50, 4  ;;  %v5273_v0 = vrot.slane %v1721_v29, 4  ;;  %v1174_v32 = vld [vmem:[#allocation2 + $0x104] sm:$0x1]  ;;  %v4429_v45 = vld [vmem:[%s5543_s2 + $0xc8] sm:$0xff]  }
  0xbb   : > { %4235 = vmatprep.subr.bf16.mxu0 %v5244_v61  ;;  %v2454_v12 = vrot.slane %v2453_v44, 4  ;;  %v2463_v57 = vrot.slane %v2461_v62, 4  ;;  %v2466_v11 = vrot.slane %v2464_v63, 5  ;;  %1152 = vst [vmem:[#allocation2 + $0xe4] sm:$0x1] %v1151_v54  ;;  %v2472_v22 = vrot.slane %v2470_v2, 5 }
  0xbc   : > { %v1211_v53 = vld [vmem:[#allocation2 + $0xb4] sm:$0x1]  ;;  %v1699_v19 = vor.u32 %v5246_v40, %v5237_v35  ;;  %v1713_v20 = vor.u32 %v5250_v30, %v5248_v31  ;;  %v1027_v49 = vrot.slane %v5165_v24, 4  ;;  %v1726_v43 = vrot.slane %v1724_v27, 5  ;;  %v5297_v63 = vld [vmem:[#allocation2 + $0xc0] sm:$0xf] }
  0xbd   : > { %v1213_v16 = vld [vmem:[#allocation2 + $0xc4] sm:$0x1]  ;;  %v2467_v52 = vor.u32 %v2466_v11, %v2463_v57  ;;  %v1674_v58 = vshll.u32 %v1211_v53, 16  ;;  %v2459_v60 = vsel %vm4682_vm6, %v2454_v12, %v2458_v6  ;;  %v1737_v17 = vrot.slane %v1735_v51, 4  ;;  %v2629_v2 = vld [vmem:[#allocation2 + $0x10] sm:$0xf] }
  0xbe   : > { %v1688_v34 = vshll.u32 %v1213_v16, 16  ;;  %v1740_v29 = vrot.slane %v1738_v8, 5  ;;  %v1043_v13 = vrot.slane %v5169_v46, 4  ;;  %v1163_v31 = vsel %vm4726_vm8, %v1027_v49, %v1162_v26  ;;  %v5300_v51 = vld [vmem:[#allocation2 + $0xd0] sm:$0xf] }
  0xbf   : > { %v2468_v14 = vrot.slane %v2467_v52, 4  ;;  %v1676_v37 = vrot.slane %v1674_v58, 5  ;;  %v1700_v42 = vrot.slane %v1699_v19, 4  ;;  %1164 = vst [vmem:[#allocation2 + $0xf4] sm:$0x1] %v1163_v31  ;;  %v1714_v55 = vrot.slane %v1713_v20, 4 }
  0xc0   : > { %v1690_v21 = vrot.slane %v1688_v34, 5  ;;  %v1215_v27 = vld [vmem:[#allocation2 + $0xd4] sm:$0x1]  ;;  %v1175_v38 = vsel %vm4726_vm8, %v1043_v13, %v1174_v32  ;;  %v3921_v62 = vunpack.c.h.bf16 %v5055_v47  ;;  %v5305_v54 = vld [vmem:[%s5544_s3] ss:$0 sm:$0xff]  ;;  %v1727_v57 = vor.u32 %v1726_v43, %v5273_v0  ;;  %v4433_v19 = vld [vmem:[%s5543_s2 + $0xd8] sm:$0xff]  }
  0xc1   : > { %v2473_v5 = vsel %vm4682_vm6, %v2468_v14, %v2472_v22  ;;  %v1677_v35 = vsel %vm4682_vm6, %v1672_v15, %v1676_v37  ;;  %v1702_v50 = vshll.u32 %v1215_v27, 16  ;;  %1176 = vst [vmem:[#allocation2 + $0x104] sm:$0x1] %v1175_v38  ;;  %v2631_v47 = vld [vmem:[#allocation2 + $0x20] sm:$0xf]  ;;  %v4431_v12 = vld [vmem:[%s5543_s2 + $0xd0] sm:$0xff]   ;;  %v3737_v22 = vcombine.low %v5297_v63, %v5300_v51 }
  0xc2   : > { %v1691_v40 = vsel %vm4682_vm6, %v1686_v1, %v1690_v21  ;;  %v3711_v30 = vcombine.low %v2459_v60, %v2473_v5  ;;  %v1217_v46 = vld [vmem:[#allocation2 + $0xe4] sm:$0x1]  ;;  %v835_v8 = vmul.f32 %v5305_v54, %v3921_v62  ;;  %v5316_v53 = vld [vmem:[#allocation2 + $0xe0] sm:$0xf]  ;;  %v5318_v16 = vld [vmem:[#allocation2 + $0xf0] sm:$0xf] }
  0xc3   : > { %v3625_v24 = vcombine.low %v1677_v35, %v1691_v40  ;;  %v1716_v44 = vshll.u32 %v1217_v46, 16  ;;  %v1704_v6 = vrot.slane %v1702_v50, 5  ;;  %v5323_v15 = vld [vmem:[%s5545_s4] ss:$0 sm:$0xff]  ;;  %v2825_v52 = vshrl.u32 %v2629_v2, 16  ;;  %v4430_v60 = vld [vmem:[%s5543_s2 + $0x1c8] sm:$0xff]  }
  0xc4   : > { %4208 = vmatmul.mubr.bf16.gmra.mrb[4].mxu0 %v3711_v30  ;;  %v851_v1 = vadd.f32 %v5323_v15, %v835_v8  ;;  %v2828_v34 = vshll.u32 %v2629_v2, 16  ;;  %v2839_v0 = vshrl.u32 %v2631_v47, 16  ;;  %v2842_v14 = vshll.u32 %v2631_v47, 16  ;;  %v2630_v43 = vld [vmem:[#allocation2 + $0x14] sm:$0x1]  ;;  %v4435_v50 = vld [vmem:[%s5543_s2 + $0xe0] sm:$0xff]  }
  0xc5   : > { %4132 = vmatmul.mubr.bf16.vlgmr.msra.gmra.mrb[0].mxu1 %v3625_v24  ;;  %4227 = vmatprep.mubr.bf16.mxu0 %v3736_v10  ;;  %v1718_v59 = vrot.slane %v1716_v44, 5  ;;  %v1705_v11 = vsel %vm4682_vm6, %v1700_v42, %v1704_v6  ;;  %v3738_v37 = vcombine.low %v5316_v53, %v5318_v16  ;;  %v1728_v49 = vrot.slane %v1727_v57, 4  ;;  %v2632_v35 = vld [vmem:[#allocation2 + $0x24] sm:$0x1]  ;;  %v4432_v38 = vld [vmem:[%s5543_s2 + $0x1d0] sm:$0xff]  }
  0xc6   : > { %4140 = vmatpush3.bf16.msra.mxu1 %v5183_v7  ;;  %v1741_v7 = vor.u32 %v1740_v29, %v1737_v17  ;;  %v1219_v20 = vld [vmem:[#allocation2 + $0xf4] sm:$0x1]  ;;  %v867_v26 = vmax.f32 %v851_v1, 0.0  ;;  %v3653_v17 = vcombine.low %v5064_v33, %v5066_v41  ;;  %v2827_v40 = vrot.slane %v2825_v52, 4  ;;  %v2633_v57 = vld [vmem:[#allocation2 + $0x30] sm:$0xf] }
  0xc7   : > { %4141 = vmatprep.subr.bf16.mxu1 %v4429_v45  ;;  %v1719_v10 = vsel %vm4682_vm6, %v1714_v55, %v1718_v59  ;;  %v1730_v32 = vshll.u32 %v1219_v20, 16  ;;  %v2830_v30 = vrot.slane %v2828_v34, 5  ;;  %v2841_v24 = vrot.slane %v2839_v0, 4  ;;  %v1183_v59 = vld [vmem:[#allocation2 + $0x110] sm:$0xf]  ;;  %v4437_v1 = vld [vmem:[%s5543_s2 + $0xe8] sm:$0xff]  }
  0xc8   : > { %v3626_v58 = vcombine.low %v1705_v11, %v1719_v10  ;;  %v1221_v21 = vld [vmem:[#allocation2 + $0x104] sm:$0x1]  ;;  %v1742_v29 = vrot.slane %v1741_v7, 4  ;;  %v3849_v5 = vpack.c.bf16 %v867_v26, %v867_v26  ;;  %v2834_v44 = vshll.u32 %v2630_v43, 16  ;;  %v2635_v11 = vld [vmem:[#allocation2 + $0x40] sm:$0xf] }
  0xc9   : > { %v1744_v13 = vshll.u32 %v1221_v21, 16  ;;  %v1732_v31 = vrot.slane %v1730_v32, 5  ;;  %v2848_v62 = vshll.u32 %v2632_v35, 16  ;;  %v3652_v8 = vcombine.low %v5013_v18, %v5022_v36  ;;  %v4434_v10 = vld [vmem:[%s5543_s2 + $0x1d8] sm:$0xff]   ;;  %v2637_v0 = vld [vmem:[#allocation2 + $0x50] sm:$0xf] }
  0xca   : > { %4142 = vmatpush3.bf16.msra.mxu1 %v4429_v45  ;;  %4135 = vmatprep.mubr.bf16.mxu1 %v3626_v58  ;;  %v2844_v45 = vrot.slane %v2842_v14, 5  ;;  %v1053_v46 = vshrl.u32 %v3849_v5, 16  ;;  %v1056_v42 = vshll.u32 %v3849_v5, 16  ;;  %v2831_v47 = vor.u32 %v2830_v30, %v2827_v40  ;;  %v4436_v21 = vld [vmem:[%s5543_s2 + $0x1e0] sm:$0xff]   ;;  %v2649_v9 = vld [vmem:[#allocation2 + $0xb4] sm:$0x1] }
  0xcb   : > { %4143 = vmatprep.subr.bf16.mxu1 %v4431_v12  ;;  %v1746_v27 = vrot.slane %v1744_v13, 5  ;;  %v1733_v55 = vsel %vm4682_vm6, %v1728_v49, %v1732_v31  ;;  %v2836_v52 = vrot.slane %v2834_v44, 5  ;;  %v2850_v18 = vrot.slane %v2848_v62, 5  ;;  %v4440_v49 = vld [vmem:[%s5543_s2 + $0xf0] sm:$0xff]   ;;  %v4461_v31 = vld [vmem:[%s4644_s29 + $0x38] sm:$0xff]  }
  0xcc   : > { %4228 = vmatmul.mubr.bf16.vlgmr.msra.gmra.mrb[0].mxu0 %v3737_v22  ;;  %v5349_v2 = vrot.slane %v1053_v46, 7  ;;  %v2853_v22 = vshrl.u32 %v2633_v57, 16  ;;  %v2856_v58 = vshll.u32 %v2633_v57, 16  ;;  %v3654_v34 = vcombine.low %v5155_v56, %v5167_v28  ;;  %v2636_v46 = vld [vmem:[#allocation2 + $0x44] sm:$0x1] }
  0xcd   : > { %4236 = vmatpush3.bf16.msra.mxu0 %v5244_v61  ;;  %4231 = vmatprep.mubr.bf16.mxu0 %v3738_v37  ;;  %v1747_v61 = vsel %vm4682_vm6, %v1742_v29, %v1746_v27  ;;  %v2867_v26 = vshrl.u32 %v2635_v11, 16  ;;  %v2870_v14 = vshll.u32 %v2635_v11, 16  ;;  %v3147_v37 = vshrl.u32 %v5316_v53, 16  ;;  %v2634_v27 = vld [vmem:[#allocation2 + $0x34] sm:$0x1] }
  0xce   : > { %4144 = vmatpush3.bf16.msra.mxu1 %v4431_v12  ;;  %4237 = vmatprep.subr.bf16.mxu0 %v4430_v60  ;;  %v3627_v6 = vcombine.low %v1733_v55, %v1747_v61  ;;  %v2845_v12 = vor.u32 %v2844_v45, %v2841_v24  ;;  %v1058_v7 = vor.u32 %v1056_v42, %v5349_v2  ;;  %v2881_v32 = vshrl.u32 %v2637_v0, 16  ;;  %v5384_v62 = vld [vmem:[#allocation2 + $0x100] sm:$0xf] }
  0xcf   : > { %4145 = vmatprep.subr.bf16.mxu1 %v4433_v19  ;;  %v2884_v43 = vshll.u32 %v2637_v0, 16  ;;  %v3150_v5 = vshll.u32 %v5316_v53, 16  ;;  %v2855_v35 = vrot.slane %v2853_v22, 4  ;;  %v2858_v40 = vrot.slane %v2856_v58, 5 }
  0xd0   : > { %4136 = vmatmul.mubr.bf16.gmra.mrb[4].mxu1 %v3627_v6  ;;  %v1184_v36 = vsel %vm4718_vm7, %v1058_v7, %v1183_v59  ;;  %v2846_v20 = vrot.slane %v2845_v12, 4  ;;  %v3889_v30 = vunpack.c.h.bf16 %v4461_v31  ;;  %v2869_v42 = vrot.slane %v2867_v26, 4  ;;  %v2638_v6 = vld [vmem:[#allocation2 + $0x54] sm:$0x1]  ;;  %v4443_v7 = vld [vmem:[%s5543_s2 + $0xf8] sm:$0xff]   ;;  %v5403_v26 = vld [vmem:[%s5543_s2 + $0x200] sm:$0xff]  }
  0xd1   : > { %4238 = vmatpush3.bf16.msra.mxu0 %v4430_v60  ;;  %v2639_v60 = vld [vmem:[#allocation2 + $0x60] sm:$0xf]  ;;  %1185 = vst [vmem:[#allocation2 + $0x110] sm:$0xf] %v1184_v36  ;;  %4155 = vmatprep.mubr.bf16.mxu1 %v3652_v8  ;;  %v5380_v53 = vrot.slane %v3147_v37, 4  ;;  %v3161_v55 = vshrl.u32 %v5318_v16, 16 }
  0xd2   : > { %4146 = vmatpush3.bf16.msra.mxu1 %v4433_v19  ;;  %4239 = vmatprep.subr.bf16.mxu0 %v4432_v38  ;;  %v2832_v19 = vrot.slane %v2831_v47, 4  ;;  %v2895_v29 = vshrl.u32 %v2639_v60, 16  ;;  %v2898_v13 = vshll.u32 %v2639_v60, 16  ;;  %v2851_v45 = vsel %vm4682_vm6, %v2846_v20, %v2850_v18  ;;  %v2655_v20 = vld [vmem:[#allocation2 + $0xe4] sm:$0x1] }
  0xd3   : > { %4147 = vmatprep.subr.bf16.mxu1 %v4435_v50  ;;  %v3164_v44 = vshll.u32 %v5318_v16, 16  ;;  %v422_v61 = vmul.f32 %v5305_v54, %v3889_v30  ;;  %v2883_v59 = vrot.slane %v2881_v32, 4  ;;  %v2886_v8 = vrot.slane %v2884_v43, 5 }
  0xd4   : > { %v2837_v24 = vsel %vm4682_vm6, %v2832_v19, %v2836_v52  ;;  %v2897_v47 = vrot.slane %v2895_v29, 4  ;;  %v2900_v12 = vrot.slane %v2898_v13, 5  ;;  %v2862_v16 = vshll.u32 %v2634_v27, 16  ;;  %v4444_v27 = vld [vmem:[%s5543_s2 + $0x1f8] sm:$0xff]  }
  0xd5   : > { %4240 = vmatpush3.bf16.msra.mxu0 %v4432_v38  ;;  %v2872_v38 = vrot.slane %v2870_v14, 5  ;;  %v3764_v11 = vcombine.low %v2837_v24, %v2851_v45  ;;  %v444_v52 = vadd.f32 %v5323_v15, %v422_v61  ;;  %v3152_v54 = vrot.slane %v3150_v5, 5  ;;  %v4442_v15 = vld [vmem:[%s5543_s2 + $0x1f0] sm:$0xff]  }
  0xd6   : > { %4148 = vmatpush3.bf16.msra.mxu1 %v4435_v50  ;;  %4241 = vmatprep.subr.bf16.mxu0 %v4434_v10  ;;  %v4438_v50 = vld [vmem:[%s5543_s2 + $0x1e8] sm:$0xff]   ;;  %v2876_v22 = vshll.u32 %v2636_v46, 16  ;;  %v3091_v58 = vshrl.u32 %v5253_v48, 16  ;;  %v3094_v0 = vshll.u32 %v5253_v48, 16  ;;  %v3163_v60 = vrot.slane %v3161_v55, 4 }
  0xd7   : > { %4149 = vmatprep.subr.bf16.mxu1 %v4437_v1  ;;  %v2873_v36 = vor.u32 %v2872_v38, %v2869_v42  ;;  %v460_v19 = vmax.f32 %v444_v52, 0.0  ;;  %v2887_v14 = vor.u32 %v2886_v8, %v2883_v59  ;;  %v2890_v37 = vshll.u32 %v2638_v6, 16  ;;  %v5414_v46 = vld [vmem:[%s5543_s2 + $0x208] sm:$0xff]  }
  0xd8   : > { %v5387_v57 = vld [vmem:[#allocation2 + $0x110] sm:$0xf]  ;;  %v2901_v32 = vor.u32 %v2900_v12, %v2897_v47  ;;  %v2864_v29 = vrot.slane %v2862_v16, 5  ;;  %v3153_v31 = vor.u32 %v3152_v54, %v5380_v53  ;;  %v3156_v30 = vshll.u32 %v2655_v20, 16 }
  0xd9   : > { %4242 = vmatpush3.bf16.msra.mxu0 %v4434_v10  ;;  %v2859_v10 = vor.u32 %v2858_v40, %v2855_v35  ;;  %v3739_v18 = vcombine.low %v5384_v62, %v5387_v57  ;;  %v3833_v13 = vpack.c.bf16 %v460_v19, %v460_v19  ;;  %v2874_v5 = vrot.slane %v2873_v36, 4  ;;  %v2657_v40 = vld [vmem:[#allocation2 + $0xf4] sm:$0x1] }
  0xda   : > { %4150 = vmatpush3.bf16.msra.mxu1 %v4437_v1  ;;  %4243 = vmatprep.subr.bf16.mxu0 %v4436_v21  ;;  %v2640_v1 = vld [vmem:[#allocation2 + $0x64] sm:$0x1]  ;;  %v2878_v35 = vrot.slane %v2876_v22, 5  ;;  %v3105_v24 = vshrl.u32 %v5262_v4, 16  ;;  %v3108_v45 = vshll.u32 %v5262_v4, 16  ;;  %v2888_v53 = vrot.slane %v2887_v14, 4 }
  0xdb   : > { %4151 = vmatprep.subr.bf16.mxu1 %v4440_v49  ;;  %4232 = vmatmul.mubr.bf16.gmra.mrb[4].mxu0 %v3739_v18  ;;  %v2904_v43 = vshll.u32 %v2640_v1, 16  ;;  %v646_v42 = vshrl.u32 %v3833_v13, 16  ;;  %v649_v38 = vshll.u32 %v3833_v13, 16  ;;  %v2892_v55 = vrot.slane %v2890_v37, 5  ;;  %v1186_v18 = vld [vmem:[#allocation2 + $0x114] sm:$0x1] }
  0xdc   : > { %4251 = vmatprep.mubr.bf16.mxu0 %v3764_v11  ;;  %v1059_v61 = vrot.slane %v5349_v2, 4  ;;  %v3170_v8 = vshll.u32 %v2657_v40, 16  ;;  %v2879_v12 = vsel %vm4682_vm6, %v2874_v5, %v2878_v35  ;;  %v785_v11 = vld [vmem:[#allocation2 + $0x84] sm:$0x1]  ;;  %v3158_v16 = vrot.slane %v3156_v30, 5 }
  0xdd   : > { %4244 = vmatpush3.bf16.msra.mxu0 %v4436_v21  ;;  %v3166_v21 = vrot.slane %v3164_v44, 5  ;;  %v2902_v44 = vrot.slane %v2901_v32, 4  ;;  %v2906_v4 = vrot.slane %v2904_v43, 5  ;;  %v648_v6 = vrot.slane %v646_v42, 7 }
  0xde   : > { %4152 = vmatpush3.bf16.msra.mxu1 %v4440_v49  ;;  %4245 = vmatprep.subr.bf16.mxu0 %v4438_v50  ;;  %v2860_v49 = vrot.slane %v2859_v10, 4  ;;  %v3154_v10 = vrot.slane %v3153_v31, 4  ;;  %v2893_v33 = vsel %vm4682_vm6, %v2888_v53, %v2892_v55  ;;  %v3172_v22 = vrot.slane %v3170_v8, 5 }
  0xdf   : > { %4153 = vmatprep.subr.bf16.mxu1 %v4443_v7  ;;  %v3167_v59 = vor.u32 %v3166_v21, %v3163_v60  ;;  %v651_v2 = vor.u32 %v649_v38, %v648_v6  ;;  %v652_v1 = vrot.slane %v648_v6, 4  ;;  %v2907_v41 = vsel %vm4682_vm6, %v2902_v44, %v2906_v4 }
  0xe0   : > { %v2865_v47 = vsel %vm4682_vm6, %v2860_v49, %v2864_v29  ;;  %v3093_v60 = vrot.slane %v3091_v58, 4  ;;  %v3655_v19 = vcombine.low %v5231_v23, %v5257_v25  ;;  %v3159_v37 = vsel %vm4682_vm6, %v3154_v10, %v3158_v16  ;;  %v2642_v49 = vld [vmem:[#allocation2 + $0x74] sm:$0x1]  ;;  %v5464_v29 = vld [vmem:[%s5543_s2 + $0x218] sm:$0xff]   ;;  %v2659_v16 = vld [vmem:[#allocation2 + $0x104] sm:$0x1] }
  0xe1   : > { %4246 = vmatpush3.bf16.msra.mxu0 %v4438_v50  ;;  %v2641_v50 = vld [vmem:[#allocation2 + $0x70] sm:$0xf]  ;;  %v3168_v36 = vrot.slane %v3167_v59, 4  ;;  %v3765_v14 = vcombine.low %v2865_v47, %v2879_v12  ;;  %v1187_v56 = vsel %vm4726_vm8, %v1059_v61, %v1186_v18  ;;  %v3096_v28 = vrot.slane %v3094_v0, 5 }
  0xe2   : > { %4154 = vmatpush3.bf16.msra.mxu1 %v4443_v7  ;;  %4247 = vmatprep.subr.bf16.mxu0 %v4442_v15  ;;  %v782_v7 = vld [vmem:[#allocation2 + $0x80] sm:$0xf]  ;;  %v2909_v52 = vshrl.u32 %v2641_v50, 16  ;;  %v2912_v54 = vshll.u32 %v2641_v50, 16  ;;  %v3107_v3 = vrot.slane %v3105_v24, 4  ;;  %v3110_v23 = vrot.slane %v3108_v45, 5 }
  0xe3   : > { %4283 = vmatprep.subr.bf16.mxu1 %v5403_v26  ;;  %v783_v20 = vsel %vm4718_vm7, %v651_v2, %v782_v7  ;;  %v3173_v58 = vsel %vm4682_vm6, %v3168_v36, %v3172_v22  ;;  %v3766_v25 = vcombine.low %v2893_v33, %v2907_v41  ;;  %1188 = vst [vmem:[#allocation2 + $0x114] sm:$0x1] %v1187_v56  ;;  %v3175_v32 = vshrl.u32 %v5384_v62, 16 }
  0xe4   : > { %784 = vst [vmem:[#allocation2 + $0x80] sm:$0xf] %v783_v20  ;;  %v2911_v43 = vrot.slane %v2909_v52, 4  ;;  %v2914_v21 = vrot.slane %v2912_v54, 5  ;;  %v3178_v48 = vshll.u32 %v5384_v62, 16  ;;  %v3189_v0 = vshrl.u32 %v5387_v57, 16 }
  0xe5   : > { %4156 = vmatmul.mubr.bf16.vlgmr.msra.gmra.mrb[0].mxu1 %v3653_v17  ;;  %4248 = vmatpush3.bf16.msra.mxu0 %v4442_v15  ;;  %v5434_v17 = vld [vmem:[%s5543_s2 + $0x210] sm:$0xff]   ;;  %v786_v15 = vsel %vm4726_vm8, %v652_v1, %v785_v11  ;;  %v3794_v13 = vcombine.low %v3159_v37, %v3173_v58  ;;  %v3192_v5 = vshll.u32 %v5387_v57, 16  ;;  %v3097_v35 = vor.u32 %v3096_v28, %v3093_v60  ;;  %v5473_v57 = vld [vmem:[%s5543_s2 + $0x220] sm:$0xff]   ;;  %v4454_v11 = vld [vmem:[%s5543_s2 + $0x228] sm:$0xff]  }
  0xe6   : > { %4291 = vmatpush3.bf16.msra.mxu1 %v5403_v26  ;;  %4249 = vmatprep.subr.bf16.mxu0 %v4444_v27  ;;  %787 = vst [vmem:[#allocation2 + $0x84] sm:$0x1] %v786_v15  ;;  %v3111_v31 = vor.u32 %v3110_v23, %v3107_v3  ;;  %v3114_v62 = vshll.u32 %v2649_v9, 16  ;;  %v3177_v30 = vrot.slane %v3175_v32, 4  ;;  %v2915_v24 = vor.u32 %v2914_v21, %v2911_v43  ;;  %v2651_v3 = vld [vmem:[#allocation2 + $0xc4] sm:$0x1] }
  0xe7   : > { %4284 = vmatprep.subr.bf16.mxu1 %v5414_v46  ;;  %4159 = vmatprep.mubr.bf16.mxu1 %v3654_v34  ;;  %v2647_v34 = vld [vmem:[#allocation2 + $0xa4] sm:$0x1]  ;;  %v2918_v45 = vshll.u32 %v2642_v49, 16  ;;  %v3191_v42 = vrot.slane %v3189_v0, 4  ;;  %v3194_v53 = vrot.slane %v3192_v5, 5  ;;  %v3098_v50 = vrot.slane %v3097_v35, 4 }
  0xe8   : > { %v3100_v40 = vshll.u32 %v2647_v34, 16  ;;  %v3112_v6 = vrot.slane %v3111_v31, 4  ;;  %v3116_v59 = vrot.slane %v3114_v62, 5  ;;  %v2916_v8 = vrot.slane %v2915_v24, 4  ;;  %v2653_v34 = vld [vmem:[#allocation2 + $0xd4] sm:$0x1] }
  0xe9   : > { %4250 = vmatpush3.bf16.msra.mxu0 %v4444_v27  ;;  %v3180_v27 = vrot.slane %v3178_v48, 5  ;;  %v2920_v47 = vrot.slane %v2918_v45, 5  ;;  %v3119_v10 = vshrl.u32 %v5297_v63, 16  ;;  %v3133_v1 = vshrl.u32 %v5300_v51, 16  ;;  %v4456_v21 = vld [vmem:[%s5543_s2 + $0x238] sm:$0xff]  }
  0xea   : > { %4292 = vmatpush3.bf16.msra.mxu1 %v5414_v46  ;;  %4259 = vmatprep.subr.bf16.mxu0 %v5403_v26  ;;  %v3102_v61 = vrot.slane %v3100_v40, 5  ;;  %v2661_v2 = vld [vmem:[#allocation2 + $0x114] sm:$0x1]  ;;  %v3136_v52 = vshll.u32 %v5300_v51, 16  ;;  %v3195_v41 = vor.u32 %v3194_v53, %v3191_v42  ;;  %v3184_v51 = vshll.u32 %v2659_v16, 16 }
  0xeb   : > { %4285 = vmatprep.subr.bf16.mxu1 %v5434_v17  ;;  %v3181_v33 = vor.u32 %v3180_v27, %v3177_v30  ;;  %v2921_v22 = vsel %vm4682_vm6, %v2916_v8, %v2920_v47  ;;  %v3121_v20 = vrot.slane %v3119_v10, 4  ;;  %v3135_v58 = vrot.slane %v3133_v1, 4 }
  0xec   : > { %4252 = vmatmul.mubr.bf16.vlgmr.msra.gmra.mrb[0].mxu0 %v3765_v14  ;;  %v3103_v36 = vsel %vm4682_vm6, %v3098_v50, %v3102_v61  ;;  %v3138_v56 = vrot.slane %v3136_v52, 5  ;;  %v3186_v32 = vrot.slane %v3184_v51, 5  ;;  %v3128_v48 = vshll.u32 %v2651_v3, 16 }
  0xed   : > { %4160 = vmatmul.mubr.bf16.gmra.mrb[4].mxu1 %v3655_v19  ;;  %4260 = vmatpush3.bf16.msra.mxu0 %v5403_v26  ;;  %v2643_v26 = vld [vmem:[#allocation2 + $0x80] sm:$0xf]  ;;  %v2644_v38 = vld [vmem:[#allocation2 + $0x84] sm:$0x1]  ;;  %v3198_v19 = vshll.u32 %v2661_v2, 16  ;;  %v3182_v23 = vrot.slane %v3181_v33, 4 }
  0xee   : > { %4255 = vmatprep.mubr.bf16.mxu0 %v3766_v25  ;;  %4261 = vmatprep.subr.bf16.mxu0 %v5414_v46  ;;  %v2923_v55 = vshrl.u32 %v2643_v26, 16  ;;  %v2926_v44 = vshll.u32 %v2643_v26, 16  ;;  %v2932_v4 = vshll.u32 %v2644_v38, 16  ;;  %v3196_v25 = vrot.slane %v3195_v41, 4 }
  0xef   : > { %4293 = vmatpush3.bf16.msra.mxu1 %v5434_v17  ;;  %4279 = vmatprep.mubr.bf16.mxu1 %v3794_v13  ;;  %v3200_v43 = vrot.slane %v3198_v19, 5  ;;  %v3139_v0 = vor.u32 %v3138_v56, %v3135_v58  ;;  %v3142_v49 = vshll.u32 %v2653_v34, 16  ;;  %v3130_v35 = vrot.slane %v3128_v48, 5 }
  0xf0   : > { %4286 = vmatprep.subr.bf16.mxu1 %v5464_v29  ;;  %v2925_v12 = vrot.slane %v2923_v55, 4  ;;  %v2928_v7 = vrot.slane %v2926_v44, 5  ;;  %v2934_v18 = vrot.slane %v2932_v4, 5 }
  0xf1   : > { %4262 = vmatpush3.bf16.msra.mxu0 %v5414_v46  ;;  %v3122_v46 = vshll.u32 %v5297_v63, 16  ;;  %v3117_v63 = vsel %vm4682_vm6, %v3112_v6, %v3116_v59  ;;  %v3201_v13 = vsel %vm4682_vm6, %v3196_v25, %v3200_v43  ;;  %v3140_v40 = vrot.slane %v3139_v0, 4 }
  0xf2   : > { %4263 = vmatprep.subr.bf16.mxu0 %v5434_v17  ;;  %v2929_v54 = vor.u32 %v2928_v7, %v2925_v12  ;;  %v3792_v37 = vcombine.low %v3103_v36, %v3117_v63  ;;  %v3144_v31 = vrot.slane %v3142_v49, 5 }
  0xf3   : > { %4294 = vmatpush3.bf16.msra.mxu1 %v5464_v29  ;;  %v3124_v15 = vrot.slane %v3122_v46, 5 }
  0xf4   : > { %4287 = vmatprep.subr.bf16.mxu1 %v5473_v57  ;;  %v2930_v60 = vrot.slane %v2929_v54, 4  ;;  %v3145_v24 = vsel %vm4682_vm6, %v3140_v40, %v3144_v31 }
  0xf5   : > { %4264 = vmatpush3.bf16.msra.mxu0 %v5434_v17  ;;  %v4455_v17 = vld [vmem:[%s5543_s2 + $0x230] sm:$0xff]   ;;  %v3125_v9 = vor.u32 %v3124_v15, %v3121_v20 }
  0xf6   : > { %4265 = vmatprep.subr.bf16.mxu0 %v5464_v29  ;;  %v2935_v14 = vsel %vm4682_vm6, %v2930_v60, %v2934_v18 }
  0xf7   : > { %4295 = vmatpush3.bf16.msra.mxu1 %v5473_v57  ;;  %v3767_v28 = vcombine.low %v2921_v22, %v2935_v14  ;;  %v3126_v5 = vrot.slane %v3125_v9, 4 }
  0xf8   : > { %4288 = vmatprep.subr.bf16.mxu1 %v4454_v11 }
  0xf9   : > { %4266 = vmatpush3.bf16.msra.mxu0 %v5464_v29  ;;  %v3187_v29 = vsel %vm4682_vm6, %v3182_v23, %v3186_v32  ;;  %v3131_v30 = vsel %vm4682_vm6, %v3126_v5, %v3130_v35 }
  0xfa   : > { %4267 = vmatprep.subr.bf16.mxu0 %v5473_v57  ;;  %4256 = vmatmul.mubr.bf16.gmra.mrb[4].mxu0 %v3767_v28  ;;  %v3795_v62 = vcombine.low %v3187_v29, %v3201_v13  ;;  %v3793_v45 = vcombine.low %v3131_v30, %v3145_v24 }
  0xfb   : > { %4296 = vmatpush3.bf16.msra.mxu1 %v4454_v11  ;;  %4275 = vmatprep.mubr.bf16.mxu0 %v3792_v37 }
  0xfc   : > { %4289 = vmatprep.subr.bf16.mxu1 %v4455_v17 }
  0xfd   : > { %4268 = vmatpush3.bf16.msra.mxu0 %v5473_v57 }
  0xfe   : > { %4269 = vmatprep.subr.bf16.mxu0 %v4454_v11 }
  0xff   : > { %4297 = vmatpush3.bf16.msra.mxu1 %v4455_v17 }
 0x100   : > { %4290 = vmatprep.subr.bf16.mxu1 %v4456_v21 }
 0x101   : > { %4270 = vmatpush3.bf16.msra.mxu0 %v4454_v11 }
 0x102   : > { %4271 = vmatprep.subr.bf16.mxu0 %v4455_v17 }
 0x103   : > { %4298 = vmatpush3.bf16.msra.mxu1 %v4456_v21 }
 0x105   : > { %4272 = vmatpush3.bf16.msra.mxu0 %v4455_v17 }
 0x106   : > { %4280 = vmatmul.mubr.bf16.vlgmr.msra.gmra.mrb[8].mxu1 %v3795_v62  ;;  %4273 = vmatprep.subr.bf16.mxu0 %v4456_v21 }
 0x109   : > { %4274 = vmatpush3.bf16.msra.mxu0 %v4456_v21 }
 0x10c   : > { %4276 = vmatmul.mubr.bf16.vlgmr.msra.gmra.mrb[0].mxu0 %v3793_v45 }
 0x1b8   : > { %v4157_v57 = vpop.f32.mrb[0].mxu1 }
 0x1b9   : > { %v2057_v27 = vpop.f32.mrb[1].mxu1 }
 0x1ba   : > { %v4158_v42 = vpop.f32.mrb[2].mxu1 }
 0x1bb   : > { %v2060_v26 = vpop.f32.mrb[3].mxu1 }
 0x1c0   : > { %v4161_v38 = vpop.f32.mrb[4].mxu1 }
 0x1c1   : > { %v2073_v53 = vpop.f32.mrb[5].mxu1 }
 0x1c2   : > { %v4162_v55 = vpop.f32.mrb[6].mxu1 }
 0x1c3   : > { %v2076_v44 = vpop.f32.mrb[7].mxu1 }
 0x1cd   : > { %v4257_v4 = vpop.f32.mrb[4].mxu0 }
 0x1ce   : > { %v4303_v50 = vadd.f32 %v4257_v4, %v4161_v38  ;;  %v3067_v61 = vpop.f32.mrb[5].mxu0 }
 0x1cf   : > { %v4305_v6 = vadd.f32 %v3067_v61, %v2073_v53  ;;  %v4258_v39 = vpop.f32.mrb[6].mxu0 }
 0x1d0   : > { %v4307_v59 = vadd.f32 %v4258_v39, %v4162_v55  ;;  %v3070_v8 = vpop.f32.mrb[7].mxu0  ;;  %v4471_v55 = vmov (!%p3812_p4), 0.0  }
 0x1d1   : > { %v4309_v47 = vadd.f32 %v3070_v8, %v2076_v44  ;;  %3436 = vst [vmem:[%s5547_s6] sm:$0x1] (!%p3812_p4), %v4471_v55  ;;  %3437 = vst [vmem:[%s5548_s7] sm:$0x1] (!%p3812_p4), %v4471_v55 }
 0x1d9   : > { %v4281_v12 = vpop.f32.mrb[8].mxu1 }
 0x1da   : > { %v4304_v7 = vadd.f32 %v4303_v50, %v4281_v12  ;;  %v3333_v11 = vpop.f32.mrb[9].mxu1 }
 0x1db   : > { %v4306_v10 = vadd.f32 %v4305_v6, %v3333_v11  ;;  %v4282_v46 = vpop.f32.mrb[10].mxu1 }
 0x1dc   : > { %v4308_v16 = vadd.f32 %v4307_v59, %v4282_v46  ;;  %v3336_v2 = vpop.f32.mrb[11].mxu1  ;;  %v3416_v48 = vmul.f32 %v4304_v7, %v4304_v7 }
 0x1dd   : > { %v4310_v1 = vadd.f32 %v4309_v47, %v3336_v2  ;;  %v3414_v25 = vmul.f32 %v4306_v10, %v4306_v10 }
 0x1de   : > { %v3940_v52 = vpack.c.bf16 %v4308_v16, %v4304_v7  ;;  %v3417_v29 = vmul.f32 %v4308_v16, %v4308_v16 }
 0x1df   : > { %v3935_v54 = vpack.c.bf16 %v4310_v1, %v4306_v10  ;;  %v4277_v18 = vpop.f32.mrb[0].mxu0  ;;  %v3415_v21 = vmul.f32 %v4310_v1, %v4310_v1 }
 0x1e0   : > { %3958 = vst [vmem:[%s293_s16 + $0x18] sm:$0xff] %v3940_v52   ;;  %v4299_v33 = vadd.f32 %v4277_v18, %v4157_v57  ;;  %v3317_v41 = vpop.f32.mrb[1].mxu0 }
 0x1e1   : > { %3957 = vst [vmem:[%s293_s16 + $0x10] sm:$0xff] %v3935_v54   ;;  %v4300_v36 = vadd.f32 %v3317_v41, %v2057_v27  ;;  %v4278_v63 = vpop.f32.mrb[2].mxu0 }
 0x1e2   : > { %v4301_v22 = vadd.f32 %v4278_v63, %v4158_v42  ;;  %v3320_v60 = vpop.f32.mrb[3].mxu0  ;;  %v3412_v37 = vmul.f32 %v4299_v33, %v4299_v33 }
 0x1e3   : > { %v4302_v51 = vadd.f32 %v3320_v60, %v2060_v26  ;;  %v3410_v17 = vmul.f32 %v4300_v36, %v4300_v36 }
 0x1e4   : > { %v3930_v19 = vpack.c.bf16 %v4301_v22, %v4299_v33  ;;  %v3413_v28 = vmul.f32 %v4301_v22, %v4301_v22 }
 0x1e5   : > { %v3925_v20 = vpack.c.bf16 %v4302_v51, %v4300_v36  ;;  %v3396_v15 = vadd.f32 %v4302_v51, %v4300_v36  ;;  %v3411_v14 = vmul.f32 %v4302_v51, %v4302_v51 }
 0x1e6   : > { %3956 = vst [vmem:[%s293_s16 + $0x8] sm:$0xff] %v3930_v19  }
 0x1e7   : > { %3926 = vst [vmem:[%s293_s16] sm:$0xff] %v3925_v20   ;;  %v3397_v58 = vadd.f32 %v4299_v33, %v3396_v15  ;;  %v3418_v56 = vadd.f32 %v3411_v14, %v3410_v17 }
 0x1e9   : > { %v3419_v3 = vadd.f32 %v3418_v56, %v3412_v37  ;;  %v3398_v23 = vadd.f32 %v4301_v22, %v3397_v58 }
 0x1eb   : > { %v3399_v34 = vadd.f32 %v4306_v10, %v3398_v23  ;;  %v3420_v32 = vadd.f32 %v3419_v3, %v3413_v28 }
 0x1ed   : > { %v3400_v43 = vadd.f32 %v4310_v1, %v3399_v34  ;;  %v3421_v9 = vadd.f32 %v3420_v32, %v3414_v25 }
 0x1ef   : > { %v3401_v0 = vadd.f32 %v4304_v7, %v3400_v43  ;;  %v3422_v49 = vadd.f32 %v3421_v9, %v3415_v21 }
 0x1f1   : > { %v3402_v13 = vadd.f32 %v4308_v16, %v3401_v0  ;;  %v3423_v5 = vadd.f32 %v3422_v49, %v3416_v48 }
 0x1f3   : > { %v3403_v35 = vrot.slane %v3402_v13, 4  ;;  %v3424_v40 = vadd.f32 %v3423_v5, %v3417_v29 }
 0x1f5   : > { %v3404_v31 = vadd.f32 %v3403_v35, %v3402_v13  ;;  %v3425_v62 = vrot.slane %v3424_v40, 4 }
 0x1f7   : > { %v3405_v30 = vrot.slane %v3404_v31, 2  ;;  %v3426_v24 = vadd.f32 %v3425_v62, %v3424_v40 }
 0x1f9   : > { %v3406_v45 = vadd.f32 %v3405_v30, %v3404_v31  ;;  %v3427_v57 = vrot.slane %v3426_v24, 2  ;;  %3435 = sbr.rel (%p3812_p4) target bundleno = 512 (0x200), region = 44 }
 0x1fb   : > { %v3407_v27 = vrot.slane %v3406_v45, 1  ;;  %v3428_v42 = vadd.f32 %v3427_v57, %v3426_v24 }
 0x1fd   : > { %v3408_v26 = vadd.f32 %v3407_v27, %v3406_v45  ;;  %v3429_v38 = vrot.slane %v3428_v42, 1 }
 0x1ff   : > { %v3430_v53 = vadd.f32 %v3429_v38, %v3428_v42 }
 0x200 PF: > { %v3438_v44 = vld [vmem:[%s5547_s6] sm:$0x1] }
 0x201   : > { %v3441_v4 = vld [vmem:[%s5548_s7] sm:$0x1]  ;;  %v3439_v50 = vadd.f32 %v3438_v44, %v3408_v26 }
 0x202   : > { %v3442_v61 = vadd.f32 %v3441_v4, %v3430_v53 }
 0x203   : > { %3440 = vst [vmem:[%s5547_s6] sm:$0x1] %v3439_v50 }
 0x204   : > { %3443 = vst [vmem:[%s5548_s7] sm:$0x1] %v3442_v61 }
 0x205 PF: > { %s18_s24 = sadd.s32 1, %s4468_s24  }
 0x206   : > { %p15_p5 = scmp.ge.s32.totalorder %s18_s24, 4  }
 0x208   :  { %17 = sbr.rel (!%p15_p5) target bundleno = 1 (0x1), region = 106 }

</bundles_post_ra>
